<compile_context>
chip_gen: v7x
topology: tpu7x:2x2x1
jax: 0.10.0
libtpu: 0.0.40
codegen_flags: <defaults>
</compile_context>

<pallas_src>
import math
import functools

import jax
import jax.numpy as jnp
from jax import lax
from jax.experimental import pallas as pl
from jax.experimental.pallas import tpu as pltpu


# ----------------------------------------------------------------------------- helpers
def _round_up(n, m):
    return ((n + m - 1) // m) * m


def _resident_spec(shape):
    """Whole-array operand whose block index never changes across the grid (weights/params).

    Single-buffered: with a constant index_map there is nothing to pipeline, so a second
    buffer would only burn VMEM (matters most on v7x's 64 MiB)."""
    index_map = lambda t: (0,) * len(shape)
    try:
        return pl.BlockSpec(shape, index_map, pipeline_mode=pl.Buffered(1))
    except Exception:  # pragma: no cover — jax without pipeline_mode support
        return pl.BlockSpec(shape, index_map)


# ----------------------------------------------------------------------------- fused kernel
def fused_transformer_kernel(
        x_ref, pe_ref, w1_ref, b1_ref, bn_ref,
        wqkv_ref, bqkv_ref, wo_ref, bo_ref, ln1_ref,
        wf1_ref, bf1_ref, wf2_ref, bf2_ref, ln2_ref,
        wh_ref, bh_ref,
        o_ref, num_acc, cnt_acc,
        *, num_heads, b_pad, b_real, t_tile):
    """One T-tile of the forward pass.

    x_ref rows are ordered (frame t, sample b): row r = t*b_pad + b.  Per the reference
    module's (batch_first=False) semantics, attention mixes over the sample axis B, batched
    over frames T — so T-tiles are independent for the encoder and only the masked mean over
    frames needs a cross-tile accumulator."""
    t_step = pl.program_id(0)

    @pl.when(t_step == 0)
    def _init():
        num_acc[...] = jnp.zeros_like(num_acc)
        cnt_acc[...] = jnp.zeros_like(cnt_acc)

    R = t_tile * b_pad
    E = w1_ref.shape[1]
    H = num_heads
    Dh = E // H

    x2 = x_ref[...]                                                   # (R, F) f32

    # padding mask: torch.isclose(x, 0) (atol=1e-8) over all features -> padding frame
    mask = (jnp.max(jnp.abs(x2), axis=1, keepdims=True) > 1e-8).astype(jnp.float32)   # (R,1)

    # ---- embedding LinearBlock: Linear -> BatchNorm1d(eval, folded) -> ReLU ------------
    gamma, beta = bn_ref[0:1, :], bn_ref[1:2, :]
    r_mean, r_var = bn_ref[2:3, :], bn_ref[3:4, :]
    bn_scale = gamma * lax.rsqrt(r_var + 1e-5)
    bn_shift = beta - r_mean * bn_scale
    y = jnp.dot(x2.astype(jnp.bfloat16), w1_ref[...].astype(jnp.bfloat16),
                preferred_element_type=jnp.float32) + b1_ref[...]
    y = jnp.maximum(y * bn_scale + bn_shift, 0.0)

    # ---- positional encoding: pe[t] broadcast over the sample (sublane) axis -----------
    h0 = (y.reshape(t_tile, b_pad, E) + pe_ref[...][:, None, :]).reshape(R, E)

    # ---- TransformerEncoderLayer (post-norm, ReLU FFN) ---------------------------------
    qkv = jnp.dot(h0.astype(jnp.bfloat16), wqkv_ref[...].astype(jnp.bfloat16),
                  preferred_element_type=jnp.float32) + bqkv_ref[...]          # (R, 3E)
    q3 = qkv[:, 0 * E:1 * E].reshape(t_tile, b_pad, E)
    k3 = qkv[:, 1 * E:2 * E].reshape(t_tile, b_pad, E)
    v3 = qkv[:, 2 * E:3 * E].reshape(t_tile, b_pad, E)

    # Padded dummy samples (b >= b_real) are masked out of the attention keys so real-sample
    # outputs equal the unpadded computation.  (The reference passes no key-padding mask, so
    # real samples do attend to each other — preserved here.)
    if b_pad > b_real:
        key_bias = jnp.where(
            lax.broadcasted_iota(jnp.int32, (1, b_pad), 1) < b_real, 0.0, -1e30)
    else:
        key_bias = None

    scale = 1.0 / math.sqrt(Dh)
    attn = jnp.zeros((R, E), dtype=jnp.float32)
    for h in range(H):                 # H=4, statically unrolled (see TODO in header)
        sl = slice(h * Dh, (h + 1) * Dh)
        qh = q3[:, :, sl].astype(jnp.bfloat16)
        kh = k3[:, :, sl].astype(jnp.bfloat16)
        vh = v3[:, :, sl].astype(jnp.bfloat16)
        s = jnp.einsum('tbd,tcd->tbc', qh, kh,
                       preferred_element_type=jnp.float32) * scale             # (tT, B, B)
        if key_bias is not None:
            s = s + key_bias
        s = s - jnp.max(s, axis=-1, keepdims=True)
        p = jnp.exp(s)
        p = p * pl.reciprocal(jnp.sum(p, axis=-1, keepdims=True), approx=True)
        ctx_h = jnp.einsum('tbc,tcd->tbd', p.astype(jnp.bfloat16), vh,
                           preferred_element_type=jnp.float32).reshape(R, Dh)
        # accumulate through this head's slice of the output projection -> no lane concat
        attn = attn + jnp.dot(ctx_h.astype(jnp.bfloat16),
                              wo_ref[sl, :].astype(jnp.bfloat16),
                              preferred_element_type=jnp.float32)
    attn = attn + bo_ref[...]

    def layer_norm(z, ln_ref):
        g, b = ln_ref[0:1, :], ln_ref[1:2, :]
        mu = jnp.mean(z, axis=-1, keepdims=True)
        var = jnp.mean((z - mu) ** 2, axis=-1, keepdims=True)
        return (z - mu) * lax.rsqrt(var + 1e-5) * g + b

    h1 = layer_norm(h0 + attn, ln1_ref)                                        # residual+norm1

    # FFN (weights zero-padded to a full 128-lane tile -> lane-dense MXU & stores)
    f = jnp.maximum(
        jnp.dot(h1.astype(jnp.bfloat16), wf1_ref[...].astype(jnp.bfloat16),
                preferred_element_type=jnp.float32) + bf1_ref[...], 0.0)
    f = jnp.dot(f.astype(jnp.bfloat16), wf2_ref[...].astype(jnp.bfloat16),
                preferred_element_type=jnp.float32) + bf2_ref[...]
    h2 = layer_norm(h1 + f, ln2_ref)                                           # (R, E)

    # ---- masked-mean accumulation over the T grid axis ---------------------------------
    mask3 = mask.reshape(t_tile, b_pad, 1)
    num_acc[...] += jnp.sum(h2.reshape(t_tile, b_pad, E) * mask3, axis=0)      # (B, E)
    cnt_acc[...] += jnp.sum(mask3, axis=0)                                     # (B, 1)

    # ---- finalize: masked mean + head Linear --------------------------------------------
    @pl.when(t_step == pl.num_programs(0) - 1)
    def _finalize():
        den = jnp.where(cnt_acc[...] > 0.0, cnt_acc[...], 1.0)   # guard all-padding samples
        pooled = num_acc[...] * pl.reciprocal(den, approx=True)                # (B, E)
        o_ref[...] = jnp.dot(pooled.astype(jnp.bfloat16),
                             wh_ref[...].astype(jnp.bfloat16),
                             preferred_element_type=jnp.float32) + bh_ref[...]


# ----------------------------------------------------------------------------- wrapper
def transformer_model_forward(x, params, *, num_heads=4, t_tile=8):
    # NOTE: at production shapes raise t_tile so t_tile * Bp >= ~256 rows per grid step
    # (fills the 256-wide v6e/v7x MXU); T-tiles beyond T are zero-padded padding frames.
    B, T, K, D = x.shape
    F = K * D
    E = params['w1'].shape[1]
    C = params['wh'].shape[1]
    FF = params['wf1'].shape[1]

    LANE, SUB = 128, 8
    FP = _round_up(FF, LANE)          # padded FFN width
    CP = _round_up(C, LANE)           # padded class width
    Bp = _round_up(B, SUB)            # sublane-padded sample count (dummies masked in-kernel)
    Tp = _round_up(T, t_tile)         # frames padded to a whole number of T-tiles
    n_t = Tp // t_tile

    # Rows ordered (frame t, sample b) -> attention batches over T with no in-kernel
    # activation transposes; only the tiny raw input is padded/transposed on the host.
    x_f = jnp.pad(x.reshape(B, T, F).astype(jnp.float32),
                  ((0, Bp - B), (0, Tp - T), (0, 0)))
    x_rows = jnp.transpose(x_f, (1, 0, 2)).reshape(Tp * Bp, F)

    # Positional encoding passed un-replicated as (Tp, E); broadcast over B inside the kernel.
    pe = params['pe'][:Tp]
    if pe.shape[0] < Tp:              # dummy frames past max_len: zero PE (masked anyway)
        pe = jnp.pad(pe, ((0, Tp - pe.shape[0]), (0, 0)))

    # Zero-pad FFN / head weights to full 128-lane tiles (extra columns/rows are inert).
    wf1 = jnp.pad(params['wf1'], ((0, 0), (0, FP - FF)))
    bf1 = jnp.pad(params['bf1'], ((0, 0), (0, FP - FF)))
    wf2 = jnp.pad(params['wf2'], ((0, FP - FF), (0, 0)))
    wh = jnp.pad(params['wh'], ((0, 0), (0, CP - C)))
    bh = jnp.pad(params['bh'], ((0, 0), (0, CP - C)))

    weights = (params['w1'], params['b1'], params['bn'],
               params['wqkv'], params['bqkv'], params['wo'], params['bo'], params['ln1'],
               wf1, bf1, wf2, params['bf2'], params['ln2'], wh, bh)

    in_specs = (
        [pl.BlockSpec((t_tile * Bp, F), lambda t: (t, 0)),   # per-tile activation row slab
         pl.BlockSpec((t_tile, E), lambda t: (t, 0))]        # per-tile positional encoding
        + [_resident_spec(w.shape) for w in weights])

    out_pad = pl.pallas_call(
        functools.partial(fused_transformer_kernel, num_heads=num_heads,
                          b_pad=Bp, b_real=B, t_tile=t_tile),
        grid=(n_t,),
        in_specs=in_specs,
        out_specs=pl.BlockSpec((Bp, CP), lambda t: (0, 0)),
        out_shape=jax.ShapeDtypeStruct((Bp, CP), jnp.float32),
        scratch_shapes=[pltpu.VMEM((Bp, E), jnp.float32),    # masked-sum accumulator
                        pltpu.VMEM((Bp, 1), jnp.float32)],   # frame-count accumulator
        compiler_params=pltpu.CompilerParams(
            dimension_semantics=("arbitrary",),              # pooled accumulator reduces over T
            vmem_limit_bytes=32 * 1024 * 1024),
    )(x_rows, pe, *weights)
    return out_pad[:B, :C]


# ----------------------------------------------------------------------------- params
def init_params(key, *, keypoints_len=7, dim_no=3, num_classes=5,
                d_model=128, dim_feedforward=100, max_len=100):
    F = keypoints_len * dim_no
    ks = jax.random.split(key, 16)

    def rnd(k, shape, scale=0.05):
        return (scale * jax.random.normal(k, shape)).astype(jnp.float32)

    # positional-encoding buffer (same construction as PositionalEncoding.__init__)
    pos = jnp.arange(max_len, dtype=jnp.float32)[:, None]
    div = jnp.exp(jnp.arange(0, d_model, 2, dtype=jnp.float32)
                  * (-math.log(10000.0) / d_model))
    pe = jnp.zeros((max_len, d_model), dtype=jnp.float32)
    pe = pe.at[:, 0::2].set(jnp.sin(pos * div))
    pe = pe.at[:, 1::2].set(jnp.cos(pos * div))

    ones = jnp.ones((1, d_model), dtype=jnp.float32)
    zeros = jnp.zeros((1, d_model), dtype=jnp.float32)
    params = dict(
        # embedding LinearBlock (weights stored pre-transposed: y = x @ W + b)
        w1=rnd(ks[0], (F, d_model)),
        b1=rnd(ks[1], (1, d_model)),
        bn=jnp.concatenate([1.0 + rnd(ks[2], (1, d_model)),            # gamma
                            rnd(ks[3], (1, d_model)),                  # beta
                            rnd(ks[4], (1, d_model)),                  # running_mean
                            1.0 + jnp.abs(rnd(ks[5], (1, d_model)))],  # running_var
                           axis=0),
        pe=pe,
        # TransformerEncoderLayer
        wqkv=rnd(ks[6], (d_model, 3 * d_model)),
        bqkv=rnd(ks[7], (1, 3 * d_model)),
        wo=rnd(ks[8], (d_model, d_model)),
        bo=rnd(ks[9], (1, d_model)),
        ln1=jnp.concatenate([ones, zeros], axis=0),
        wf1=rnd(ks[10], (d_model, dim_feedforward)),
        bf1=rnd(ks[11], (1, dim_feedforward)),
        wf2=rnd(ks[12], (dim_feedforward, d_model)),
        bf2=rnd(ks[13], (1, d_model)),
        ln2=jnp.concatenate([ones, zeros], axis=0),
        # head LinearBlock (activation=None)
        wh=rnd(ks[14], (d_model, num_classes)),
        bh=rnd(ks[15], (1, num_classes)),
    )
    return params


if __name__ == "__main__":
    key = jax.random.PRNGKey(0)
    kp, kx = jax.random.split(key)

    num_classes = 5
    params = init_params(kp, keypoints_len=7, dim_no=3, num_classes=num_classes)

    B, T, K, D = 2, 8, 7, 3
    x = jax.random.normal(kx, (B, T, K, D), dtype=jnp.float32)
    x = x.at[1, -2:].set(0.0)        # last two frames of sample 1 are padding frames

    out = transformer_model_forward(x, params)
    out = jax.block_until_ready(out)
    assert out.shape == (B, num_classes) and out.dtype == jnp.float32
    assert bool(jnp.all(jnp.isfinite(out)))
    print("KERNEL_OK")
</pallas_src>

<mosaic_0001>
module attributes {stable_mosaic.version = 11 : i64} {
  func.func @fused_transformer_kernel(%arg0: i32, %arg1: memref<64x21xf32, #tpu.memory_space<vmem>>, %arg2: memref<8x128xf32, #tpu.memory_space<vmem>>, %arg3: memref<21x128xf32, #tpu.memory_space<vmem>>, %arg4: memref<1x128xf32, #tpu.memory_space<vmem>>, %arg5: memref<4x128xf32, #tpu.memory_space<vmem>>, %arg6: memref<128x384xf32, #tpu.memory_space<vmem>>, %arg7: memref<1x384xf32, #tpu.memory_space<vmem>>, %arg8: memref<128x128xf32, #tpu.memory_space<vmem>>, %arg9: memref<1x128xf32, #tpu.memory_space<vmem>>, %arg10: memref<2x128xf32, #tpu.memory_space<vmem>>, %arg11: memref<128x128xf32, #tpu.memory_space<vmem>>, %arg12: memref<1x128xf32, #tpu.memory_space<vmem>>, %arg13: memref<128x128xf32, #tpu.memory_space<vmem>>, %arg14: memref<1x128xf32, #tpu.memory_space<vmem>>, %arg15: memref<2x128xf32, #tpu.memory_space<vmem>>, %arg16: memref<128x128xf32, #tpu.memory_space<vmem>>, %arg17: memref<1x128xf32, #tpu.memory_space<vmem>>, %arg18: memref<8x128xf32, #tpu.memory_space<vmem>>, %arg19: memref<8x128xf32, #tpu.memory_space<vmem>>, %arg20: memref<8x1xf32, #tpu.memory_space<vmem>>) attributes {dimension_semantics = [#tpu.dimension_semantics<arbitrary>], iteration_bounds = array<i64: 1>, scalar_prefetch = 0 : i64, scratch_operands = 2 : i64, tpu.core_type = #tpu.core_type<tc>, window_params = [{transform_indices = @transform_0, window_bounds = array<i64: 64, 21>}, {transform_indices = @transform_1, window_bounds = array<i64: 8, 128>}, {pipeline_mode = #tpu.pipeline_mode<synchronous>, transform_indices = @transform_2, window_bounds = array<i64: 21, 128>}, {pipeline_mode = #tpu.pipeline_mode<synchronous>, transform_indices = @transform_3, window_bounds = array<i64: 1, 128>}, {pipeline_mode = #tpu.pipeline_mode<synchronous>, transform_indices = @transform_4, window_bounds = array<i64: 4, 128>}, {pipeline_mode = #tpu.pipeline_mode<synchronous>, transform_indices = @transform_5, window_bounds = array<i64: 128, 384>}, {pipeline_mode = #tpu.pipeline_mode<synchronous>, transform_indices = @transform_6, window_bounds = array<i64: 1, 384>}, {pipeline_mode = #tpu.pipeline_mode<synchronous>, transform_indices = @transform_7, window_bounds = array<i64: 128, 128>}, {pipeline_mode = #tpu.pipeline_mode<synchronous>, transform_indices = @transform_8, window_bounds = array<i64: 1, 128>}, {pipeline_mode = #tpu.pipeline_mode<synchronous>, transform_indices = @transform_9, window_bounds = array<i64: 2, 128>}, {pipeline_mode = #tpu.pipeline_mode<synchronous>, transform_indices = @transform_10, window_bounds = array<i64: 128, 128>}, {pipeline_mode = #tpu.pipeline_mode<synchronous>, transform_indices = @transform_11, window_bounds = array<i64: 1, 128>}, {pipeline_mode = #tpu.pipeline_mode<synchronous>, transform_indices = @transform_12, window_bounds = array<i64: 128, 128>}, {pipeline_mode = #tpu.pipeline_mode<synchronous>, transform_indices = @transform_13, window_bounds = array<i64: 1, 128>}, {pipeline_mode = #tpu.pipeline_mode<synchronous>, transform_indices = @transform_14, window_bounds = array<i64: 2, 128>}, {pipeline_mode = #tpu.pipeline_mode<synchronous>, transform_indices = @transform_15, window_bounds = array<i64: 128, 128>}, {pipeline_mode = #tpu.pipeline_mode<synchronous>, transform_indices = @transform_16, window_bounds = array<i64: 1, 128>}, {pipeline_mode = #tpu.pipeline_mode<synchronous>, transform_indices = @transform_17, window_bounds = array<i64: 8, 128>}]} {
    %c0_i32 = arith.constant 0 : i32
    %0 = arith.cmpi eq, %arg0, %c0_i32 : i32
    %1 = arith.extui %0 : i1 to i32
    %c0_i32_0 = arith.constant 0 : i32
    %2 = arith.cmpi ne, %1, %c0_i32_0 : i32
    scf.if %2 {
      %cst_97 = arith.constant 0.000000e+00 : f32
      %264 = vector.broadcast %cst_97 : f32 to vector<8x128xf32>
      %c0_98 = arith.constant 0 : index
      %c0_99 = arith.constant 0 : index
      %265 = vector.load %arg19[%c0_98, %c0_99] : memref<8x128xf32, #tpu.memory_space<vmem>>, vector<8x128xf32>
      tpu.vector_store %arg19[%c0_98, %c0_99], %264 {strides = array<i32>} : memref<8x128xf32, #tpu.memory_space<vmem>>, vector<8x128xf32>,
      %cst_100 = arith.constant 0.000000e+00 : f32
      %266 = vector.broadcast %cst_100 : f32 to vector<8x1xf32>
      %c0_101 = arith.constant 0 : index
      %c0_102 = arith.constant 0 : index
      %267 = vector.load %arg20[%c0_101, %c0_102] : memref<8x1xf32, #tpu.memory_space<vmem>>, vector<8x1xf32>
      tpu.vector_store %arg20[%c0_101, %c0_102], %266 {strides = array<i32>} : memref<8x1xf32, #tpu.memory_space<vmem>>, vector<8x1xf32>,
    } else {
    }
    %c0 = arith.constant 0 : index
    %c0_1 = arith.constant 0 : index
    %3 = vector.load %arg1[%c0, %c0_1] : memref<64x21xf32, #tpu.memory_space<vmem>>, vector<64x21xf32>
    %4 = math.absf %3 : vector<64x21xf32>
    %cst = arith.constant dense<0xFF800000> : vector<64xf32>
    %5 = vector.multi_reduction <maximumf>, %4, %cst [1] : vector<64x21xf32> to vector<64xf32>
    %6 = vector.shape_cast %5 : vector<64xf32> to vector<64x1xf32>
    %cst_2 = arith.constant 9.99999993E-9 : f32
    %7 = vector.broadcast %cst_2 : f32 to vector<64x1xf32>
    %8 = arith.cmpf ogt, %6, %7 : vector<64x1xf32>
    %9 = arith.extui %8 : vector<64x1xi1> to vector<64x1xi32>
    %10 = arith.sitofp %9 : vector<64x1xi32> to vector<64x1xf32>
    %c0_3 = arith.constant 0 : index
    %c0_4 = arith.constant 0 : index
    %11 = vector.load %arg5[%c0_3, %c0_4] : memref<4x128xf32, #tpu.memory_space<vmem>>, vector<1x128xf32>
    %c1 = arith.constant 1 : index
    %c0_5 = arith.constant 0 : index
    %12 = vector.load %arg5[%c1, %c0_5] : memref<4x128xf32, #tpu.memory_space<vmem>>, vector<1x128xf32>
    %c2 = arith.constant 2 : index
    %c0_6 = arith.constant 0 : index
    %13 = vector.load %arg5[%c2, %c0_6] : memref<4x128xf32, #tpu.memory_space<vmem>>, vector<1x128xf32>
    %c3 = arith.constant 3 : index
    %c0_7 = arith.constant 0 : index
    %14 = vector.load %arg5[%c3, %c0_7] : memref<4x128xf32, #tpu.memory_space<vmem>>, vector<1x128xf32>
    %cst_8 = arith.constant 9.99999974E-6 : f32
    %15 = vector.broadcast %cst_8 : f32 to vector<1x128xf32>
    %16 = arith.addf %14, %15 : vector<1x128xf32>
    %17 = math.rsqrt %16 : vector<1x128xf32>
    %18 = arith.mulf %11, %17 : vector<1x128xf32>
    %19 = arith.mulf %13, %18 : vector<1x128xf32>
    %20 = arith.subf %12, %19 : vector<1x128xf32>
    %21 = arith.truncf %3 : vector<64x21xf32> to vector<64x21xbf16>
    %c0_9 = arith.constant 0 : index
    %c0_10 = arith.constant 0 : index
    %22 = vector.load %arg3[%c0_9, %c0_10] : memref<21x128xf32, #tpu.memory_space<vmem>>, vector<21x128xf32>
    %23 = arith.truncf %22 : vector<21x128xf32> to vector<21x128xbf16>
    %cst_11 = arith.constant dense<0.000000e+00> : vector<64x128xf32>
    %24 = tpu.matmul %21, %23, %cst_11 {dimension_numbers = #tpu.dot_dimension_numbers<[1], [0], [0], [1], [0, 0, 1, 1], [], []>} : vector<64x21xbf16>, vector<21x128xbf16>, vector<64x128xf32> -> vector<64x128xf32>
    %c0_12 = arith.constant 0 : index
    %c0_13 = arith.constant 0 : index
    %25 = vector.load %arg4[%c0_12, %c0_13] : memref<1x128xf32, #tpu.memory_space<vmem>>, vector<1x128xf32>
    %26 = vector.broadcast %25 : vector<1x128xf32> to vector<64x128xf32>
    %27 = arith.addf %24, %26 : vector<64x128xf32>
    %28 = vector.broadcast %18 : vector<1x128xf32> to vector<64x128xf32>
    %29 = arith.mulf %27, %28 : vector<64x128xf32>
    %30 = vector.broadcast %20 : vector<1x128xf32> to vector<64x128xf32>
    %31 = arith.addf %29, %30 : vector<64x128xf32>
    %cst_14 = arith.constant 0.000000e+00 : f32
    %32 = vector.broadcast %cst_14 : f32 to vector<64x128xf32>
    %33 = arith.maximumf %31, %32 : vector<64x128xf32>
    %34 = vector.shape_cast %33 : vector<64x128xf32> to vector<8x8x128xf32>
    %c0_15 = arith.constant 0 : index
    %c0_16 = arith.constant 0 : index
    %35 = vector.load %arg2[%c0_15, %c0_16] : memref<8x128xf32, #tpu.memory_space<vmem>>, vector<8x128xf32>
    %36 = vector.shape_cast %35 : vector<8x128xf32> to vector<8x1x128xf32>
    %37 = vector.broadcast %36 : vector<8x1x128xf32> to vector<8x8x128xf32>
    %38 = arith.addf %34, %37 : vector<8x8x128xf32>
    %39 = vector.shape_cast %38 : vector<8x8x128xf32> to vector<64x128xf32>
    %40 = arith.truncf %39 : vector<64x128xf32> to vector<64x128xbf16>
    %c0_17 = arith.constant 0 : index
    %c0_18 = arith.constant 0 : index
    %41 = vector.load %arg6[%c0_17, %c0_18] : memref<128x384xf32, #tpu.memory_space<vmem>>, vector<128x384xf32>
    %42 = arith.truncf %41 : vector<128x384xf32> to vector<128x384xbf16>
    %cst_19 = arith.constant dense<0.000000e+00> : vector<64x384xf32>
    %43 = tpu.matmul %40, %42, %cst_19 {dimension_numbers = #tpu.dot_dimension_numbers<[1], [0], [0], [1], [0, 0, 1, 1], [], []>} : vector<64x128xbf16>, vector<128x384xbf16>, vector<64x384xf32> -> vector<64x384xf32>
    %c0_20 = arith.constant 0 : index
    %c0_21 = arith.constant 0 : index
    %44 = vector.load %arg7[%c0_20, %c0_21] : memref<1x384xf32, #tpu.memory_space<vmem>>, vector<1x384xf32>
    %45 = vector.broadcast %44 : vector<1x384xf32> to vector<64x384xf32>
    %46 = arith.addf %43, %45 : vector<64x384xf32>
    %47 = vector.extract_strided_slice %46 {offsets = [0, 0], sizes = [64, 128], strides = [1, 1]} : vector<64x384xf32> to vector<64x128xf32>
    %48 = vector.shape_cast %47 : vector<64x128xf32> to vector<8x8x128xf32>
    %49 = vector.extract_strided_slice %46 {offsets = [0, 128], sizes = [64, 128], strides = [1, 1]} : vector<64x384xf32> to vector<64x128xf32>
    %50 = vector.shape_cast %49 : vector<64x128xf32> to vector<8x8x128xf32>
    %51 = vector.extract_strided_slice %46 {offsets = [0, 256], sizes = [64, 128], strides = [1, 1]} : vector<64x384xf32> to vector<64x128xf32>
    %52 = vector.shape_cast %51 : vector<64x128xf32> to vector<8x8x128xf32>
    %53 = tpu.iota {dimensions = array<i32: 1>} : vector<1x8xi32>
    %c2_i32 = arith.constant 2 : i32
    %54 = vector.broadcast %c2_i32 : i32 to vector<1x8xi32>
    %55 = arith.cmpi slt, %53, %54 : vector<1x8xi32>
    %cst_22 = arith.constant 0.000000e+00 : f32
    %cst_23 = arith.constant -1.000000e+30 : f32
    %56 = vector.broadcast %cst_22 : f32 to vector<1x8xf32>
    %57 = vector.broadcast %cst_23 : f32 to vector<1x8xf32>
    %58 = arith.select %55, %56, %57 : vector<1x8xi1>, vector<1x8xf32>
    %cst_24 = arith.constant 0.000000e+00 : f32
    %59 = vector.broadcast %cst_24 : f32 to vector<64x128xf32>
    %60 = vector.extract_strided_slice %48 {offsets = [0, 0, 0], sizes = [8, 8, 32], strides = [1, 1, 1]} : vector<8x8x128xf32> to vector<8x8x32xf32>
    %61 = arith.truncf %60 : vector<8x8x32xf32> to vector<8x8x32xbf16>
    %62 = vector.extract_strided_slice %50 {offsets = [0, 0, 0], sizes = [8, 8, 32], strides = [1, 1, 1]} : vector<8x8x128xf32> to vector<8x8x32xf32>
    %63 = arith.truncf %62 : vector<8x8x32xf32> to vector<8x8x32xbf16>
    %64 = vector.extract_strided_slice %52 {offsets = [0, 0, 0], sizes = [8, 8, 32], strides = [1, 1, 1]} : vector<8x8x128xf32> to vector<8x8x32xf32>
    %65 = arith.truncf %64 : vector<8x8x32xf32> to vector<8x8x32xbf16>
    "tpu.trace_start"() <{level = 10 : i32, message = "tbd,tcd->tbc"}> : () -> ()
    %cst_25 = arith.constant dense<0.000000e+00> : vector<8x8x8xf32>
    %66 = tpu.matmul %61, %63, %cst_25 {dimension_numbers = #tpu.dot_dimension_numbers<[2], [2], [1], [1], [0, 0, 0, 1, 1, 1], [0], [0]>} : vector<8x8x32xbf16>, vector<8x8x32xbf16>, vector<8x8x8xf32> -> vector<8x8x8xf32>
    "tpu.trace_stop"() : () -> ()
    %cst_26 = arith.constant 0.176776692 : f32
    %67 = vector.broadcast %cst_26 : f32 to vector<8x8x8xf32>
    %68 = arith.mulf %66, %67 : vector<8x8x8xf32>
    %69 = vector.shape_cast %58 : vector<1x8xf32> to vector<1x1x8xf32>
    %70 = vector.broadcast %69 : vector<1x1x8xf32> to vector<8x8x8xf32>
    %71 = arith.addf %68, %70 : vector<8x8x8xf32>
    %cst_27 = arith.constant dense<0xFF800000> : vector<8x8xf32>
    %72 = vector.multi_reduction <maximumf>, %71, %cst_27 [2] : vector<8x8x8xf32> to vector<8x8xf32>
    %73 = vector.shape_cast %72 : vector<8x8xf32> to vector<8x8x1xf32>
    %74 = vector.broadcast %73 : vector<8x8x1xf32> to vector<8x8x8xf32>
    %75 = arith.subf %71, %74 : vector<8x8x8xf32>
    %76 = math.exp %75 : vector<8x8x8xf32>
    %cst_28 = arith.constant dense<0.000000e+00> : vector<8x8xf32>
    %77 = vector.multi_reduction <add>, %76, %cst_28 [2] : vector<8x8x8xf32> to vector<8x8xf32>
    %78 = vector.shape_cast %77 : vector<8x8xf32> to vector<8x8x1xf32>
    %79 = tpu.reciprocal %78 {approx = true} : vector<8x8x1xf32> -> vector<8x8x1xf32>
    %80 = vector.broadcast %79 : vector<8x8x1xf32> to vector<8x8x8xf32>
    %81 = arith.mulf %76, %80 : vector<8x8x8xf32>
    %82 = arith.truncf %81 : vector<8x8x8xf32> to vector<8x8x8xbf16>
    "tpu.trace_start"() <{level = 10 : i32, message = "tbc,tcd->tbd"}> : () -> ()
    %cst_29 = arith.constant dense<0.000000e+00> : vector<8x8x32xf32>
    %83 = tpu.matmul %82, %65, %cst_29 {dimension_numbers = #tpu.dot_dimension_numbers<[2], [1], [1], [2], [0, 0, 0, 1, 1, 2], [0], [0]>} : vector<8x8x8xbf16>, vector<8x8x32xbf16>, vector<8x8x32xf32> -> vector<8x8x32xf32>
    "tpu.trace_stop"() : () -> ()
    %84 = vector.shape_cast %83 : vector<8x8x32xf32> to vector<64x32xf32>
    %85 = arith.truncf %84 : vector<64x32xf32> to vector<64x32xbf16>
    %c0_30 = arith.constant 0 : index
    %c0_31 = arith.constant 0 : index
    %86 = vector.load %arg8[%c0_30, %c0_31] : memref<128x128xf32, #tpu.memory_space<vmem>>, vector<32x128xf32>
    %87 = arith.truncf %86 : vector<32x128xf32> to vector<32x128xbf16>
    %cst_32 = arith.constant dense<0.000000e+00> : vector<64x128xf32>
    %88 = tpu.matmul %85, %87, %cst_32 {dimension_numbers = #tpu.dot_dimension_numbers<[1], [0], [0], [1], [0, 0, 1, 1], [], []>} : vector<64x32xbf16>, vector<32x128xbf16>, vector<64x128xf32> -> vector<64x128xf32>
    %89 = arith.addf %59, %88 : vector<64x128xf32>
    %90 = vector.extract_strided_slice %48 {offsets = [0, 0, 32], sizes = [8, 8, 32], strides = [1, 1, 1]} : vector<8x8x128xf32> to vector<8x8x32xf32>
    %91 = arith.truncf %90 : vector<8x8x32xf32> to vector<8x8x32xbf16>
    %92 = vector.extract_strided_slice %50 {offsets = [0, 0, 32], sizes = [8, 8, 32], strides = [1, 1, 1]} : vector<8x8x128xf32> to vector<8x8x32xf32>
    %93 = arith.truncf %92 : vector<8x8x32xf32> to vector<8x8x32xbf16>
    %94 = vector.extract_strided_slice %52 {offsets = [0, 0, 32], sizes = [8, 8, 32], strides = [1, 1, 1]} : vector<8x8x128xf32> to vector<8x8x32xf32>
    %95 = arith.truncf %94 : vector<8x8x32xf32> to vector<8x8x32xbf16>
    "tpu.trace_start"() <{level = 10 : i32, message = "tbd,tcd->tbc"}> : () -> ()
    %cst_33 = arith.constant dense<0.000000e+00> : vector<8x8x8xf32>
    %96 = tpu.matmul %91, %93, %cst_33 {dimension_numbers = #tpu.dot_dimension_numbers<[2], [2], [1], [1], [0, 0, 0, 1, 1, 1], [0], [0]>} : vector<8x8x32xbf16>, vector<8x8x32xbf16>, vector<8x8x8xf32> -> vector<8x8x8xf32>
    "tpu.trace_stop"() : () -> ()
    %cst_34 = arith.constant 0.176776692 : f32
    %97 = vector.broadcast %cst_34 : f32 to vector<8x8x8xf32>
    %98 = arith.mulf %96, %97 : vector<8x8x8xf32>
    %99 = vector.shape_cast %58 : vector<1x8xf32> to vector<1x1x8xf32>
    %100 = vector.broadcast %99 : vector<1x1x8xf32> to vector<8x8x8xf32>
    %101 = arith.addf %98, %100 : vector<8x8x8xf32>
    %cst_35 = arith.constant dense<0xFF800000> : vector<8x8xf32>
    %102 = vector.multi_reduction <maximumf>, %101, %cst_35 [2] : vector<8x8x8xf32> to vector<8x8xf32>
    %103 = vector.shape_cast %102 : vector<8x8xf32> to vector<8x8x1xf32>
    %104 = vector.broadcast %103 : vector<8x8x1xf32> to vector<8x8x8xf32>
    %105 = arith.subf %101, %104 : vector<8x8x8xf32>
    %106 = math.exp %105 : vector<8x8x8xf32>
    %cst_36 = arith.constant dense<0.000000e+00> : vector<8x8xf32>
    %107 = vector.multi_reduction <add>, %106, %cst_36 [2] : vector<8x8x8xf32> to vector<8x8xf32>
    %108 = vector.shape_cast %107 : vector<8x8xf32> to vector<8x8x1xf32>
    %109 = tpu.reciprocal %108 {approx = true} : vector<8x8x1xf32> -> vector<8x8x1xf32>
    %110 = vector.broadcast %109 : vector<8x8x1xf32> to vector<8x8x8xf32>
    %111 = arith.mulf %106, %110 : vector<8x8x8xf32>
    %112 = arith.truncf %111 : vector<8x8x8xf32> to vector<8x8x8xbf16>
    "tpu.trace_start"() <{level = 10 : i32, message = "tbc,tcd->tbd"}> : () -> ()
    %cst_37 = arith.constant dense<0.000000e+00> : vector<8x8x32xf32>
    %113 = tpu.matmul %112, %95, %cst_37 {dimension_numbers = #tpu.dot_dimension_numbers<[2], [1], [1], [2], [0, 0, 0, 1, 1, 2], [0], [0]>} : vector<8x8x8xbf16>, vector<8x8x32xbf16>, vector<8x8x32xf32> -> vector<8x8x32xf32>
    "tpu.trace_stop"() : () -> ()
    %114 = vector.shape_cast %113 : vector<8x8x32xf32> to vector<64x32xf32>
    %115 = arith.truncf %114 : vector<64x32xf32> to vector<64x32xbf16>
    %c32 = arith.constant 32 : index
    %c0_38 = arith.constant 0 : index
    %116 = vector.load %arg8[%c32, %c0_38] : memref<128x128xf32, #tpu.memory_space<vmem>>, vector<32x128xf32>
    %117 = arith.truncf %116 : vector<32x128xf32> to vector<32x128xbf16>
    %cst_39 = arith.constant dense<0.000000e+00> : vector<64x128xf32>
    %118 = tpu.matmul %115, %117, %cst_39 {dimension_numbers = #tpu.dot_dimension_numbers<[1], [0], [0], [1], [0, 0, 1, 1], [], []>} : vector<64x32xbf16>, vector<32x128xbf16>, vector<64x128xf32> -> vector<64x128xf32>
    %119 = arith.addf %89, %118 : vector<64x128xf32>
    %120 = vector.extract_strided_slice %48 {offsets = [0, 0, 64], sizes = [8, 8, 32], strides = [1, 1, 1]} : vector<8x8x128xf32> to vector<8x8x32xf32>
    %121 = arith.truncf %120 : vector<8x8x32xf32> to vector<8x8x32xbf16>
    %122 = vector.extract_strided_slice %50 {offsets = [0, 0, 64], sizes = [8, 8, 32], strides = [1, 1, 1]} : vector<8x8x128xf32> to vector<8x8x32xf32>
    %123 = arith.truncf %122 : vector<8x8x32xf32> to vector<8x8x32xbf16>
    %124 = vector.extract_strided_slice %52 {offsets = [0, 0, 64], sizes = [8, 8, 32], strides = [1, 1, 1]} : vector<8x8x128xf32> to vector<8x8x32xf32>
    %125 = arith.truncf %124 : vector<8x8x32xf32> to vector<8x8x32xbf16>
    "tpu.trace_start"() <{level = 10 : i32, message = "tbd,tcd->tbc"}> : () -> ()
    %cst_40 = arith.constant dense<0.000000e+00> : vector<8x8x8xf32>
    %126 = tpu.matmul %121, %123, %cst_40 {dimension_numbers = #tpu.dot_dimension_numbers<[2], [2], [1], [1], [0, 0, 0, 1, 1, 1], [0], [0]>} : vector<8x8x32xbf16>, vector<8x8x32xbf16>, vector<8x8x8xf32> -> vector<8x8x8xf32>
    "tpu.trace_stop"() : () -> ()
    %cst_41 = arith.constant 0.176776692 : f32
    %127 = vector.broadcast %cst_41 : f32 to vector<8x8x8xf32>
    %128 = arith.mulf %126, %127 : vector<8x8x8xf32>
    %129 = vector.shape_cast %58 : vector<1x8xf32> to vector<1x1x8xf32>
    %130 = vector.broadcast %129 : vector<1x1x8xf32> to vector<8x8x8xf32>
    %131 = arith.addf %128, %130 : vector<8x8x8xf32>
    %cst_42 = arith.constant dense<0xFF800000> : vector<8x8xf32>
    %132 = vector.multi_reduction <maximumf>, %131, %cst_42 [2] : vector<8x8x8xf32> to vector<8x8xf32>
    %133 = vector.shape_cast %132 : vector<8x8xf32> to vector<8x8x1xf32>
    %134 = vector.broadcast %133 : vector<8x8x1xf32> to vector<8x8x8xf32>
    %135 = arith.subf %131, %134 : vector<8x8x8xf32>
    %136 = math.exp %135 : vector<8x8x8xf32>
    %cst_43 = arith.constant dense<0.000000e+00> : vector<8x8xf32>
    %137 = vector.multi_reduction <add>, %136, %cst_43 [2] : vector<8x8x8xf32> to vector<8x8xf32>
    %138 = vector.shape_cast %137 : vector<8x8xf32> to vector<8x8x1xf32>
    %139 = tpu.reciprocal %138 {approx = true} : vector<8x8x1xf32> -> vector<8x8x1xf32>
    %140 = vector.broadcast %139 : vector<8x8x1xf32> to vector<8x8x8xf32>
    %141 = arith.mulf %136, %140 : vector<8x8x8xf32>
    %142 = arith.truncf %141 : vector<8x8x8xf32> to vector<8x8x8xbf16>
    "tpu.trace_start"() <{level = 10 : i32, message = "tbc,tcd->tbd"}> : () -> ()
    %cst_44 = arith.constant dense<0.000000e+00> : vector<8x8x32xf32>
    %143 = tpu.matmul %142, %125, %cst_44 {dimension_numbers = #tpu.dot_dimension_numbers<[2], [1], [1], [2], [0, 0, 0, 1, 1, 2], [0], [0]>} : vector<8x8x8xbf16>, vector<8x8x32xbf16>, vector<8x8x32xf32> -> vector<8x8x32xf32>
    "tpu.trace_stop"() : () -> ()
    %144 = vector.shape_cast %143 : vector<8x8x32xf32> to vector<64x32xf32>
    %145 = arith.truncf %144 : vector<64x32xf32> to vector<64x32xbf16>
    %c64 = arith.constant 64 : index
    %c0_45 = arith.constant 0 : index
    %146 = vector.load %arg8[%c64, %c0_45] : memref<128x128xf32, #tpu.memory_space<vmem>>, vector<32x128xf32>
    %147 = arith.truncf %146 : vector<32x128xf32> to vector<32x128xbf16>
    %cst_46 = arith.constant dense<0.000000e+00> : vector<64x128xf32>
    %148 = tpu.matmul %145, %147, %cst_46 {dimension_numbers = #tpu.dot_dimension_numbers<[1], [0], [0], [1], [0, 0, 1, 1], [], []>} : vector<64x32xbf16>, vector<32x128xbf16>, vector<64x128xf32> -> vector<64x128xf32>
    %149 = arith.addf %119, %148 : vector<64x128xf32>
    %150 = vector.extract_strided_slice %48 {offsets = [0, 0, 96], sizes = [8, 8, 32], strides = [1, 1, 1]} : vector<8x8x128xf32> to vector<8x8x32xf32>
    %151 = arith.truncf %150 : vector<8x8x32xf32> to vector<8x8x32xbf16>
    %152 = vector.extract_strided_slice %50 {offsets = [0, 0, 96], sizes = [8, 8, 32], strides = [1, 1, 1]} : vector<8x8x128xf32> to vector<8x8x32xf32>
    %153 = arith.truncf %152 : vector<8x8x32xf32> to vector<8x8x32xbf16>
    %154 = vector.extract_strided_slice %52 {offsets = [0, 0, 96], sizes = [8, 8, 32], strides = [1, 1, 1]} : vector<8x8x128xf32> to vector<8x8x32xf32>
    %155 = arith.truncf %154 : vector<8x8x32xf32> to vector<8x8x32xbf16>
    "tpu.trace_start"() <{level = 10 : i32, message = "tbd,tcd->tbc"}> : () -> ()
    %cst_47 = arith.constant dense<0.000000e+00> : vector<8x8x8xf32>
    %156 = tpu.matmul %151, %153, %cst_47 {dimension_numbers = #tpu.dot_dimension_numbers<[2], [2], [1], [1], [0, 0, 0, 1, 1, 1], [0], [0]>} : vector<8x8x32xbf16>, vector<8x8x32xbf16>, vector<8x8x8xf32> -> vector<8x8x8xf32>
    "tpu.trace_stop"() : () -> ()
    %cst_48 = arith.constant 0.176776692 : f32
    %157 = vector.broadcast %cst_48 : f32 to vector<8x8x8xf32>
    %158 = arith.mulf %156, %157 : vector<8x8x8xf32>
    %159 = vector.shape_cast %58 : vector<1x8xf32> to vector<1x1x8xf32>
    %160 = vector.broadcast %159 : vector<1x1x8xf32> to vector<8x8x8xf32>
    %161 = arith.addf %158, %160 : vector<8x8x8xf32>
    %cst_49 = arith.constant dense<0xFF800000> : vector<8x8xf32>
    %162 = vector.multi_reduction <maximumf>, %161, %cst_49 [2] : vector<8x8x8xf32> to vector<8x8xf32>
    %163 = vector.shape_cast %162 : vector<8x8xf32> to vector<8x8x1xf32>
    %164 = vector.broadcast %163 : vector<8x8x1xf32> to vector<8x8x8xf32>
    %165 = arith.subf %161, %164 : vector<8x8x8xf32>
    %166 = math.exp %165 : vector<8x8x8xf32>
    %cst_50 = arith.constant dense<0.000000e+00> : vector<8x8xf32>
    %167 = vector.multi_reduction <add>, %166, %cst_50 [2] : vector<8x8x8xf32> to vector<8x8xf32>
    %168 = vector.shape_cast %167 : vector<8x8xf32> to vector<8x8x1xf32>
    %169 = tpu.reciprocal %168 {approx = true} : vector<8x8x1xf32> -> vector<8x8x1xf32>
    %170 = vector.broadcast %169 : vector<8x8x1xf32> to vector<8x8x8xf32>
    %171 = arith.mulf %166, %170 : vector<8x8x8xf32>
    %172 = arith.truncf %171 : vector<8x8x8xf32> to vector<8x8x8xbf16>
    "tpu.trace_start"() <{level = 10 : i32, message = "tbc,tcd->tbd"}> : () -> ()
    %cst_51 = arith.constant dense<0.000000e+00> : vector<8x8x32xf32>
    %173 = tpu.matmul %172, %155, %cst_51 {dimension_numbers = #tpu.dot_dimension_numbers<[2], [1], [1], [2], [0, 0, 0, 1, 1, 2], [0], [0]>} : vector<8x8x8xbf16>, vector<8x8x32xbf16>, vector<8x8x32xf32> -> vector<8x8x32xf32>
    "tpu.trace_stop"() : () -> ()
    %174 = vector.shape_cast %173 : vector<8x8x32xf32> to vector<64x32xf32>
    %175 = arith.truncf %174 : vector<64x32xf32> to vector<64x32xbf16>
    %c96 = arith.constant 96 : index
    %c0_52 = arith.constant 0 : index
    %176 = vector.load %arg8[%c96, %c0_52] : memref<128x128xf32, #tpu.memory_space<vmem>>, vector<32x128xf32>
    %177 = arith.truncf %176 : vector<32x128xf32> to vector<32x128xbf16>
    %cst_53 = arith.constant dense<0.000000e+00> : vector<64x128xf32>
    %178 = tpu.matmul %175, %177, %cst_53 {dimension_numbers = #tpu.dot_dimension_numbers<[1], [0], [0], [1], [0, 0, 1, 1], [], []>} : vector<64x32xbf16>, vector<32x128xbf16>, vector<64x128xf32> -> vector<64x128xf32>
    %179 = arith.addf %149, %178 : vector<64x128xf32>
    %c0_54 = arith.constant 0 : index
    %c0_55 = arith.constant 0 : index
    %180 = vector.load %arg9[%c0_54, %c0_55] : memref<1x128xf32, #tpu.memory_space<vmem>>, vector<1x128xf32>
    %181 = vector.broadcast %180 : vector<1x128xf32> to vector<64x128xf32>
    %182 = arith.addf %179, %181 : vector<64x128xf32>
    %183 = arith.addf %39, %182 : vector<64x128xf32>
    %c0_56 = arith.constant 0 : index
    %c0_57 = arith.constant 0 : index
    %184 = vector.load %arg10[%c0_56, %c0_57] : memref<2x128xf32, #tpu.memory_space<vmem>>, vector<1x128xf32>
    %c1_58 = arith.constant 1 : index
    %c0_59 = arith.constant 0 : index
    %185 = vector.load %arg10[%c1_58, %c0_59] : memref<2x128xf32, #tpu.memory_space<vmem>>, vector<1x128xf32>
    %cst_60 = arith.constant dense<0.000000e+00> : vector<64xf32>
    %186 = vector.multi_reduction <add>, %183, %cst_60 [1] : vector<64x128xf32> to vector<64xf32>
    %187 = vector.shape_cast %186 : vector<64xf32> to vector<64x1xf32>
    %cst_61 = arith.constant 1.280000e+02 : f32
    %188 = vector.broadcast %cst_61 : f32 to vector<64x1xf32>
    %189 = arith.divf %187, %188 : vector<64x1xf32>
    %190 = vector.broadcast %189 : vector<64x1xf32> to vector<64x128xf32>
    %191 = arith.subf %183, %190 : vector<64x128xf32>
    %192 = arith.mulf %191, %191 : vector<64x128xf32>
    %cst_62 = arith.constant dense<0.000000e+00> : vector<64xf32>
    %193 = vector.multi_reduction <add>, %192, %cst_62 [1] : vector<64x128xf32> to vector<64xf32>
    %194 = vector.shape_cast %193 : vector<64xf32> to vector<64x1xf32>
    %cst_63 = arith.constant 1.280000e+02 : f32
    %195 = vector.broadcast %cst_63 : f32 to vector<64x1xf32>
    %196 = arith.divf %194, %195 : vector<64x1xf32>
    %197 = vector.broadcast %189 : vector<64x1xf32> to vector<64x128xf32>
    %198 = arith.subf %183, %197 : vector<64x128xf32>
    %cst_64 = arith.constant 9.99999974E-6 : f32
    %199 = vector.broadcast %cst_64 : f32 to vector<64x1xf32>
    %200 = arith.addf %196, %199 : vector<64x1xf32>
    %201 = math.rsqrt %200 : vector<64x1xf32>
    %202 = vector.broadcast %201 : vector<64x1xf32> to vector<64x128xf32>
    %203 = arith.mulf %198, %202 : vector<64x128xf32>
    %204 = vector.broadcast %184 : vector<1x128xf32> to vector<64x128xf32>
    %205 = arith.mulf %203, %204 : vector<64x128xf32>
    %206 = vector.broadcast %185 : vector<1x128xf32> to vector<64x128xf32>
    %207 = arith.addf %205, %206 : vector<64x128xf32>
    %208 = arith.truncf %207 : vector<64x128xf32> to vector<64x128xbf16>
    %c0_65 = arith.constant 0 : index
    %c0_66 = arith.constant 0 : index
    %209 = vector.load %arg11[%c0_65, %c0_66] : memref<128x128xf32, #tpu.memory_space<vmem>>, vector<128x128xf32>
    %210 = arith.truncf %209 : vector<128x128xf32> to vector<128x128xbf16>
    %cst_67 = arith.constant dense<0.000000e+00> : vector<64x128xf32>
    %211 = tpu.matmul %208, %210, %cst_67 {dimension_numbers = #tpu.dot_dimension_numbers<[1], [0], [0], [1], [0, 0, 1, 1], [], []>} : vector<64x128xbf16>, vector<128x128xbf16>, vector<64x128xf32> -> vector<64x128xf32>
    %c0_68 = arith.constant 0 : index
    %c0_69 = arith.constant 0 : index
    %212 = vector.load %arg12[%c0_68, %c0_69] : memref<1x128xf32, #tpu.memory_space<vmem>>, vector<1x128xf32>
    %213 = vector.broadcast %212 : vector<1x128xf32> to vector<64x128xf32>
    %214 = arith.addf %211, %213 : vector<64x128xf32>
    %cst_70 = arith.constant 0.000000e+00 : f32
    %215 = vector.broadcast %cst_70 : f32 to vector<64x128xf32>
    %216 = arith.maximumf %214, %215 : vector<64x128xf32>
    %217 = arith.truncf %216 : vector<64x128xf32> to vector<64x128xbf16>
    %c0_71 = arith.constant 0 : index
    %c0_72 = arith.constant 0 : index
    %218 = vector.load %arg13[%c0_71, %c0_72] : memref<128x128xf32, #tpu.memory_space<vmem>>, vector<128x128xf32>
    %219 = arith.truncf %218 : vector<128x128xf32> to vector<128x128xbf16>
    %cst_73 = arith.constant dense<0.000000e+00> : vector<64x128xf32>
    %220 = tpu.matmul %217, %219, %cst_73 {dimension_numbers = #tpu.dot_dimension_numbers<[1], [0], [0], [1], [0, 0, 1, 1], [], []>} : vector<64x128xbf16>, vector<128x128xbf16>, vector<64x128xf32> -> vector<64x128xf32>
    %c0_74 = arith.constant 0 : index
    %c0_75 = arith.constant 0 : index
    %221 = vector.load %arg14[%c0_74, %c0_75] : memref<1x128xf32, #tpu.memory_space<vmem>>, vector<1x128xf32>
    %222 = vector.broadcast %221 : vector<1x128xf32> to vector<64x128xf32>
    %223 = arith.addf %220, %222 : vector<64x128xf32>
    %224 = arith.addf %207, %223 : vector<64x128xf32>
    %c0_76 = arith.constant 0 : index
    %c0_77 = arith.constant 0 : index
    %225 = vector.load %arg15[%c0_76, %c0_77] : memref<2x128xf32, #tpu.memory_space<vmem>>, vector<1x128xf32>
    %c1_78 = arith.constant 1 : index
    %c0_79 = arith.constant 0 : index
    %226 = vector.load %arg15[%c1_78, %c0_79] : memref<2x128xf32, #tpu.memory_space<vmem>>, vector<1x128xf32>
    %cst_80 = arith.constant dense<0.000000e+00> : vector<64xf32>
    %227 = vector.multi_reduction <add>, %224, %cst_80 [1] : vector<64x128xf32> to vector<64xf32>
    %228 = vector.shape_cast %227 : vector<64xf32> to vector<64x1xf32>
    %cst_81 = arith.constant 1.280000e+02 : f32
    %229 = vector.broadcast %cst_81 : f32 to vector<64x1xf32>
    %230 = arith.divf %228, %229 : vector<64x1xf32>
    %231 = vector.broadcast %230 : vector<64x1xf32> to vector<64x128xf32>
    %232 = arith.subf %224, %231 : vector<64x128xf32>
    %233 = arith.mulf %232, %232 : vector<64x128xf32>
    %cst_82 = arith.constant dense<0.000000e+00> : vector<64xf32>
    %234 = vector.multi_reduction <add>, %233, %cst_82 [1] : vector<64x128xf32> to vector<64xf32>
    %235 = vector.shape_cast %234 : vector<64xf32> to vector<64x1xf32>
    %cst_83 = arith.constant 1.280000e+02 : f32
    %236 = vector.broadcast %cst_83 : f32 to vector<64x1xf32>
    %237 = arith.divf %235, %236 : vector<64x1xf32>
    %238 = vector.broadcast %230 : vector<64x1xf32> to vector<64x128xf32>
    %239 = arith.subf %224, %238 : vector<64x128xf32>
    %cst_84 = arith.constant 9.99999974E-6 : f32
    %240 = vector.broadcast %cst_84 : f32 to vector<64x1xf32>
    %241 = arith.addf %237, %240 : vector<64x1xf32>
    %242 = math.rsqrt %241 : vector<64x1xf32>
    %243 = vector.broadcast %242 : vector<64x1xf32> to vector<64x128xf32>
    %244 = arith.mulf %239, %243 : vector<64x128xf32>
    %245 = vector.broadcast %225 : vector<1x128xf32> to vector<64x128xf32>
    %246 = arith.mulf %244, %245 : vector<64x128xf32>
    %247 = vector.broadcast %226 : vector<1x128xf32> to vector<64x128xf32>
    %248 = arith.addf %246, %247 : vector<64x128xf32>
    %249 = vector.shape_cast %10 : vector<64x1xf32> to vector<8x8x1xf32>
    %c0_85 = arith.constant 0 : index
    %c0_86 = arith.constant 0 : index
    %250 = vector.load %arg19[%c0_85, %c0_86] : memref<8x128xf32, #tpu.memory_space<vmem>>, vector<8x128xf32>
    %251 = vector.shape_cast %248 : vector<64x128xf32> to vector<8x8x128xf32>
    %252 = vector.broadcast %249 : vector<8x8x1xf32> to vector<8x8x128xf32>
    %253 = arith.mulf %251, %252 : vector<8x8x128xf32>
    %cst_87 = arith.constant dense<0.000000e+00> : vector<8x128xf32>
    %254 = vector.multi_reduction <add>, %253, %cst_87 [0] : vector<8x8x128xf32> to vector<8x128xf32>
    %255 = arith.addf %250, %254 : vector<8x128xf32>
    %c0_88 = arith.constant 0 : index
    %c0_89 = arith.constant 0 : index
    %256 = vector.load %arg19[%c0_88, %c0_89] : memref<8x128xf32, #tpu.memory_space<vmem>>, vector<8x128xf32>
    tpu.vector_store %arg19[%c0_88, %c0_89], %255 {strides = array<i32>} : memref<8x128xf32, #tpu.memory_space<vmem>>, vector<8x128xf32>,
    %c0_90 = arith.constant 0 : index
    %c0_91 = arith.constant 0 : index
    %257 = vector.load %arg20[%c0_90, %c0_91] : memref<8x1xf32, #tpu.memory_space<vmem>>, vector<8x1xf32>
    %cst_92 = arith.constant dense<0.000000e+00> : vector<8x1xf32>
    %258 = vector.multi_reduction <add>, %249, %cst_92 [0] : vector<8x8x1xf32> to vector<8x1xf32>
    %259 = arith.addf %257, %258 : vector<8x1xf32>
    %c0_93 = arith.constant 0 : index
    %c0_94 = arith.constant 0 : index
    %260 = vector.load %arg20[%c0_93, %c0_94] : memref<8x1xf32, #tpu.memory_space<vmem>>, vector<8x1xf32>
    tpu.vector_store %arg20[%c0_93, %c0_94], %259 {strides = array<i32>} : memref<8x1xf32, #tpu.memory_space<vmem>>, vector<8x1xf32>,
    %c0_i32_95 = arith.constant 0 : i32
    %261 = arith.cmpi eq, %arg0, %c0_i32_95 : i32
    %262 = arith.extui %261 : i1 to i32
    %c0_i32_96 = arith.constant 0 : i32
    %263 = arith.cmpi ne, %262, %c0_i32_96 : i32
    scf.if %263 {
      %c0_97 = arith.constant 0 : index
      %c0_98 = arith.constant 0 : index
      %264 = vector.load %arg20[%c0_97, %c0_98] : memref<8x1xf32, #tpu.memory_space<vmem>>, vector<8x1xf32>
      %cst_99 = arith.constant 0.000000e+00 : f32
      %265 = vector.broadcast %cst_99 : f32 to vector<8x1xf32>
      %266 = arith.cmpf ogt, %264, %265 : vector<8x1xf32>
      %c0_100 = arith.constant 0 : index
      %c0_101 = arith.constant 0 : index
      %267 = vector.load %arg20[%c0_100, %c0_101] : memref<8x1xf32, #tpu.memory_space<vmem>>, vector<8x1xf32>
      %cst_102 = arith.constant 1.000000e+00 : f32
      %268 = vector.broadcast %cst_102 : f32 to vector<8x1xf32>
      %269 = arith.select %266, %267, %268 : vector<8x1xi1>, vector<8x1xf32>
      %c0_103 = arith.constant 0 : index
      %c0_104 = arith.constant 0 : index
      %270 = vector.load %arg19[%c0_103, %c0_104] : memref<8x128xf32, #tpu.memory_space<vmem>>, vector<8x128xf32>
      %271 = tpu.reciprocal %269 {approx = true} : vector<8x1xf32> -> vector<8x1xf32>
      %272 = vector.broadcast %271 : vector<8x1xf32> to vector<8x128xf32>
      %273 = arith.mulf %270, %272 : vector<8x128xf32>
      %274 = arith.truncf %273 : vector<8x128xf32> to vector<8x128xbf16>
      %c0_105 = arith.constant 0 : index
      %c0_106 = arith.constant 0 : index
      %275 = vector.load %arg16[%c0_105, %c0_106] : memref<128x128xf32, #tpu.memory_space<vmem>>, vector<128x128xf32>
      %276 = arith.truncf %275 : vector<128x128xf32> to vector<128x128xbf16>
      %cst_107 = arith.constant dense<0.000000e+00> : vector<8x128xf32>
      %277 = tpu.matmul %274, %276, %cst_107 {dimension_numbers = #tpu.dot_dimension_numbers<[1], [0], [0], [1], [0, 0, 1, 1], [], []>} : vector<8x128xbf16>, vector<128x128xbf16>, vector<8x128xf32> -> vector<8x128xf32>
      %c0_108 = arith.constant 0 : index
      %c0_109 = arith.constant 0 : index
      %278 = vector.load %arg17[%c0_108, %c0_109] : memref<1x128xf32, #tpu.memory_space<vmem>>, vector<1x128xf32>
      %279 = vector.broadcast %278 : vector<1x128xf32> to vector<8x128xf32>
      %280 = arith.addf %277, %279 : vector<8x128xf32>
      %c0_110 = arith.constant 0 : index
      %c0_111 = arith.constant 0 : index
      %281 = vector.load %arg18[%c0_110, %c0_111] : memref<8x128xf32, #tpu.memory_space<vmem>>, vector<8x128xf32>
      tpu.vector_store %arg18[%c0_110, %c0_111], %280 {strides = array<i32>} : memref<8x128xf32, #tpu.memory_space<vmem>>, vector<8x128xf32>,
    } else {
    }
    return
  }
  func.func @transform_0(%arg0: i32) -> (i32, i32) {
    %c0_i32 = arith.constant 0 : i32
    %c0_i32_0 = arith.constant 0 : i32
    return %arg0, %c0_i32 : i32, i32
  }
  func.func @transform_1(%arg0: i32) -> (i32, i32) {
    %c0_i32 = arith.constant 0 : i32
    %c0_i32_0 = arith.constant 0 : i32
    return %arg0, %c0_i32 : i32, i32
  }
  func.func @transform_2(%arg0: i32) -> (i32, i32) {
    %c0_i32 = arith.constant 0 : i32
    %c0_i32_0 = arith.constant 0 : i32
    %c0_i32_1 = arith.constant 0 : i32
    return %c0_i32, %c0_i32_0 : i32, i32
  }
  func.func @transform_3(%arg0: i32) -> (i32, i32) {
    %c0_i32 = arith.constant 0 : i32
    %c0_i32_0 = arith.constant 0 : i32
    %c0_i32_1 = arith.constant 0 : i32
    return %c0_i32, %c0_i32_0 : i32, i32
  }
  func.func @transform_4(%arg0: i32) -> (i32, i32) {
    %c0_i32 = arith.constant 0 : i32
    %c0_i32_0 = arith.constant 0 : i32
    %c0_i32_1 = arith.constant 0 : i32
    return %c0_i32, %c0_i32_0 : i32, i32
  }
  func.func @transform_5(%arg0: i32) -> (i32, i32) {
    %c0_i32 = arith.constant 0 : i32
    %c0_i32_0 = arith.constant 0 : i32
    %c0_i32_1 = arith.constant 0 : i32
    return %c0_i32, %c0_i32_0 : i32, i32
  }
  func.func @transform_6(%arg0: i32) -> (i32, i32) {
    %c0_i32 = arith.constant 0 : i32
    %c0_i32_0 = arith.constant 0 : i32
    %c0_i32_1 = arith.constant 0 : i32
    return %c0_i32, %c0_i32_0 : i32, i32
  }
  func.func @transform_7(%arg0: i32) -> (i32, i32) {
    %c0_i32 = arith.constant 0 : i32
    %c0_i32_0 = arith.constant 0 : i32
    %c0_i32_1 = arith.constant 0 : i32
    return %c0_i32, %c0_i32_0 : i32, i32
  }
  func.func @transform_8(%arg0: i32) -> (i32, i32) {
    %c0_i32 = arith.constant 0 : i32
    %c0_i32_0 = arith.constant 0 : i32
    %c0_i32_1 = arith.constant 0 : i32
    return %c0_i32, %c0_i32_0 : i32, i32
  }
  func.func @transform_9(%arg0: i32) -> (i32, i32) {
    %c0_i32 = arith.constant 0 : i32
    %c0_i32_0 = arith.constant 0 : i32
    %c0_i32_1 = arith.constant 0 : i32
    return %c0_i32, %c0_i32_0 : i32, i32
  }
  func.func @transform_10(%arg0: i32) -> (i32, i32) {
    %c0_i32 = arith.constant 0 : i32
    %c0_i32_0 = arith.constant 0 : i32
    %c0_i32_1 = arith.constant 0 : i32
    return %c0_i32, %c0_i32_0 : i32, i32
  }
  func.func @transform_11(%arg0: i32) -> (i32, i32) {
    %c0_i32 = arith.constant 0 : i32
    %c0_i32_0 = arith.constant 0 : i32
    %c0_i32_1 = arith.constant 0 : i32
    return %c0_i32, %c0_i32_0 : i32, i32
  }
  func.func @transform_12(%arg0: i32) -> (i32, i32) {
    %c0_i32 = arith.constant 0 : i32
    %c0_i32_0 = arith.constant 0 : i32
    %c0_i32_1 = arith.constant 0 : i32
    return %c0_i32, %c0_i32_0 : i32, i32
  }
  func.func @transform_13(%arg0: i32) -> (i32, i32) {
    %c0_i32 = arith.constant 0 : i32
    %c0_i32_0 = arith.constant 0 : i32
    %c0_i32_1 = arith.constant 0 : i32
    return %c0_i32, %c0_i32_0 : i32, i32
  }
  func.func @transform_14(%arg0: i32) -> (i32, i32) {
    %c0_i32 = arith.constant 0 : i32
    %c0_i32_0 = arith.constant 0 : i32
    %c0_i32_1 = arith.constant 0 : i32
    return %c0_i32, %c0_i32_0 : i32, i32
  }
  func.func @transform_15(%arg0: i32) -> (i32, i32) {
    %c0_i32 = arith.constant 0 : i32
    %c0_i32_0 = arith.constant 0 : i32
    %c0_i32_1 = arith.constant 0 : i32
    return %c0_i32, %c0_i32_0 : i32, i32
  }
  func.func @transform_16(%arg0: i32) -> (i32, i32) {
    %c0_i32 = arith.constant 0 : i32
    %c0_i32_0 = arith.constant 0 : i32
    %c0_i32_1 = arith.constant 0 : i32
    return %c0_i32, %c0_i32_0 : i32, i32
  }
  func.func @transform_17(%arg0: i32) -> (i32, i32) {
    %c0_i32 = arith.constant 0 : i32
    %c0_i32_0 = arith.constant 0 : i32
    %c0_i32_1 = arith.constant 0 : i32
    return %c0_i32, %c0_i32_0 : i32, i32
  }
}

</mosaic_0001>

<bundles_post_ra>
// kernel: tpu_custom_call.1
= control target key start
LH: loop header
LB: loop body
LE: loop exit
PB: predicated region body
PF: predicated region fallthrough
CT: control target
= control target key end

     0   :  { %s8153_s0 = inlined_call_operand.vmem [shape: f32[64,21], index: 0, kind: input, shape index: {}]   ;;  %s8154_s1 = inlined_call_operand.hbm [shape: f32[8,128], index: 1, kind: input, shape index: {}]   ;;  %s8155_s2 = inlined_call_operand.hbm [shape: f32[21,128], index: 2, kind: input, shape index: {}]   ;;  %s8156_s3 = inlined_call_operand.vmem [shape: f32[1,128], index: 3, kind: input, shape index: {}]   ;;  %s8157_s4 = inlined_call_operand.vmem [shape: f32[4,128], index: 4, kind: input, shape index: {}]   ;;  %s8158_s5 = inlined_call_operand.hbm [shape: f32[128,384], index: 5, kind: input, shape index: {}]   ;;  %s8159_s6 = inlined_call_operand.hbm [shape: f32[1,384], index: 6, kind: input, shape index: {}]   ;;  %s8160_s7 = inlined_call_operand.hbm [shape: f32[128,128], index: 7, kind: input, shape index: {}]   ;;  %s8161_s8 = inlined_call_operand.hbm [shape: f32[1,128], index: 8, kind: input, shape index: {}]   ;;  %s8162_s9 = inlined_call_operand.hbm [shape: f32[2,128], index: 9, kind: input, shape index: {}]   ;;  %s8163_s10 = inlined_call_operand.hbm [shape: f32[128,128], index: 10, kind: input, shape index: {}]   ;;  %s8164_s11 = inlined_call_operand.hbm [shape: f32[1,128], index: 11, kind: input, shape index: {}]   ;;  %s8165_s12 = inlined_call_operand.vmem [shape: f32[128,128], index: 12, kind: input, shape index: {}]   ;;  %s8166_s13 = inlined_call_operand.vmem [shape: f32[1,128], index: 13, kind: input, shape index: {}]   ;;  %s8167_s14 = inlined_call_operand.vmem [shape: f32[2,128], index: 14, kind: input, shape index: {}]   ;;  %s8168_s15 = inlined_call_operand.hbm [shape: f32[128,128], index: 15, kind: input, shape index: {}]   ;;  %s8169_s16 = inlined_call_operand.vmem [shape: f32[1,128], index: 16, kind: input, shape index: {}]   ;;  %s8170_s17 = inlined_call_operand.hbm [shape: f32[8,128], index: 17, kind: output, shape index: {}]  }
   0x1   :  { %8176 = sst [smem:[#allocation29_spill]] %s8153_s0 }
   0x2   :  { %8177 = sst [smem:[#allocation30_spill]] %s8154_s1 }
   0x3   :  { %8178 = sst [smem:[#allocation31_spill]] %s8170_s17 }
   0x4   :  { %22 = vsyncpa [#allocation5], 0 }
   0x5   :  { %23 = vsyncpa [#allocation8], 0 }
   0x6   :  { %24 = vsyncpa [#allocation11], 0 }
   0x7   :  { %25 = vsyncpa [#allocation14], 0 }
   0x8   :  { %26 = vsyncpa [#allocation17], 0 }
   0x9   :  { %27 = vsyncpa [#allocation20], 0 }
   0xa   :  { %28 = vsyncpa [#allocation6], 0  ;;  %s6604_s24 = smov [#allocation7]   ;;  %s6348_s28 = scalar_lea.hbm %s8155_s2, 384 }
   0xb   :  { %s46_s25 = sshll.u32 %s6604_s24, 4  ;;  %p6349_p0 = scmp.ne.s32.totalorder %s8155_s2, %s6348_s28  ;;  %s47_s25 = int_to_ptr.vmem [resolvable:$true] %s46_s25 }
   0xc   :  { %p6352_p1 = scmp.lt.u32.totalorder %s6348_s28, %s8155_s2 }
   0xe   :  { %p6354_p2 = pnand %p6352_p1, %p6349_p0 }
  0x10   :  { %6357 = shalt.err (!%p6354_p2)
}
  0x11   :  { %s6358_s19 = scalar_lea.vmem %s47_s25, 384  ;;  %p6363_p4 = scmp.lt.s32.totalorder %s47_s25, %s47_s25 }
  0x12   :  { %p6359_p3 = scmp.ne.s32.totalorder %s47_s25, %s6358_s19  ;;  %p6364_p5 = scmp.lt.s32.totalorder %s6358_s19, %s6358_s19 }
  0x14   :  { %p6365_p6 = por %p6364_p5, %p6363_p4 }
  0x16   :  { %p6366_p7 = pnand %p6365_p6, %p6359_p3 }
  0x18   :  { %6369 = shalt.err (!%p6366_p7)
}
  0x19   :  { %s6605_s1 = smov 128   ;;  %s6606_s20 = smov 8  }
  0x1a   :  { %52 = dma.hbm_to_vmem [thread:$0]  %s8155_s2, 384, %s47_s25, [#allocation8], %s6605_s1, %s6605_s1, %s6606_s20  }
  0x1b   :  { %s6607_s23 = smov [#allocation10]   ;;  %s6608_s26 = smov [#allocation13]  }
  0x1c   :  { %s75_s24 = sshll.u32 %s6607_s23, 4  ;;  %s97_s27 = sshll.u32 %s6608_s26, 4  ;;  %s76_s24 = int_to_ptr.vmem [resolvable:$true] %s75_s24  ;;  %s98_s27 = int_to_ptr.vmem [resolvable:$true] %s97_s27 }
  0x1d   :  { %s6370_s0 = scalar_lea.hbm %s8159_s6, 48 }
  0x1e   :  { %p6371_p8 = scmp.ne.s32.totalorder %s8159_s6, %s6370_s0  ;;  %p6374_p9 = scmp.lt.u32.totalorder %s6370_s0, %s8159_s6 }
  0x20   :  { %p6376_p10 = pnand %p6374_p9, %p6371_p8 }
  0x22   :  { %6379 = shalt.err (!%p6376_p10)
}
  0x23   :  { %s6380_s2 = scalar_lea.vmem %s76_s24, 48  ;;  %s6384_s25 = scalar_lea.vmem %s76_s24, 64 }
  0x24   :  { %p6381_p11 = scmp.ne.s32.totalorder %s76_s24, %s6380_s2  ;;  %p6385_p12 = scmp.lt.s32.totalorder %s76_s24, %s76_s24 }
  0x25   :  { %p6386_p13 = scmp.lt.s32.totalorder %s6384_s25, %s6380_s2 }
  0x27   :  { %p6387_p0 = por %p6386_p13, %p6385_p12 }
  0x29   :  { %p6388_p1 = pnand %p6387_p0, %p6381_p11 }
  0x2b   :  { %6391 = shalt.err (!%p6388_p1)
}
  0x2c   :  { %78 = dma.hbm_to_vmem [thread:$0]  %s8159_s6, 48, %s76_s24, [#allocation11]  }
  0x2d   :  { %s6392_s17 = scalar_lea.hbm %s8161_s8, 16 }
  0x2e   :  { %p6393_p2 = scmp.ne.s32.totalorder %s8161_s8, %s6392_s17  ;;  %p6396_p3 = scmp.lt.u32.totalorder %s6392_s17, %s8161_s8 }
  0x30   :  { %p6398_p4 = pnand %p6396_p3, %p6393_p2 }
  0x32   :  { %6401 = shalt.err (!%p6398_p4)
}
  0x33   :  { %s6402_s18 = scalar_lea.vmem %s98_s27, 16  ;;  %s6406_s19 = scalar_lea.vmem %s98_s27, 32 }
  0x34   :  { %p6403_p5 = scmp.ne.s32.totalorder %s98_s27, %s6402_s18  ;;  %p6407_p6 = scmp.lt.s32.totalorder %s98_s27, %s98_s27 }
  0x35   :  { %p6408_p7 = scmp.lt.s32.totalorder %s6406_s19, %s6402_s18 }
  0x37   :  { %p6409_p8 = por %p6408_p7, %p6407_p6 }
  0x39   :  { %p6410_p9 = pnand %p6409_p8, %p6403_p5 }
  0x3b   :  { %6413 = shalt.err (!%p6410_p9)
}
  0x3c   :  { %100 = dma.hbm_to_vmem [thread:$0]  %s8161_s8, 16, %s98_s27, [#allocation14]  }
  0x3d   :  { %s6609_s2 = smov [#allocation16]   ;;  %s6610_s21 = smov [#allocation4]  }
  0x3e   :  { %s116_s25 = sshll.u32 %s6609_s2, 4  ;;  %s37_s22 = sshll.u32 %s6610_s21, 4  ;;  %s117_s25 = int_to_ptr.vmem [resolvable:$true] %s116_s25  ;;  %s38_s22 = int_to_ptr.vmem [resolvable:$true] %s37_s22 }
  0x3f   :  { %s6414_s17 = scalar_lea.hbm %s8163_s10, 2048 }
  0x40   :  { %p6415_p10 = scmp.ne.s32.totalorder %s8163_s10, %s6414_s17  ;;  %p6418_p11 = scmp.lt.u32.totalorder %s6414_s17, %s8163_s10 }
  0x42   :  { %p6420_p12 = pnand %p6418_p11, %p6415_p10 }
  0x44   :  { %6423 = shalt.err (!%p6420_p12)
}
  0x45   :  { %s6424_s8 = scalar_lea.vmem %s117_s25, 2048  ;;  %p6429_p0 = scmp.lt.s32.totalorder %s117_s25, %s117_s25 }
  0x46   :  { %p6425_p13 = scmp.ne.s32.totalorder %s117_s25, %s6424_s8  ;;  %p6430_p1 = scmp.lt.s32.totalorder %s6424_s8, %s6424_s8 }
  0x48   :  { %p6431_p2 = por %p6430_p1, %p6429_p0 }
  0x4a   :  { %p6432_p3 = pnand %p6431_p2, %p6425_p13 }
  0x4c   :  { %6435 = shalt.err (!%p6432_p3)
}
  0x4d   :  { %122 = dma.hbm_to_vmem [thread:$0]  %s8163_s10, 2048, %s117_s25, [#allocation17], %s6605_s1, %s6605_s1, %s6606_s20  }
  0x4e   :  { %s8179_s24 = sld [smem:[#allocation30_spill]] }
  0x54   :  { %s6436_s2 = scalar_lea.hbm %s8179_s24, 128 }
  0x55   :  { %p6437_p4 = scmp.ne.s32.totalorder %s8179_s24, %s6436_s2  ;;  %p6440_p5 = scmp.lt.u32.totalorder %s6436_s2, %s8179_s24 }
  0x57   :  { %p6442_p6 = pnand %p6440_p5, %p6437_p4 }
  0x59   :  { %6445 = shalt.err (!%p6442_p6)
}
  0x5a   :  { %s6446_s28 = scalar_lea.vmem %s38_s22, 128  ;;  %p6451_p8 = scmp.lt.s32.totalorder %s38_s22, %s38_s22 }
  0x5b   :  { %p6447_p7 = scmp.ne.s32.totalorder %s38_s22, %s6446_s28  ;;  %p6452_p9 = scmp.lt.s32.totalorder %s6446_s28, %s6446_s28 }
  0x5d   :  { %p6453_p10 = por %p6452_p9, %p6451_p8 }
  0x5f   :  { %p6454_p11 = pnand %p6453_p10, %p6447_p7 }
  0x61   :  { %6457 = shalt.err (!%p6454_p11)
}
  0x62   :  { %40 = dma.hbm_to_vmem [thread:$0]  %s8179_s24, 128, %s38_s22, [#allocation5]  }
  0x63   :  { %s6611_s29 = smov [#allocation9]   ;;  %s6458_s27 = scalar_lea.hbm %s8158_s5, 6144 }
  0x64   :  { %s62_s0 = sshll.u32 %s6611_s29, 4  ;;  %p6459_p12 = scmp.ne.s32.totalorder %s8158_s5, %s6458_s27  ;;  %s63_s0 = int_to_ptr.vmem [resolvable:$true] %s62_s0 }
  0x65   :  { %p6462_p13 = scmp.lt.u32.totalorder %s6458_s27, %s8158_s5 }
  0x67   :  { %p6464_p0 = pnand %p6462_p13, %p6459_p12 }
  0x69   :  { %6467 = shalt.err (!%p6464_p0)
}
  0x6a   :  { %s6468_s21 = scalar_lea.vmem %s63_s0, 6144  ;;  %p6473_p2 = scmp.lt.s32.totalorder %s63_s0, %s63_s0 }
  0x6b   :  { %p6469_p1 = scmp.ne.s32.totalorder %s63_s0, %s6468_s21  ;;  %p6474_p3 = scmp.lt.s32.totalorder %s6468_s21, %s6468_s21 }
  0x6d   :  { %p6475_p4 = por %p6474_p3, %p6473_p2 }
  0x6f   :  { %p6476_p5 = pnand %p6475_p4, %p6469_p1 }
  0x71   :  { %6479 = shalt.err (!%p6476_p5)
}
  0x72   :  { %s6612_s22 = smov 384   ;;  %s6613_s24 = smov 24  }
  0x73   :  { %68 = dma.hbm_to_vmem [thread:$0]  %s8158_s5, 6144, %s63_s0, [#allocation8], %s6612_s22, %s6612_s22, %s6613_s24  }
  0x74   :  { %s6614_s17 = smov [#allocation12]   ;;  %s6615_s10 = smov [#allocation15]  }
  0x75   :  { %s84_s28 = sshll.u32 %s6614_s17, 4  ;;  %s107_s25 = sshll.u32 %s6615_s10, 4  ;;  %s85_s28 = int_to_ptr.vmem [resolvable:$true] %s84_s28  ;;  %s108_s25 = int_to_ptr.vmem [resolvable:$true] %s107_s25 }
  0x76   :  { %s6480_s8 = scalar_lea.hbm %s8160_s7, 2048 }
  0x77   :  { %p6481_p6 = scmp.ne.s32.totalorder %s8160_s7, %s6480_s8  ;;  %p6484_p7 = scmp.lt.u32.totalorder %s6480_s8, %s8160_s7 }
  0x79   :  { %p6486_p8 = pnand %p6484_p7, %p6481_p6 }
  0x7b   :  { %6489 = shalt.err (!%p6486_p8)
}
  0x7c   :  { %s6490_s5 = scalar_lea.vmem %s85_s28, 2048  ;;  %p6495_p10 = scmp.lt.s32.totalorder %s85_s28, %s85_s28 }
  0x7d   :  { %p6491_p9 = scmp.ne.s32.totalorder %s85_s28, %s6490_s5  ;;  %p6496_p11 = scmp.lt.s32.totalorder %s6490_s5, %s6490_s5 }
  0x7f   :  { %p6497_p12 = por %p6496_p11, %p6495_p10 }
  0x81   :  { %p6498_p13 = pnand %p6497_p12, %p6491_p9 }
  0x83   :  { %6501 = shalt.err (!%p6498_p13)
}
  0x84   :  { %90 = dma.hbm_to_vmem [thread:$0]  %s8160_s7, 2048, %s85_s28, [#allocation11], %s6605_s1, %s6605_s1, %s6606_s20  }
  0x85   :  { %s6502_s24 = scalar_lea.hbm %s8162_s9, 32 }
  0x86   :  { %p6503_p0 = scmp.ne.s32.totalorder %s8162_s9, %s6502_s24  ;;  %p6506_p1 = scmp.lt.u32.totalorder %s6502_s24, %s8162_s9 }
  0x88   :  { %p6508_p2 = pnand %p6506_p1, %p6503_p0 }
  0x8a   :  { %6511 = shalt.err (!%p6508_p2)
}
  0x8b   :  { %s6512_s29 = scalar_lea.vmem %s108_s25, 32  ;;  %p6517_p4 = scmp.lt.s32.totalorder %s108_s25, %s108_s25 }
  0x8c   :  { %p6513_p3 = scmp.ne.s32.totalorder %s108_s25, %s6512_s29  ;;  %p6518_p5 = scmp.lt.s32.totalorder %s6512_s29, %s6512_s29 }
  0x8e   :  { %p6519_p6 = por %p6518_p5, %p6517_p4 }
  0x90   :  { %p6520_p7 = pnand %p6519_p6, %p6513_p3 }
  0x92   :  { %6523 = shalt.err (!%p6520_p7)
}
  0x93   :  { %110 = dma.hbm_to_vmem [thread:$0]  %s8162_s9, 32, %s108_s25, [#allocation14]  }
  0x94   :  { %s6616_s30 = smov [#allocation18]   ;;  %s6617_s27 = smov [#allocation19]  }
  0x95   :  { %s129_s8 = sshll.u32 %s6616_s30, 4  ;;  %s144_s18 = sshll.u32 %s6617_s27, 4  ;;  %s130_s8 = int_to_ptr.vmem [resolvable:$true] %s129_s8  ;;  %s6823_s18 = int_to_ptr.vmem [resolvable:$true] %s144_s18 }
  0x96   :  { %s6524_s5 = scalar_lea.hbm %s8164_s11, 16 }
  0x97   :  { %p6525_p8 = scmp.ne.s32.totalorder %s8164_s11, %s6524_s5  ;;  %p6528_p9 = scmp.lt.u32.totalorder %s6524_s5, %s8164_s11 }
  0x99   :  { %p6530_p10 = pnand %p6528_p9, %p6525_p8 }
  0x9b   :  { %6533 = shalt.err (!%p6530_p10)
}
  0x9c   :  { %s6534_s9 = scalar_lea.vmem %s130_s8, 16  ;;  %s6538_s25 = scalar_lea.vmem %s130_s8, 32 }
  0x9d   :  { %p6535_p11 = scmp.ne.s32.totalorder %s130_s8, %s6534_s9  ;;  %p6539_p12 = scmp.lt.s32.totalorder %s130_s8, %s130_s8 }
  0x9e   :  { %p6540_p13 = scmp.lt.s32.totalorder %s6538_s25, %s6534_s9 }
  0xa0   :  { %p6541_p0 = por %p6540_p13, %p6539_p12 }
  0xa2   :  { %p6542_p1 = pnand %p6541_p0, %p6535_p11 }
  0xa4   :  { %6545 = shalt.err (!%p6542_p1)
}
  0xa5   :  { %132 = dma.hbm_to_vmem [thread:$0]  %s8164_s11, 16, %s130_s8, [#allocation17]  }
  0xa6   :  { %s6546_s10 = scalar_lea.hbm %s8168_s15, 2048 }
  0xa7   :  { %p6547_p2 = scmp.ne.s32.totalorder %s8168_s15, %s6546_s10  ;;  %p6550_p3 = scmp.lt.u32.totalorder %s6546_s10, %s8168_s15 }
  0xa9   :  { %p6552_p4 = pnand %p6550_p3, %p6547_p2 }
  0xab   :  { %6555 = shalt.err (!%p6552_p4)
}
  0xac   :  { %s6556_s27 = scalar_lea.vmem %s6823_s18, 2048  ;;  %p6561_p6 = scmp.lt.s32.totalorder %s6823_s18, %s6823_s18 }
  0xad   :  { %p6557_p5 = scmp.ne.s32.totalorder %s6823_s18, %s6556_s27  ;;  %p6562_p7 = scmp.lt.s32.totalorder %s6556_s27, %s6556_s27 }
  0xaf   :  { %p6563_p8 = por %p6562_p7, %p6561_p6 }
  0xb1   :  { %p6564_p9 = pnand %p6563_p8, %p6557_p5 }
  0xb3   :  { %6567 = shalt.err (!%p6564_p9)
}
  0xb4   :  { %150 = dma.hbm_to_vmem [thread:$0]  %s8168_s15, 2048, %s6823_s18, [#allocation20], %s6605_s1, %s6605_s1, %s6606_s20  }
  0xb5   :  { %6590 = dma.done.wait [#allocation5], 128  }
  0xb6   :  { %6591 = vsyncadd [#allocation5], 4294967168 }
  0xb7   :  { %6592 = dma.done.wait [#allocation8], 6528  }
  0xb8   :  { %6593 = vsyncadd [#allocation8], 4294960768 }
  0xb9   :  { %6594 = dma.done.wait [#allocation11], 2096  }
  0xba   :  { %6595 = vsyncadd [#allocation11], 4294965200 }
  0xbb   :  { %6596 = dma.done.wait [#allocation14], 48  }
  0xbc   :  { %6597 = vsyncadd [#allocation14], 4294967248 }
  0xbd   :  { %6598 = dma.done.wait [#allocation17], 2064  }
  0xbe   :  { %6599 = vsyncadd [#allocation17], 4294965232 }
  0xbf   :  { %6600 = dma.done.wait [#allocation20], 2048  }
  0xc0   :  { %6601 = vsyncadd [#allocation20], 4294965248  ;;  %vm293_vm0 = vcmask 1041408   ;;  %vm294_vm1 = vcmask 1042432   ;;  %v6618_v0 = vmov 65535   ;;  %v269_v2 = vld [vmem:[#allocation7] sm:$0xff] }
  0xc1   :  { %v295_v1 = vsel %vm293_vm0, 4294967295, %v6618_v0  ;;  %v270_v3 = vld [vmem:[#allocation7 + $0x8] sm:$0xff]  ;;  %v271_v4 = vld [vmem:[#allocation7 + $0x10] sm:$0x1f]  ;;  %s8180_s20 = sld [smem:[#allocation29_spill]]  ;;  %vm207_vm2 = vcmask 171008  }
  0xc2   :  { %v296_v5 = vsel %vm294_vm1, %v295_v1, 0  ;;  %v272_v6 = vpack.c.bf16 %v270_v3, %v269_v2  ;;  %v273_v7 = vpack.c.bf16 %v271_v4, %v271_v4  ;;  %v501_v16 = vld [vmem:[#allocation9 + $0x8] sm:$0xff]  ;;  %v504_v17 = vld [vmem:[#allocation9 + $0x20] sm:$0xff]  ;;  %v503_v20 = vld [vmem:[#allocation9 + $0x18] sm:$0xff]  ;;  %vm6622_vm3 = vmmov 0   ;;  %s6626_s18 = smov 32  }
  0xc3   :  { %v500_v18 = vld [vmem:[#allocation9] sm:$0xff]  ;;  %v549_v19 = vpack.c.bf16 %v504_v17, %v501_v16  ;;  %v502_v21 = vld [vmem:[#allocation9 + $0x10] sm:$0xff]  ;;  %v505_v22 = vld [vmem:[#allocation9 + $0x28] sm:$0xff]  ;;  %vm755_vm4 = vcmask 261120   ;;  %vm1240_vm5 = vcmask 1043456   ;;  %vm1140_vm7 = vcmask 64512  }
  0xc4   :  { %5590 = vmatprep.subr.bf16.mxu1 %v272_v6  ;;  %v298_v12 = vand.u32 %v296_v5, %v273_v7  ;;  %v550_v23 = vpack.c.bf16 %v505_v22, %v502_v21  ;;  %v507_v24 = vld [vmem:[#allocation9 + $0x38] sm:$0xff]  ;;  %v510_v25 = vld [vmem:[#allocation9 + $0x50] sm:$0xff]  ;;  %v508_v27 = vld [vmem:[#allocation9 + $0x40] sm:$0xff]  ;;  %v548_v30 = vpack.c.bf16 %v503_v20, %v500_v18  ;;  %vm189_vm8 = vcmask 7168   ;;  %s6627_s19 = smov [#allocation21]  }
  0xc5   :  { %5591 = vmatpush3.bf16.msra.mxu1 %v272_v6  ;;  %v511_v28 = vld [vmem:[#allocation9 + $0x58] sm:$0xff]  ;;  %v506_v31 = vld [vmem:[#allocation9 + $0x30] sm:$0xff]  ;;  %v552_v33 = vpack.c.bf16 %v510_v25, %v507_v24  ;;  %v509_v34 = vld [vmem:[#allocation9 + $0x48] sm:$0xff]  ;;  %s5272_s6 = sshll.u32 %s6627_s19, 4  ;;  %s5273_s6 = int_to_ptr.vmem [resolvable:$true] %s5272_s6 }
  0xc6   :  { %5592 = vmatprep.subr.bf16.mxu1 %v298_v12  ;;  %5602 = vmatprep.subr.bf16.mxu0 %v550_v23  ;;  %v553_v32 = vpack.c.bf16 %v511_v28, %v508_v27  ;;  %v514_v35 = vld [vmem:[#allocation9 + $0x70] sm:$0xff]  ;;  %v517_v36 = vld [vmem:[#allocation9 + $0x88] sm:$0xff]  ;;  %v516_v38 = vld [vmem:[#allocation9 + $0x80] sm:$0xff]  ;;  %v551_v44 = vpack.c.bf16 %v509_v34, %v506_v31  ;;  %s6568_s5 = scalar_lea.vmem %s5273_s6, 128  ;;  %p6573_p11 = scmp.lt.s32.totalorder %s5273_s6, %s5273_s6 }
  0xc7   :  { %v191_v8 = vld [vmem:[%s8180_s20] sm:$0xff]  ;;  %v192_v9 = vld [vmem:[%s8180_s20 + $0x8] sm:$0xff]  ;;  %v193_v11 = vld [vmem:[%s8180_s20 + $0x10] sm:$0xff]  ;;  %5603 = vmatpush3.bf16.msra.mxu0 %v550_v23  ;;  %v556_v39 = vpack.c.bf16 %v517_v36, %v514_v35  ;;  %p6569_p10 = scmp.ne.s32.totalorder %s5273_s6, %s6568_s5  ;;  %p6574_p12 = scmp.lt.s32.totalorder %s6568_s5, %s6568_s5 }
  0xc8   :  { %v265_v10 = vpack.c.bf16 %v192_v9, %v191_v8  ;;  %v194_v13 = vld [vmem:[%s8180_s20 + $0x18] sm:$0xff]  ;;  %v195_v14 = vld [vmem:[%s8180_s20 + $0x20] sm:$0xff]  ;;  %v196_v15 = vld [vmem:[%s8180_s20 + $0x28] sm:$0xff]  ;;  %5604 = vmatprep.subr.bf16.mxu0 %v553_v32 }
  0xc9   :  { %v266_v26 = vpack.c.bf16 %v194_v13, %v193_v11  ;;  %5593 = vmatpush3.bf16.msra.mxu1 %v298_v12  ;;  %v267_v29 = vpack.c.bf16 %v196_v15, %v195_v14  ;;  %v513_v37 = vld [vmem:[#allocation9 + $0x68] sm:$0xff]  ;;  %v520_v40 = vld [vmem:[#allocation9 + $0xa0] sm:$0xff]  ;;  %v523_v41 = vld [vmem:[#allocation9 + $0xb8] sm:$0xff]  ;;  %p6575_p13 = por %p6574_p12, %p6573_p11 }
  0xca   :  { %5594 = vmatprep.mubr.msk.bf16.mxu1 %vm207_vm2, %v265_v10  ;;  %589 = vmatprep.subr.bf16.mxu1 %v549_v19  ;;  %v197_v42 = vld [vmem:[%s8180_s20 + $0x30] sm:$0xff]  ;;  %v198_v43 = vld [vmem:[%s8180_s20 + $0x38] sm:$0xff]  ;;  %v555_v45 = vpack.c.bf16 %v516_v38, %v513_v37  ;;  %v512_v46 = vld [vmem:[#allocation9 + $0x60] sm:$0xff]  ;;  %v559_v50 = vpack.c.bf16 %v523_v41, %v520_v40 }
  0xcb   :  { %5605 = vmatpush3.bf16.msra.mxu0 %v553_v32  ;;  %v515_v47 = vld [vmem:[#allocation9 + $0x78] sm:$0xff]  ;;  %v522_v49 = vld [vmem:[#allocation9 + $0xb0] sm:$0xff]  ;;  %v268_v51 = vpack.c.bf16 %v198_v43, %v197_v42  ;;  %v521_v55 = vld [vmem:[#allocation9 + $0xa8] sm:$0xff]  ;;  %v365_v32 = vlaneseq  ;;  %p6576_p0 = pnand %p6575_p13, %p6569_p10 }
  0xcc   :  { %5595 = vmatmul.mubr.msk.bf16.vlgmr.msra.gmra.mrb[0].mxu1 %vm207_vm2, %v266_v26  ;;  %5606 = vmatprep.subr.bf16.mxu0 %v556_v39  ;;  %v519_v48 = vld [vmem:[#allocation9 + $0x98] sm:$0xff]  ;;  %v554_v52 = vpack.c.bf16 %v515_v47, %v512_v46  ;;  %v518_v54 = vld [vmem:[#allocation9 + $0x90] sm:$0xff]  ;;  %v525_v57 = vld [vmem:[#allocation9 + $0xc8] sm:$0xff] }
  0xcd   :  { %5598 = vmatprep.mubr.msk.bf16.mxu1 %vm207_vm2, %v267_v29  ;;  %590 = vmatpush1.bf16.msra.mxu1 %v548_v30  ;;  %v558_v53 = vpack.c.bf16 %v522_v49, %v519_v48  ;;  %v557_v56 = vpack.c.bf16 %v521_v55, %v518_v54  ;;  %v528_v58 = vld [vmem:[#allocation9 + $0xe0] sm:$0xff]  ;;  %v527_v61 = vld [vmem:[#allocation9 + $0xd8] sm:$0xff]  ;;  %v526_v62 = vld [vmem:[#allocation9 + $0xd0] sm:$0xff]  ;;  %v6619_v29 = vmov 0   ;;  %v6891_v35 = vshrl.u32 %v365_v32, 7 }
  0xce   :  { %591 = vmatprep.subr.bf16.mxu1 %v552_v33  ;;  %v561_v59 = vpack.c.bf16 %v528_v58, %v525_v57  ;;  %v524_v60 = vld [vmem:[#allocation9 + $0xc0] sm:$0xff]  ;;  %v529_v0 = vld [vmem:[#allocation9 + $0xe8] sm:$0xff]  ;;  %v531_v2 = vld [vmem:[#allocation9 + $0xf8] sm:$0xff]  ;;  %6174 = vset.pattern.permute.xlu0 %v6619_v29  ;;  %v6620_v33 = vmov 1966171168  }
  0xcf   :  { %5607 = vmatpush3.bf16.msra.mxu0 %v556_v39  ;;  %v560_v63 = vpack.c.bf16 %v527_v61, %v524_v60  ;;  %v562_v1 = vpack.c.bf16 %v529_v0, %v526_v62  ;;  %v534_v3 = vld [vmem:[#allocation9 + $0x110] sm:$0xff]  ;;  %v533_v6 = vld [vmem:[#allocation9 + $0x108] sm:$0xff]  ;;  %v532_v7 = vld [vmem:[#allocation9 + $0x100] sm:$0xff]  ;;  %v401_v34 = vunpack.c.l.s4 %v6620_v33  ;;  %v6904_v46 = vsub.s32 0, %v6891_v35 }
  0xd0   :  { %5608 = vmatprep.subr.bf16.mxu0 %v559_v50  ;;  %v564_v4 = vpack.c.bf16 %v534_v3, %v531_v2  ;;  %v530_v5 = vld [vmem:[#allocation9 + $0xf0] sm:$0xff]  ;;  %v535_v9 = vld [vmem:[#allocation9 + $0x118] sm:$0xff]  ;;  %v537_v11 = vld [vmem:[#allocation9 + $0x128] sm:$0xff] }
  0xd1   :  { %592 = vmatpush1.bf16.msra.mxu1 %v551_v44  ;;  %v563_v8 = vpack.c.bf16 %v533_v6, %v530_v5  ;;  %v565_v10 = vpack.c.bf16 %v535_v9, %v532_v7  ;;  %v540_v12 = vld [vmem:[#allocation9 + $0x140] sm:$0xff]  ;;  %v539_v15 = vld [vmem:[#allocation9 + $0x138] sm:$0xff]  ;;  %v538_v16 = vld [vmem:[#allocation9 + $0x130] sm:$0xff]  ;;  %v402_v36 = vunpack.c.0.s8 %v401_v34 }
  0xd2   :  { %593 = vmatprep.subr.bf16.mxu1 %v555_v45  ;;  %v567_v13 = vpack.c.bf16 %v540_v12, %v537_v11  ;;  %v536_v14 = vld [vmem:[#allocation9 + $0x120] sm:$0xff]  ;;  %v541_v18 = vld [vmem:[#allocation9 + $0x148] sm:$0xff]  ;;  %v543_v20 = vld [vmem:[#allocation9 + $0x158] sm:$0xff] }
  0xd3   :  { %5609 = vmatpush3.bf16.msra.mxu0 %v559_v50  ;;  %v566_v17 = vpack.c.bf16 %v539_v15, %v536_v14  ;;  %v568_v19 = vpack.c.bf16 %v541_v18, %v538_v16  ;;  %v546_v21 = vld [vmem:[#allocation9 + $0x170] sm:$0xff]  ;;  %v545_v24 = vld [vmem:[#allocation9 + $0x168] sm:$0xff]  ;;  %v544_v25 = vld [vmem:[#allocation9 + $0x160] sm:$0xff]  ;;  %v405_v39 = vsub.s32 %v402_v36, %v6891_v35 }
  0xd4   :  { %5599 = vmatmul.mubr.msk.bf16.gmra.mrb[4].mxu1 %vm207_vm2, %v268_v51  ;;  %5610 = vmatprep.subr.bf16.mxu0 %v562_v1  ;;  %v570_v22 = vpack.c.bf16 %v546_v21, %v543_v20  ;;  %v542_v23 = vld [vmem:[#allocation9 + $0x150] sm:$0xff]  ;;  %v547_v27 = vld [vmem:[#allocation9 + $0x178] sm:$0xff]  ;;  %v397_v40 = vld [vmem:[#allocation4] sm:$0xff] }
  0xd5   :  { %594 = vmatpush1.bf16.msra.mxu1 %v554_v52  ;;  %v569_v26 = vpack.c.bf16 %v545_v24, %v542_v23  ;;  %v571_v28 = vpack.c.bf16 %v547_v27, %v544_v25  ;;  %621 = vmatprep.mubr.bf16.mxu1 %v6619_v29  ;;  %v259_v30 = vld [vmem:[%s8157_s4 + $0x3] sm:$0x1]  ;;  %v256_v38 = vld [vmem:[%s8157_s4] sm:$0x1]  ;;  %v258_v42 = vld [vmem:[%s8157_s4 + $0x2] sm:$0x1]  ;;  %v406_v43 = vrot.slane %v397_v40, %v405_v39 }
  0xd6   :  { %595 = vmatprep.subr.bf16.mxu1 %v558_v53  ;;  %v260_v31 = vadd.f32 1e-05, %v259_v30  ;;  %v257_v45 = vld [vmem:[%s8157_s4 + $0x1] sm:$0x1]  ;;  %v399_v48 = vcombine.high %v397_v40, %v397_v40  ;;  %v5294_v50 = vld [vmem:[%s8156_s3] ss:$0 sm:$0xff] }
  0xd7   :  { %5611 = vmatpush3.bf16.msra.mxu0 %v562_v1  ;;  %v414_v47 = vcombine.high %v406_v43, %v406_v43  ;;  %v422_v55 = vrot.slane %v406_v43, %v405_v39  ;;  %s6624_s3 = smov 96   ;;  %s6625_s4 = smov 64  }
  0xd8   :  { %5612 = vmatprep.subr.bf16.mxu0 %v565_v10  ;;  %6176 = vrsqrt.f32 %v260_v31  ;;  %v413_v53 = vrot.slane %v399_v48, %v405_v39 }
  0xd9   :  { %596 = vmatpush1.bf16.msra.mxu1 %v557_v56  ;;  %v436_v52 = vrot.slane %v414_v47, %v405_v39 }
  0xda   :  { %597 = vmatprep.subr.bf16.mxu1 %v561_v59  ;;  %v415_v1 = vcombine.high %v413_v53, %v413_v53  ;;  %v429_v7 = vrot.slane %v413_v53, %v405_v39 }
  0xdb   :  { %5613 = vmatpush3.bf16.msra.mxu0 %v565_v10  ;;  %v446_v0 = vcombine.high %v436_v52, %v436_v52  ;;  %v451_v10 = vrot.slane %v422_v55, %v6904_v46  ;;  %v455_v16 = vrot.slane %v436_v52, %v6904_v46 }
  0xdc   :  { %5614 = vmatprep.subr.bf16.mxu0 %v568_v19  ;;  %v445_v23 = vcombine.high %v429_v7, %v429_v7  ;;  %v467_v47 = vrot.slane %v429_v7, %v6904_v46 }
  0xdd   :  { %598 = vmatpush1.bf16.msra.mxu1 %v560_v63  ;;  %v463_v12 = vrot.slane %v446_v0, %v6904_v46  ;;  %v572_v0 = vld [vmem:[#allocation10] sm:$0x7] }
  0xde   :  { %599 = vmatprep.subr.bf16.mxu1 %v564_v4  ;;  %v444_v4 = vcombine.high %v422_v55, %v422_v55 }
  0xdf   :  { %5615 = vmatpush3.bf16.msra.mxu0 %v568_v19 }
  0xe0   :  { %5616 = vmatprep.subr.bf16.mxu0 %v571_v28  ;;  %v459_v18 = vrot.slane %v444_v4, %v6904_v46 }
  0xe1   :  { %600 = vmatpush1.bf16.msra.mxu1 %v563_v8 }
  0xe2   :  { %601 = vmatprep.subr.bf16.mxu1 %v567_v13  ;;  %v6177_v37 = vpop.eup %6176  ;;  %v443_v13 = vrot.slane %v415_v1, %v405_v39  ;;  %v580_v1 = vsub.s32 1, %v6891_v35 }
  0xe3   :  { %5617 = vmatpush3.bf16.msra.mxu0 %v571_v28  ;;  %v262_v41 = vmul.f32 %v6177_v37, %v256_v38 }
  0xe4   :  { %v447_v33 = vcombine.high %v443_v13, %v443_v13  ;;  %v471_v55 = vrot.slane %v443_v13, %v6904_v46 }
  0xe5   :  { %602 = vmatpush1.bf16.msra.mxu1 %v566_v17  ;;  %v263_v44 = vmul.f32 %v262_v41, %v258_v42  ;;  %v368_v51 = vrot.slane %v262_v41, %v6904_v46  ;;  %v475_v42 = vrot.slane %v445_v23, %v6904_v46 }
  0xe6   :  { %603 = vmatprep.subr.bf16.mxu1 %v570_v22 }
  0xe7   :  { %v264_v49 = vsub.f32 %v257_v45, %v263_v44 }
  0xe9   :  { %604 = vmatpush1.bf16.msra.mxu1 %v569_v26  ;;  %v380_v57 = vrot.slane %v264_v49, %v6904_v46 }
 0x19f   :  { %v5596_v54 = vpop.f32.mrb[0].mxu1 }
 0x1a0   :  { %v343_v56 = vadd.f32 %v5596_v54, %v5294_v50  ;;  %v334_v58 = vpop.f32.mrb[1].mxu1 }
 0x1a1   :  { %v335_v59 = vadd.f32 %v5294_v50, %v334_v58  ;;  %v5597_v60 = vpop.f32.mrb[2].mxu1 }
 0x1a2   :  { %v371_v61 = vmul.f32 %v368_v51, %v343_v56  ;;  %v346_v62 = vadd.f32 %v5597_v60, %v5294_v50  ;;  %v337_v63 = vpop.f32.mrb[3].mxu1 }
 0x1a3   :  { %v369_v2 = vmul.f32 %v368_v51, %v335_v59  ;;  %v338_v3 = vadd.f32 %v5294_v50, %v337_v63  ;;  %v8174_v63 = vmov 0.0  }
 0x1a4   :  { %v383_v5 = vadd.f32 %v380_v57, %v371_v61  ;;  %v372_v6 = vmul.f32 %v368_v51, %v346_v62  ;;  %5626 = vmatprep.subr.bf16.mxu0 %v8174_v63  ;;  %5638 = vmatprep.subr.bf16.mxu1 %v8174_v63 }
 0x1a5   :  { %v381_v8 = vadd.f32 %v380_v57, %v369_v2  ;;  %v370_v9 = vmul.f32 %v368_v51, %v338_v3  ;;  %v584_v2 = vsub.s32 2, %v6891_v35  ;;  %v6957_v3 = vrot.slane %v572_v0, %v580_v1 }
 0x1a6   :  { %v384_v11 = vadd.f32 %v380_v57, %v372_v6  ;;  %v391_v19 = vmax.f32 %v383_v5, 0.0 }
 0x1a7   :  { %v389_v14 = vmax.f32 %v381_v8, 0.0  ;;  %v382_v15 = vadd.f32 %v380_v57, %v370_v9  ;;  %v5600_v17 = vpop.f32.mrb[4].mxu1  ;;  %v6959_v4 = vrot.slane %v572_v0, %v584_v2 }
 0x1a8   :  { %v392_v20 = vmax.f32 %v384_v11, 0.0  ;;  %v359_v21 = vadd.f32 %v5600_v17, %v5294_v50  ;;  %v350_v22 = vpop.f32.mrb[5].mxu1  ;;  %v6921_v40 = vadd.f32 %v459_v18, %v391_v19 }
 0x1a9   :  { %v390_v24 = vmax.f32 %v382_v15, 0.0  ;;  %v351_v25 = vadd.f32 %v5294_v50, %v350_v22  ;;  %v5601_v26 = vpop.f32.mrb[6].mxu1  ;;  %v6917_v34 = vadd.f32 %v451_v10, %v389_v14 }
 0x1aa   :  { %v375_v27 = vmul.f32 %v368_v51, %v359_v21  ;;  %v6915_v28 = vadd.f32 %v463_v12, %v392_v20  ;;  %v362_v30 = vadd.f32 %v5601_v26, %v5294_v50  ;;  %v353_v31 = vpop.f32.mrb[7].mxu1 }
 0x1ab   :  { %v6919_v36 = vadd.f32 %v455_v16, %v390_v24  ;;  %v373_v37 = vmul.f32 %v368_v51, %v351_v25  ;;  %v354_v38 = vadd.f32 %v5294_v50, %v353_v31  ;;  %v479_v50 = vrot.slane %v447_v33, %v6904_v46 }
 0x1ac   :  { %v387_v39 = vadd.f32 %v380_v57, %v375_v27  ;;  %v376_v41 = vmul.f32 %v368_v51, %v362_v30  ;;  %v497_v49 = vpack.c.bf16 %v6915_v28, %v6921_v40 }
 0x1ad   :  { %v496_v43 = vpack.c.bf16 %v6919_v36, %v6917_v34  ;;  %v385_v44 = vadd.f32 %v380_v57, %v373_v37  ;;  %v374_v45 = vmul.f32 %v368_v51, %v354_v38 }
 0x1ae   :  { %v395_v48 = vmax.f32 %v387_v39, 0.0  ;;  %v388_v52 = vadd.f32 %v380_v57, %v376_v41 }
 0x1af   :  { %622 = vmatmul.mubr.bf16.vlgmr.msra.gmra.mrb[8].mxu1 %v496_v43  ;;  %5618 = vmatprep.mubr.bf16.mxu0 %v496_v43  ;;  %v393_v53 = vmax.f32 %v385_v44, 0.0  ;;  %v386_v54 = vadd.f32 %v380_v57, %v374_v45 }
 0x1b0   :  { %5619 = vmatmul.mubr.bf16.vlgmr.msra.gmra.mrb[0].mxu0 %v497_v49  ;;  %v396_v56 = vmax.f32 %v388_v52, 0.0  ;;  %631 = vmatprep.mubr.bf16.mxu1 %v6619_v29  ;;  %v6932_v51 = vadd.f32 %v475_v42, %v395_v48 }
 0x1b1   :  { %v394_v58 = vmax.f32 %v386_v54, 0.0  ;;  %v6934_v59 = vadd.f32 %v467_v47, %v393_v53 }
 0x1b2   :  { %v6936_v60 = vadd.f32 %v479_v50, %v396_v56 }
 0x1b3   :  { %v6938_v61 = vadd.f32 %v471_v55, %v394_v58 }
 0x1b4   :  { %v499_v62 = vpack.c.bf16 %v6936_v60, %v6932_v51 }
 0x1b5   :  { %v498_v57 = vpack.c.bf16 %v6938_v61, %v6934_v59 }
 0x1b7   :  { %632 = vmatmul.mubr.bf16.gmra.mrb[12].mxu1 %v497_v49  ;;  %5622 = vmatprep.mubr.bf16.mxu0 %v498_v57 }
 0x1b8   :  { %641 = vmatprep.mubr.bf16.mxu1 %v6619_v29  ;;  %5623 = vmatmul.mubr.bf16.gmra.mrb[4].mxu0 %v499_v62 }
 0x1b9   :  { %5628 = vmatprep.mubr.msk.bf16.mxu0 %vm6622_vm3, %v8174_v63 }
 0x1bf   :  { %642 = vmatmul.mubr.bf16.gmra.mrb[16].mxu1 %v498_v57 }
 0x1c0   :  { %651 = vmatprep.mubr.bf16.mxu1 %v6619_v29  ;;  %v6955_v29 = vrot.slane %v572_v0, %v6904_v46 }
 0x1c7   :  { %652 = vmatmul.mubr.bf16.gmra.mrb[20].mxu1 %v499_v62 }
 0x1c8   :  { %5640 = vmatprep.mubr.msk.bf16.mxu1 %vm6622_vm3, %v8174_v63 }
 0x282   :  { %v623_v5 = vpop.f32.mrb[8].mxu1 }
 0x283   :  { %v624_v6 = vadd.f32 %v623_v5, %v6955_v29  ;;  %v625_v7 = vpop.f32.mrb[9].mxu1  ;;  %v5620_v8 = vpop.f32.mrb[0].mxu0 }
 0x284   :  { %v626_v9 = vadd.f32 %v625_v7, %v6957_v3  ;;  %v6964_v10 = vadd.f32 %v5620_v8, %v6959_v4  ;;  %v627_v11 = vpop.f32.mrb[10].mxu1  ;;  %v6966_v12 = vpop.f32.mrb[1].mxu0 }
 0x285   :  { %v628_v35 = vadd.f32 %v627_v11, %v6955_v29  ;;  %v629_v46 = vpop.f32.mrb[11].mxu1  ;;  %v5621_v13 = vpop.f32.mrb[2].mxu0  ;;  %v6991_v38 = vpack.c.bf16 %v624_v6, %v624_v6 }
 0x286   :  { %v6969_v14 = vpack.c.bf16 %v626_v9, %v626_v9  ;;  %v6972_v15 = vadd.f32 %v5621_v13, %v6959_v4  ;;  %v6974_v16 = vpop.f32.mrb[3].mxu0  ;;  %v630_v17 = vadd.f32 %v629_v46, %v6957_v3 }
 0x287   :  { %v7017_v58 = vpack.c.bf16 %v628_v35, %v628_v35 }
 0x288   :  { %v760_v18 = vsel %vm755_vm4, %v6969_v14, 0  ;;  %v6981_v23 = vpack.c.bf16 %v630_v17, %v630_v17 }
 0x289   :  { %5627 = vmatpush3.bf16.xpose.msra.mxu0 %v760_v18 }
 0x28a   :  { %v633_v19 = vpop.f32.mrb[12].mxu1  ;;  %5632 = vmatprep.subr.bf16.mxu0 %v8174_v63  ;;  %v806_v45 = vsel %vm755_vm4, %v6981_v23, 0 }
 0x28b   :  { %v634_v20 = vadd.f32 %v633_v19, %v6955_v29  ;;  %v635_v21 = vpop.f32.mrb[13].mxu1  ;;  %v5624_v22 = vpop.f32.mrb[4].mxu0  ;;  %v697_v19 = vadd.f32 %v6966_v12, %v6959_v4 }
 0x28c   :  { %v636_v24 = vadd.f32 %v635_v21, %v6957_v3  ;;  %v637_v25 = vpop.f32.mrb[14].mxu1  ;;  %v6985_v26 = vadd.f32 %v5624_v22, %v6959_v4  ;;  %v712_v27 = vpop.f32.mrb[5].mxu0 }
 0x28d   :  { %v638_v30 = vadd.f32 %v637_v25, %v6955_v29  ;;  %v639_v31 = vpop.f32.mrb[15].mxu1  ;;  %v6989_v33 = vadd.f32 %v712_v27, %v6959_v4  ;;  %v5625_v37 = vpop.f32.mrb[6].mxu0  ;;  %v7019_v62 = vpack.c.bf16 %v634_v20, %v634_v20  ;;  %v7066_v12 = vpack.c.bf16 %v697_v19, %v697_v19 }
 0x28e   :  { %v6993_v39 = vpack.c.bf16 %v636_v24, %v636_v24  ;;  %v6996_v41 = vadd.f32 %v5625_v37, %v6959_v4  ;;  %v715_v42 = vpop.f32.mrb[7].mxu0  ;;  %v640_v44 = vadd.f32 %v639_v31, %v6957_v3  ;;  %v700_v25 = vadd.f32 %v6974_v16, %v6959_v4 }
 0x28f   :  { %v6999_v43 = vadd.f32 %v715_v42, %v6959_v4  ;;  %v7043_v13 = vpack.c.bf16 %v638_v30, %v638_v30  ;;  %v1242_v30 = vsel %vm1240_vm5, %v7066_v12, 0  ;;  %v728_v37 = vand.u32 127, %v365_v32 }
 0x290   :  { %5629 = vmatmul.mubr.msk.bf16.vlgmr.msra.gmra.mrb[8].mxu0 %vm755_vm4, %v6991_v38  ;;  %v852_v47 = vsel %vm755_vm4, %v6993_v39, 0  ;;  %v7013_v50 = vpack.c.bf16 %v640_v44, %v640_v44  ;;  %v7090_v4 = vpack.c.bf16 %v700_v25, %v700_v25  ;;  %v6623_v42 = vmov -1e+30  }
 0x291   :  { %5633 = vmatpush3.bf16.xpose.msra.mxu0 %v806_v45  ;;  %5639 = vmatpush3.bf16.xpose.msra.mxu1 %v852_v47  ;;  %vm729_vm6 = vcmp.lt.s32.totalorder %v728_v37, 2 }
 0x292   :  { %v643_v48 = vpop.f32.mrb[16].mxu1  ;;  %5634 = vmatprep.mubr.msk.bf16.mxu0 %vm6622_vm3, %v8174_v63  ;;  %5644 = vmatprep.subr.bf16.mxu0 %v8174_v63  ;;  %v898_v1 = vsel %vm755_vm4, %v7013_v50, 0  ;;  %v1288_v31 = vsel %vm1240_vm5, %v7090_v4, 0  ;;  %v7102_v44 = vsel %vm729_vm6, 0.0, %v6623_v42 }
 0x293   :  { %v644_v49 = vadd.f32 %v643_v48, %v6955_v29  ;;  %v645_v52 = vpop.f32.mrb[17].mxu1  ;;  %5650 = vmatprep.subr.bf16.mxu1 %v8174_v63 }
 0x294   :  { %v646_v53 = vadd.f32 %v645_v52, %v6957_v3  ;;  %v647_v54 = vpop.f32.mrb[18].mxu1 }
 0x295   :  { %v648_v55 = vadd.f32 %v647_v54, %v6955_v29  ;;  %v649_v56 = vpop.f32.mrb[19].mxu1  ;;  %v7045_v17 = vpack.c.bf16 %v644_v49, %v644_v49 }
 0x296   :  { %v7021_v57 = vpack.c.bf16 %v646_v53, %v646_v53  ;;  %v650_v0 = vadd.f32 %v649_v56, %v6957_v3 }
 0x297   :  { %v7070_v24 = vpack.c.bf16 %v648_v55, %v648_v55 }
 0x298   :  { %5635 = vmatmul.mubr.msk.bf16.vlgmr.msra.gmra.mrb[12].mxu0 %vm755_vm4, %v7017_v58  ;;  %5641 = vmatmul.mubr.msk.bf16.vlgmr.msra.gmra.mrb[24].mxu1 %vm755_vm4, %v7019_v62  ;;  %v944_v2 = vsel %vm755_vm4, %v7021_v57, 0  ;;  %v7039_v8 = vpack.c.bf16 %v650_v0, %v650_v0 }
 0x299   :  { %5645 = vmatpush3.bf16.xpose.msra.mxu0 %v898_v1  ;;  %5651 = vmatpush3.bf16.xpose.msra.mxu1 %v944_v2 }
 0x29a   :  { %v653_v5 = vpop.f32.mrb[20].mxu1  ;;  %5646 = vmatprep.mubr.msk.bf16.mxu0 %vm6622_vm3, %v8174_v63  ;;  %5652 = vmatprep.mubr.msk.bf16.mxu1 %vm6622_vm3, %v8174_v63  ;;  %v990_v20 = vsel %vm755_vm4, %v7039_v8, 0 }
 0x29b   :  { %v654_v6 = vadd.f32 %v653_v5, %v6955_v29  ;;  %v655_v7 = vpop.f32.mrb[21].mxu1  ;;  %5656 = vmatprep.subr.bf16.mxu0 %v8174_v63  ;;  %5662 = vmatprep.subr.bf16.mxu1 %v8174_v63 }
 0x29c   :  { %v656_v9 = vadd.f32 %v655_v7, %v6957_v3  ;;  %v657_v11 = vpop.f32.mrb[22].mxu1 }
 0x29d   :  { %v658_v35 = vadd.f32 %v657_v11, %v6955_v29  ;;  %v659_v46 = vpop.f32.mrb[23].mxu1 }
 0x29e   :  { %v7047_v18 = vpack.c.bf16 %v656_v9, %v656_v9  ;;  %v660_v21 = vadd.f32 %v659_v46, %v6957_v3  ;;  %v7072_v3 = vpack.c.bf16 %v654_v6, %v654_v6 }
 0x29f   :  { %v7092_v16 = vpack.c.bf16 %v658_v35, %v658_v35 }
 0x2a0   :  { %5647 = vmatmul.mubr.msk.bf16.vlgmr.msra.gmra.mrb[16].mxu0 %vm755_vm4, %v7043_v13  ;;  %5653 = vmatmul.mubr.msk.bf16.vlgmr.msra.gmra.mrb[28].mxu1 %vm755_vm4, %v7045_v17  ;;  %v1036_v29 = vsel %vm755_vm4, %v7047_v18, 0  ;;  %v7068_v22 = vpack.c.bf16 %v660_v21, %v660_v21 }
 0x2a1   :  { %5657 = vmatpush3.bf16.xpose.msra.mxu0 %v990_v20  ;;  %5663 = vmatpush3.bf16.xpose.msra.mxu1 %v1036_v29 }
 0x2a2   :  { %5658 = vmatprep.mubr.msk.bf16.mxu0 %vm6622_vm3, %v8174_v63  ;;  %5664 = vmatprep.mubr.msk.bf16.mxu1 %vm6622_vm3, %v8174_v63  ;;  %v1082_v27 = vsel %vm755_vm4, %v7068_v22, 0 }
 0x2a3   :  { %5668 = vmatprep.subr.bf16.mxu0 %v8174_v63  ;;  %5674 = vmatprep.subr.bf16.mxu1 %v8174_v63 }
 0x2a8   :  { %5659 = vmatmul.mubr.msk.bf16.vlgmr.msra.gmra.mrb[20].mxu0 %vm755_vm4, %v7070_v24  ;;  %5665 = vmatmul.mubr.msk.bf16.vlgmr.msra.gmra.mrb[32].mxu1 %vm755_vm4, %v7072_v3 }
 0x2a9   :  { %5669 = vmatpush3.bf16.xpose.msra.mxu0 %v1082_v27  ;;  %5675 = vmatpush3.bf16.msra.mxu1 %v1242_v30 }
 0x2aa   :  { %5670 = vmatprep.mubr.msk.bf16.mxu0 %vm6622_vm3, %v8174_v63  ;;  %5680 = vmatprep.subr.bf16.mxu0 %v8174_v63 }
 0x2ab   :  { %5676 = vmatprep.mubr.msk.bf16.mxu1 %vm6622_vm3, %v8174_v63  ;;  %5686 = vmatprep.subr.bf16.mxu1 %v8174_v63 }
 0x2b0   :  { %5671 = vmatmul.mubr.msk.bf16.vlgmr.msra.gmra.mrb[24].mxu0 %vm755_vm4, %v7092_v16 }
 0x2b1   :  { %5681 = vmatpush3.bf16.msra.mxu0 %v1288_v31  ;;  %5682 = vmatprep.mubr.msk.bf16.mxu0 %vm6622_vm3, %v8174_v63 }
 0x2b2   :  { %5692 = vmatprep.subr.bf16.mxu0 %v8174_v63 }
 0x363   :  { %v796_v45 = vpop.f32.mrb[8].mxu0 }
 0x364   :  { %v1124_v47 = vmul.f32 0.17677669, %v796_v45  ;;  %v5630_v48 = vpop.f32.mrb[9].mxu0 }
 0x365   :  { %v799_v49 = vpop.f32.mrb[10].mxu0 }
 0x366   :  { %v5631_v52 = vpop.f32.mrb[11].mxu0  ;;  %v1132_v53 = vadd.f32 %v1124_v47, %v7102_v44 }
 0x368   :  { %v1141_v54 = vsel %vm1140_vm7, %v1132_v53, -inf }
 0x369   :  { %1142 = vmax.xlane.f32.xlu0 %v1141_v54 }
 0x36b   :  { %v842_v55 = vpop.f32.mrb[12].mxu0  ;;  %v888_v56 = vpop.f32.mrb[24].mxu1 }
 0x36c   :  { %v1125_v0 = vmul.f32 0.17677669, %v842_v55  ;;  %v1126_v1 = vmul.f32 0.17677669, %v888_v56  ;;  %v5636_v32 = vpop.f32.mrb[13].mxu0  ;;  %v5642_v2 = vpop.f32.mrb[25].mxu1 }
 0x36d   :  { %v845_v5 = vpop.f32.mrb[14].mxu0  ;;  %v891_v6 = vpop.f32.mrb[26].mxu1 }
 0x36e   :  { %v5637_v7 = vpop.f32.mrb[15].mxu0  ;;  %v5643_v9 = vpop.f32.mrb[27].mxu1  ;;  %v1134_v11 = vadd.f32 %v1126_v1, %v7102_v44  ;;  %v1133_v35 = vadd.f32 %v1125_v0, %v7102_v44 }
 0x370   :  { %v1147_v46 = vsel %vm1140_vm7, %v1134_v11, -inf  ;;  %v1144_v19 = vsel %vm1140_vm7, %v1133_v35, -inf }
 0x371   :  { %1148 = vmax.xlane.f32.xlu1 %v1147_v46  ;;  %1145 = vmax.xlane.f32.xlu0 %v1144_v19 }
 0x373   :  { %v934_v20 = vpop.f32.mrb[16].mxu0  ;;  %v980_v29 = vpop.f32.mrb[28].mxu1 }
 0x374   :  { %v1127_v21 = vmul.f32 0.17677669, %v934_v20  ;;  %v1128_v25 = vmul.f32 0.17677669, %v980_v29  ;;  %v5648_v27 = vpop.f32.mrb[17].mxu0  ;;  %v5654_v30 = vpop.f32.mrb[29].mxu1 }
 0x375   :  { %v937_v31 = vpop.f32.mrb[18].mxu0  ;;  %v983_v37 = vpop.f32.mrb[30].mxu1 }
 0x376   :  { %v5649_v42 = vpop.f32.mrb[19].mxu0  ;;  %v1136_v45 = vadd.f32 %v1128_v25, %v7102_v44  ;;  %v1135_v47 = vadd.f32 %v1127_v21, %v7102_v44  ;;  %v5655_v48 = vpop.f32.mrb[31].mxu1 }
 0x378   :  { %v1153_v49 = vsel %vm1140_vm7, %v1136_v45, -inf  ;;  %v1150_v52 = vsel %vm1140_vm7, %v1135_v47, -inf }
 0x379   :  { %1154 = vmax.xlane.f32.xlu0 %v1153_v49  ;;  %1151 = vmax.xlane.f32.xlu1 %v1150_v52 }
 0x37b   :  { %v1026_v54 = vpop.f32.mrb[20].mxu0  ;;  %v1072_v55 = vpop.f32.mrb[32].mxu1 }
 0x37c   :  { %v1129_v56 = vmul.f32 0.17677669, %v1026_v54  ;;  %v1130_v0 = vmul.f32 0.17677669, %v1072_v55  ;;  %v5660_v1 = vpop.f32.mrb[21].mxu0  ;;  %v5666_v32 = vpop.f32.mrb[33].mxu1 }
 0x37d   :  { %v1029_v2 = vpop.f32.mrb[22].mxu0  ;;  %v1075_v5 = vpop.f32.mrb[34].mxu1 }
 0x37e   :  { %v5661_v6 = vpop.f32.mrb[23].mxu0  ;;  %v5667_v7 = vpop.f32.mrb[35].mxu1  ;;  %v1138_v9 = vadd.f32 %v1130_v0, %v7102_v44  ;;  %v1137_v46 = vadd.f32 %v1129_v56, %v7102_v44 }
 0x380   :  { %v1159_v19 = vsel %vm1140_vm7, %v1138_v9, -inf  ;;  %v1156_v20 = vsel %vm1140_vm7, %v1137_v46, -inf }
 0x381   :  { %1160 = vmax.xlane.f32.xlu0 %v1159_v19  ;;  %1157 = vmax.xlane.f32.xlu1 %v1156_v20 }
 0x383   :  { %v1118_v29 = vpop.f32.mrb[24].mxu0 }
 0x384   :  { %v1131_v21 = vmul.f32 0.17677669, %v1118_v29  ;;  %v5672_v25 = vpop.f32.mrb[25].mxu0 }
 0x385   :  { %v1121_v27 = vpop.f32.mrb[26].mxu0 }
 0x386   :  { %v5673_v30 = vpop.f32.mrb[27].mxu0  ;;  %v1139_v31 = vadd.f32 %v1131_v21, %v7102_v44 }
 0x388   :  { %v1162_v37 = vsel %vm1140_vm7, %v1139_v31, -inf }
 0x389   :  { %1163 = vmax.xlane.f32.xlu1 %v1162_v37 }
 0x3f6   :  { %v1143_v42 = vpop.xlane.xlu0 %1142 }
 0x3f7   :  { %v1165_v48 = vsub.f32 %v1132_v53, %v1143_v42 }
 0x3f9   :  { %v1173_v49 = vmul.f32 1.442695, %v1165_v48 }
 0x3fb   :  { %6178 = vpow2.f32 %v1173_v49 }
 0x3fe   :  { %v1149_v52 = vpop.xlane.xlu1 %1148  ;;  %v1146_v54 = vpop.xlane.xlu0 %1145 }
 0x3ff   :  { %v1167_v55 = vsub.f32 %v1134_v11, %v1149_v52  ;;  %v1166_v56 = vsub.f32 %v1133_v35, %v1146_v54 }
 0x401   :  { %v1177_v0 = vmul.f32 1.442695, %v1167_v55  ;;  %v1175_v1 = vmul.f32 1.442695, %v1166_v56 }
 0x403   :  { %6180 = vpow2.f32 %v1177_v0 }
 0x404   :  { %6182 = vpow2.f32 %v1175_v1 }
 0x405   :  { %v7120_v32 = vpop.eup %6178 }
 0x406   :  { %v1155_v2 = vpop.xlane.xlu0 %1154  ;;  %v1152_v5 = vpop.xlane.xlu1 %1151  ;;  %v1189_v6 = vsel %vm1140_vm7, %v7120_v32, 0.0 }
 0x407   :  { %v1169_v7 = vsub.f32 %v1136_v45, %v1155_v2  ;;  %v1168_v19 = vsub.f32 %v1135_v47, %v1152_v5  ;;  %1190 = vadd.xlane.f32.xlu0 %v1189_v6 }
 0x409   :  { %v1181_v53 = vmul.f32 1.442695, %v1169_v7  ;;  %v1179_v20 = vmul.f32 1.442695, %v1168_v19 }
 0x40b   :  { %6184 = vpow2.f32 %v1181_v53  ;;  %v7186_v53 = vpack.c.bf16 %v6964_v10, %v6964_v10 }
 0x40c   :  { %6186 = vpow2.f32 %v1179_v20 }
 0x40d   :  { %v7124_v11 = vpop.eup %6180 }
 0x40e   :  { %v7126_v35 = vpop.eup %6182  ;;  %v1161_v29 = vpop.xlane.xlu0 %1160  ;;  %v1195_v25 = vsel %vm1140_vm7, %v7124_v11, 0.0 }
 0x40f   :  { %v1158_v21 = vpop.xlane.xlu1 %1157  ;;  %v1171_v27 = vsub.f32 %v1138_v9, %v1161_v29  ;;  %1196 = vadd.xlane.f32.xlu0 %v1195_v25  ;;  %v1192_v45 = vsel %vm1140_vm7, %v7126_v35, 0.0 }
 0x410   :  { %v1170_v30 = vsub.f32 %v1137_v46, %v1158_v21  ;;  %1193 = vadd.xlane.f32.xlu1 %v1192_v45  ;;  %v1334_v21 = vsel %vm1240_vm5, %v7186_v53, 0 }
 0x411   :  { %v1185_v47 = vmul.f32 1.442695, %v1171_v27 }
 0x412   :  { %v1183_v37 = vmul.f32 1.442695, %v1170_v30 }
 0x413   :  { %6188 = vpow2.f32 %v1185_v47  ;;  %v7202_v47 = vpack.c.bf16 %v6972_v15, %v6972_v15 }
 0x414   :  { %6190 = vpow2.f32 %v1183_v37 }
 0x415   :  { %v7132_v42 = vpop.eup %6184 }
 0x416   :  { %v7134_v48 = vpop.eup %6186  ;;  %v1201_v49 = vsel %vm1140_vm7, %v7132_v42, 0.0  ;;  %v1164_v56 = vpop.xlane.xlu1 %1163 }
 0x417   :  { %1202 = vadd.xlane.f32.xlu0 %v1201_v49  ;;  %v1198_v9 = vsel %vm1140_vm7, %v7134_v48, 0.0  ;;  %v1172_v0 = vsub.f32 %v1139_v31, %v1164_v56  ;;  %v7218_v56 = vpack.c.bf16 %v6985_v26, %v6985_v26 }
 0x418   :  { %1199 = vadd.xlane.f32.xlu1 %v1198_v9 }
 0x419   :  { %v1187_v1 = vmul.f32 1.442695, %v1172_v0 }
 0x41b   :  { %6192 = vpow2.f32 %v1187_v1  ;;  %v7224_v1 = vpack.c.bf16 %v6999_v43, %v6999_v43 }
 0x41d   :  { %v7140_v46 = vpop.eup %6188  ;;  %v1472_v26 = vsel %vm1240_vm5, %v7224_v1, 0 }
 0x41e   :  { %v7142_v52 = vpop.eup %6190  ;;  %v1207_v54 = vsel %vm1140_vm7, %v7140_v46, 0.0 }
 0x41f   :  { %1208 = vadd.xlane.f32.xlu0 %v1207_v54  ;;  %v1204_v55 = vsel %vm1140_vm7, %v7142_v52, 0.0 }
 0x420   :  { %1205 = vadd.xlane.f32.xlu1 %v1204_v55 }
 0x425   :  { %v7166_v2 = vpop.eup %6192 }
 0x426   :  { %v1210_v5 = vsel %vm1140_vm7, %v7166_v2, 0.0 }
 0x431   :  { %1672 = vrot.lane.b32.xlu1 %v6981_v23, %s6624_s3 }
 0x435   :  { %1617 = vrot.lane.b32.xlu1 %v6991_v38, %s6624_s3  ;;  %1620 = vrot.lane.b32.xlu0 %v6969_v14, %s6624_s3 }
 0x439   :  { %1724 = vrot.lane.b32.xlu0 %v6993_v39, %s6624_s3 }
 0x43d   :  { %1721 = vrot.lane.b32.xlu0 %v7019_v62, %s6624_s3 }
 0x441   :  { %1828 = vrot.lane.b32.xlu0 %v7021_v57, %s6624_s3 }
 0x445   :  { %1825 = vrot.lane.b32.xlu0 %v7045_v17, %s6624_s3 }
 0x449   :  { %1932 = vrot.lane.b32.xlu0 %v7047_v18, %s6624_s3 }
 0x44d   :  { %1929 = vrot.lane.b32.xlu0 %v7072_v3, %s6624_s3 }
 0x459   :  { %1211 = vadd.xlane.f32.xlu1 %v1210_v5 }
 0x46a   :  { %1669 = vrot.lane.b32.xlu1 %v7017_v58, %s6624_s3 }
 0x46e   :  { %1776 = vrot.lane.b32.xlu1 %v7013_v50, %s6624_s3 }
 0x472   :  { %1773 = vrot.lane.b32.xlu1 %v7043_v13, %s6624_s3 }
 0x476   :  { %1880 = vrot.lane.b32.xlu1 %v7039_v8, %s6624_s3 }
 0x47a   :  { %1877 = vrot.lane.b32.xlu1 %v7070_v24, %s6624_s3 }
 0x47e   :  { %1984 = vrot.lane.b32.xlu1 %v7068_v22, %s6624_s3 }
 0x482   :  { %1981 = vrot.lane.b32.xlu1 %v7092_v16, %s6624_s3 }
 0x494   :  { %v1191_v31 = vpop.xlane.xlu0 %1190 }
 0x495   :  { %6194 = vrcp.f32 %v1191_v31 }
 0x49c   :  { %v1197_v6 = vpop.xlane.xlu0 %1196 }
 0x49d   :  { %6196 = vrcp.f32 %v1197_v6  ;;  %v1194_v7 = vpop.xlane.xlu1 %1193 }
 0x49e   :  { %6198 = vrcp.f32 %v1194_v7 }
 0x49f   :  { %v6195_v19 = vpop.eup %6194 }
 0x4a0   :  { %v1221_v20 = vmul.f32 %v6195_v19, %v7120_v32  ;;  %v7197_v32 = vpack.c.bf16 %v6989_v33, %v6989_v33  ;;  %v1380_v33 = vsel %vm1240_vm5, %v7202_v47, 0  ;;  %v1518_v19 = vsel %vm1240_vm5, %v7218_v56, 0 }
 0x4a2   :  { %v1229_v29 = vpack.c.bf16 %v1221_v20, %v1221_v20  ;;  %v1426_v54 = vsel %vm1240_vm5, %v7197_v32, 0  ;;  %v7242_v20 = vpack.c.bf16 %v6996_v41, %v6996_v41 }
 0x4a4   :  { %5677 = vmatmul.mubr.msk.bf16.vlgmr.msra.gmra.mrb[36].mxu1 %vm1140_vm7, %v1229_v29  ;;  %v1203_v25 = vpop.xlane.xlu0 %1202 }
 0x4a5   :  { %5687 = vmatpush3.bf16.msra.mxu1 %v1334_v21  ;;  %6200 = vrcp.f32 %v1203_v25  ;;  %v1200_v27 = vpop.xlane.xlu1 %1199  ;;  %5688 = vmatprep.mubr.msk.bf16.mxu1 %vm6622_vm3, %v8174_v63 }
 0x4a6   :  { %6202 = vrcp.f32 %v1200_v27  ;;  %5698 = vmatprep.subr.bf16.mxu1 %v8174_v63 }
 0x4a7   :  { %v6197_v10 = vpop.eup %6196 }
 0x4a8   :  { %v6199_v30 = vpop.eup %6198  ;;  %v1223_v45 = vmul.f32 %v6197_v10, %v7124_v11 }
 0x4a9   :  { %v1222_v37 = vmul.f32 %v6199_v30, %v7126_v35 }
 0x4aa   :  { %v1231_v49 = vpack.c.bf16 %v1223_v45, %v1223_v45 }
 0x4ab   :  { %v1230_v9 = vpack.c.bf16 %v1222_v37, %v1222_v37 }
 0x4ac   :  { %5689 = vmatmul.mubr.msk.bf16.vlgmr.msra.gmra.mrb[40].mxu1 %vm1140_vm7, %v1231_v49  ;;  %v1209_v55 = vpop.xlane.xlu0 %1208 }
 0x4ad   :  { %5699 = vmatpush3.bf16.msra.mxu1 %v1426_v54  ;;  %6204 = vrcp.f32 %v1209_v55  ;;  %5683 = vmatmul.mubr.msk.bf16.vlgmr.msra.gmra.mrb[28].mxu0 %vm1140_vm7, %v1230_v9  ;;  %v1206_v11 = vpop.xlane.xlu1 %1205 }
 0x4ae   :  { %5693 = vmatpush3.bf16.msra.mxu0 %v1380_v33  ;;  %6206 = vrcp.f32 %v1206_v11  ;;  %5694 = vmatprep.mubr.msk.bf16.mxu0 %vm6622_vm3, %v8174_v63 }
 0x4af   :  { %v6201_v15 = vpop.eup %6200  ;;  %5700 = vmatprep.mubr.msk.bf16.mxu1 %vm6622_vm3, %v8174_v63  ;;  %5704 = vmatprep.subr.bf16.mxu0 %v8174_v63 }
 0x4b0   :  { %v6203_v35 = vpop.eup %6202  ;;  %5710 = vmatprep.subr.bf16.mxu1 %v8174_v63  ;;  %v1225_v0 = vmul.f32 %v6201_v15, %v7132_v42  ;;  %v1621_v7 = vpop.permute.xlu0 %1620 }
 0x4b1   :  { %v1224_v5 = vmul.f32 %v6203_v35, %v7134_v48  ;;  %v1626_v10 = vsel %vm755_vm4, %v1621_v7, 0  ;;  %v1673_v30 = vpop.permute.xlu1 %1672 }
 0x4b2   :  { %v1233_v31 = vpack.c.bf16 %v1225_v0, %v1225_v0 }
 0x4b3   :  { %v1232_v6 = vpack.c.bf16 %v1224_v5, %v1224_v5 }
 0x4b4   :  { %5701 = vmatmul.mubr.msk.bf16.vlgmr.msra.gmra.mrb[44].mxu1 %vm1140_vm7, %v1233_v31  ;;  %v1725_v21 = vpop.permute.xlu0 %1724 }
 0x4b5   :  { %5711 = vmatpush3.bf16.msra.mxu1 %v1518_v19  ;;  %5695 = vmatmul.mubr.msk.bf16.vlgmr.msra.gmra.mrb[32].mxu0 %vm1140_vm7, %v1232_v6  ;;  %v1730_v45 = vsel %vm755_vm4, %v1725_v21, 0  ;;  %v1678_v6 = vsel %vm755_vm4, %v1673_v30, 0 }
 0x4b6   :  { %5705 = vmatpush3.bf16.msra.mxu0 %v1472_v26  ;;  %5706 = vmatprep.mubr.msk.bf16.mxu0 %vm6622_vm3, %v8174_v63 }
 0x4b7   :  { %v6205_v43 = vpop.eup %6204  ;;  %5712 = vmatprep.mubr.msk.bf16.mxu1 %vm6622_vm3, %v8174_v63  ;;  %5716 = vmatprep.subr.bf16.mxu0 %v8174_v63 }
 0x4b8   :  { %v6207_v42 = vpop.eup %6206  ;;  %v1227_v48 = vmul.f32 %v6205_v43, %v7140_v46  ;;  %5722 = vmatprep.subr.bf16.mxu1 %v8174_v63  ;;  %v1564_v46 = vsel %vm1240_vm5, %v7242_v20, 0  ;;  %v1722_v41 = vpop.permute.xlu0 %1721 }
 0x4b9   :  { %v1226_v29 = vmul.f32 %v6207_v42, %v7142_v52  ;;  %v1618_v52 = vpop.permute.xlu1 %1617 }
 0x4ba   :  { %v1235_v25 = vpack.c.bf16 %v1227_v48, %v1227_v48 }
 0x4bb   :  { %v1234_v27 = vpack.c.bf16 %v1226_v29, %v1226_v29 }
 0x4bc   :  { %5713 = vmatmul.mubr.msk.bf16.vlgmr.msra.gmra.mrb[48].mxu1 %vm1140_vm7, %v1235_v25  ;;  %v1829_v37 = vpop.permute.xlu0 %1828 }
 0x4bd   :  { %5707 = vmatmul.mubr.msk.bf16.vlgmr.msra.gmra.mrb[36].mxu0 %vm1140_vm7, %v1234_v27  ;;  %5724 = vmatprep.mubr.msk.bf16.mxu1 %vm6622_vm3, %v8174_v63  ;;  %v1834_v9 = vsel %vm755_vm4, %v1829_v37, 0 }
 0x4be   :  { %5717 = vmatpush3.bf16.msra.mxu0 %v1564_v46  ;;  %5723 = vmatpush3.bf16.xpose.msra.mxu1 %v1626_v10 }
 0x4bf   :  { %5734 = vmatprep.subr.bf16.mxu1 %v8174_v63  ;;  %5718 = vmatprep.mubr.msk.bf16.mxu0 %vm6622_vm3, %v8174_v63 }
 0x4c0   :  { %5728 = vmatprep.subr.bf16.mxu0 %v8174_v63  ;;  %v1826_v49 = vpop.permute.xlu0 %1825 }
 0x4c4   :  { %v1933_v54 = vpop.permute.xlu0 %1932 }
 0x4c5   :  { %5725 = vmatmul.mubr.msk.bf16.vlgmr.msra.gmra.mrb[52].mxu1 %vm755_vm4, %v1618_v52  ;;  %v1938_v55 = vsel %vm755_vm4, %v1933_v54, 0 }
 0x4c6   :  { %5735 = vmatpush3.bf16.xpose.msra.mxu1 %v1730_v45  ;;  %5736 = vmatprep.mubr.msk.bf16.mxu1 %vm6622_vm3, %v8174_v63 }
 0x4c7   :  { %5746 = vmatprep.subr.bf16.mxu1 %v8174_v63 }
 0x4c8   :  { %v1930_v33 = vpop.permute.xlu0 %1929 }
 0x4cd   :  { %5737 = vmatmul.mubr.msk.bf16.vlgmr.msra.gmra.mrb[56].mxu1 %vm755_vm4, %v1722_v41 }
 0x4ce   :  { %5747 = vmatpush3.bf16.xpose.msra.mxu1 %v1834_v9  ;;  %5748 = vmatprep.mubr.msk.bf16.mxu1 %vm6622_vm3, %v8174_v63 }
 0x4cf   :  { %5758 = vmatprep.subr.bf16.mxu1 %v8174_v63 }
 0x4d5   :  { %5749 = vmatmul.mubr.msk.bf16.vlgmr.msra.gmra.mrb[60].mxu1 %vm755_vm4, %v1826_v49 }
 0x4d6   :  { %5759 = vmatpush3.bf16.xpose.msra.mxu1 %v1938_v55  ;;  %5760 = vmatprep.mubr.msk.bf16.mxu1 %vm6622_vm3, %v8174_v63 }
 0x4d7   :  { %5770 = vmatprep.subr.bf16.mxu1 %v8174_v63 }
 0x4dd   :  { %5761 = vmatmul.mubr.msk.bf16.vlgmr.msra.gmra.mrb[64].mxu1 %vm755_vm4, %v1930_v33 }
 0x4de   :  { %5772 = vmatprep.mubr.msk.bf16.mxu1 %vm6622_vm3, %v8174_v63 }
 0x4e6   :  { %v1212_v11 = vpop.xlane.xlu1 %1211 }
 0x4e7   :  { %6208 = vrcp.f32 %v1212_v11 }
 0x4ea   :  { %v1670_v15 = vpop.permute.xlu1 %1669 }
 0x4ee   :  { %v1777_v5 = vpop.permute.xlu1 %1776 }
 0x4ef   :  { %v1782_v19 = vsel %vm755_vm4, %v1777_v5, 0 }
 0x4f1   :  { %v6209_v35 = vpop.eup %6208 }
 0x4f2   :  { %v1228_v0 = vmul.f32 %v6209_v35, %v7166_v2  ;;  %v1774_v7 = vpop.permute.xlu1 %1773 }
 0x4f4   :  { %v1236_v31 = vpack.c.bf16 %v1228_v0, %v1228_v0 }
 0x4f6   :  { %5719 = vmatmul.mubr.msk.bf16.vlgmr.msra.gmra.mrb[40].mxu0 %vm1140_vm7, %v1236_v31  ;;  %v1881_v26 = vpop.permute.xlu1 %1880 }
 0x4f7   :  { %5729 = vmatpush3.bf16.xpose.msra.mxu0 %v1678_v6  ;;  %5730 = vmatprep.mubr.msk.bf16.mxu0 %vm6622_vm3, %v8174_v63  ;;  %v1886_v43 = vsel %vm755_vm4, %v1881_v26, 0 }
 0x4f8   :  { %5740 = vmatprep.subr.bf16.mxu0 %v8174_v63 }
 0x4fa   :  { %v1878_v2 = vpop.permute.xlu1 %1877 }
 0x4fe   :  { %5731 = vmatmul.mubr.msk.bf16.vlgmr.msra.gmra.mrb[44].mxu0 %vm755_vm4, %v1670_v15  ;;  %v1985_v42 = vpop.permute.xlu1 %1984 }
 0x4ff   :  { %5741 = vmatpush3.bf16.xpose.msra.mxu0 %v1782_v19  ;;  %5742 = vmatprep.mubr.msk.bf16.mxu0 %vm6622_vm3, %v8174_v63  ;;  %v1990_v48 = vsel %vm755_vm4, %v1985_v42, 0 }
 0x500   :  { %5752 = vmatprep.subr.bf16.mxu0 %v8174_v63 }
 0x502   :  { %v1982_v29 = vpop.permute.xlu1 %1981 }
 0x506   :  { %5743 = vmatmul.mubr.msk.bf16.vlgmr.msra.gmra.mrb[48].mxu0 %vm755_vm4, %v1774_v7 }
 0x507   :  { %5753 = vmatpush3.bf16.xpose.msra.mxu0 %v1886_v43  ;;  %5754 = vmatprep.mubr.msk.bf16.mxu0 %vm6622_vm3, %v8174_v63 }
 0x508   :  { %5764 = vmatprep.subr.bf16.mxu0 %v8174_v63 }
 0x50e   :  { %5755 = vmatmul.mubr.msk.bf16.vlgmr.msra.gmra.mrb[52].mxu0 %vm755_vm4, %v1878_v2 }
 0x50f   :  { %5765 = vmatpush3.bf16.xpose.msra.mxu0 %v1990_v48  ;;  %5766 = vmatprep.mubr.msk.bf16.mxu0 %vm6622_vm3, %v8174_v63 }
 0x510   :  { %5776 = vmatprep.subr.bf16.mxu0 %v8174_v63 }
 0x516   :  { %5767 = vmatmul.mubr.msk.bf16.vlgmr.msra.gmra.mrb[56].mxu0 %vm755_vm4, %v1982_v29 }
 0x517   :  { %5778 = vmatprep.mubr.msk.bf16.mxu0 %vm6622_vm3, %v8174_v63 }
 0x577   :  { %v7298_v21 = vpop.f32.mrb[36].mxu1 }
 0x578   :  { %v5678_v25 = vpop.f32.mrb[37].mxu1 }
 0x579   :  { %v1281_v27 = vpop.f32.mrb[38].mxu1 }
 0x57a   :  { %v5679_v10 = vpop.f32.mrb[39].mxu1 }
 0x57f   :  { %v7300_v46 = vpop.f32.mrb[40].mxu1 }
 0x580   :  { %v7302_v30 = vpop.f32.mrb[28].mxu0  ;;  %v5690_v41 = vpop.f32.mrb[41].mxu1 }
 0x581   :  { %v5684_v45 = vpop.f32.mrb[29].mxu0  ;;  %v1373_v37 = vpop.f32.mrb[42].mxu1 }
 0x582   :  { %v1327_v49 = vpop.f32.mrb[30].mxu0  ;;  %v5691_v9 = vpop.f32.mrb[43].mxu1 }
 0x583   :  { %v5685_v54 = vpop.f32.mrb[31].mxu0 }
 0x587   :  { %v7306_v55 = vpop.f32.mrb[44].mxu1 }
 0x588   :  { %v7308_v33 = vpop.f32.mrb[32].mxu0  ;;  %v5702_v11 = vpop.f32.mrb[45].mxu1 }
 0x589   :  { %v5696_v35 = vpop.f32.mrb[33].mxu0  ;;  %v1465_v0 = vpop.f32.mrb[46].mxu1 }
 0x58a   :  { %v1419_v5 = vpop.f32.mrb[34].mxu0  ;;  %v5703_v31 = vpop.f32.mrb[47].mxu1 }
 0x58b   :  { %v5697_v6 = vpop.f32.mrb[35].mxu0 }
 0x58f   :  { %v7312_v7 = vpop.f32.mrb[48].mxu1 }
 0x590   :  { %v7314_v19 = vpop.f32.mrb[36].mxu0  ;;  %v5714_v26 = vpop.f32.mrb[49].mxu1 }
 0x591   :  { %v5708_v43 = vpop.f32.mrb[37].mxu0  ;;  %v1557_v42 = vpop.f32.mrb[50].mxu1 }
 0x592   :  { %v1511_v48 = vpop.f32.mrb[38].mxu0  ;;  %v5715_v29 = vpop.f32.mrb[51].mxu1 }
 0x593   :  { %v5709_v25 = vpop.f32.mrb[39].mxu0 }
 0x598   :  { %v1662_v27 = vpop.f32.mrb[52].mxu1 }
 0x599   :  { %v2032_v10 = vmul.f32 0.17677669, %v1662_v27  ;;  %v5726_v41 = vpop.f32.mrb[53].mxu1 }
 0x59a   :  { %v1665_v45 = vpop.f32.mrb[54].mxu1 }
 0x59b   :  { %v5727_v37 = vpop.f32.mrb[55].mxu1  ;;  %v7319_v49 = vadd.f32 %v2032_v10, %v7102_v44 }
 0x59d   :  { %v2048_v9 = vsel %vm1140_vm7, %v7319_v49, -inf }
 0x59e   :  { %2049 = vmax.xlane.f32.xlu0 %v2048_v9 }
 0x5a0   :  { %v1766_v54 = vpop.f32.mrb[56].mxu1 }
 0x5a1   :  { %v2034_v11 = vmul.f32 0.17677669, %v1766_v54  ;;  %v5738_v35 = vpop.f32.mrb[57].mxu1 }
 0x5a2   :  { %v1769_v0 = vpop.f32.mrb[58].mxu1 }
 0x5a3   :  { %v5739_v5 = vpop.f32.mrb[59].mxu1  ;;  %v7324_v31 = vadd.f32 %v2034_v11, %v7102_v44 }
 0x5a5   :  { %v2054_v6 = vsel %vm1140_vm7, %v7324_v31, -inf }
 0x5a6   :  { %2055 = vmax.xlane.f32.xlu0 %v2054_v6 }
 0x5a8   :  { %v1870_v26 = vpop.f32.mrb[60].mxu1 }
 0x5a9   :  { %v5750_v43 = vpop.f32.mrb[61].mxu1 }
 0x5aa   :  { %v1873_v42 = vpop.f32.mrb[62].mxu1 }
 0x5ab   :  { %v5751_v48 = vpop.f32.mrb[63].mxu1 }
 0x5b0   :  { %v1974_v29 = vpop.f32.mrb[64].mxu1 }
 0x5b1   :  { %v5762_v25 = vpop.f32.mrb[65].mxu1 }
 0x5b2   :  { %v1977_v27 = vpop.f32.mrb[66].mxu1  ;;  %v2036_v25 = vmul.f32 0.17677669, %v1870_v26 }
 0x5b3   :  { %v5763_v10 = vpop.f32.mrb[67].mxu1 }
 0x5c9   :  { %v7328_v41 = vpop.f32.mrb[40].mxu0 }
 0x5ca   :  { %v5720_v37 = vpop.f32.mrb[41].mxu0 }
 0x5cb   :  { %v1603_v9 = vpop.f32.mrb[42].mxu0 }
 0x5cc   :  { %v5721_v54 = vpop.f32.mrb[43].mxu0  ;;  %v2038_v9 = vmul.f32 0.17677669, %v1974_v29 }
 0x5ce   :  { %v2046_v26 = vadd.f32 %v2038_v9, %v7102_v44 }
 0x5d0   :  { %v2066_v29 = vsel %vm1140_vm7, %v2046_v26, -inf }
 0x5d1   :  { %v1714_v11 = vpop.f32.mrb[44].mxu0 }
 0x5d2   :  { %v2033_v35 = vmul.f32 0.17677669, %v1714_v11  ;;  %v5732_v0 = vpop.f32.mrb[45].mxu0  ;;  %v2044_v11 = vadd.f32 %v2036_v25, %v7102_v44 }
 0x5d3   :  { %v1717_v5 = vpop.f32.mrb[46].mxu0 }
 0x5d4   :  { %v5733_v6 = vpop.f32.mrb[47].mxu0  ;;  %v2041_v43 = vadd.f32 %v2033_v35, %v7102_v44 }
 0x5d5   :  { %v2060_v6 = vsel %vm1140_vm7, %v2044_v11, -inf }
 0x5d6   :  { %v2051_v42 = vsel %vm1140_vm7, %v2041_v43, -inf }
 0x5d7   :  { %2052 = vmax.xlane.f32.xlu1 %v2051_v42 }
 0x5d9   :  { %v1818_v48 = vpop.f32.mrb[48].mxu0 }
 0x5da   :  { %v2035_v27 = vmul.f32 0.17677669, %v1818_v48  ;;  %v5744_v10 = vpop.f32.mrb[49].mxu0 }
 0x5db   :  { %v1821_v2 = vpop.f32.mrb[50].mxu0 }
 0x5dc   :  { %v5745_v15 = vpop.f32.mrb[51].mxu0  ;;  %v7335_v37 = vadd.f32 %v2035_v27, %v7102_v44 }
 0x5de   :  { %v2057_v54 = vsel %vm1140_vm7, %v7335_v37, -inf }
 0x5df   :  { %2058 = vmax.xlane.f32.xlu0 %v2057_v54 }
 0x5e1   :  { %v1922_v35 = vpop.f32.mrb[52].mxu0 }
 0x5e2   :  { %v2037_v0 = vmul.f32 0.17677669, %v1922_v35  ;;  %v5756_v5 = vpop.f32.mrb[53].mxu0 }
 0x5e3   :  { %2061 = vmax.xlane.f32.xlu0 %v2060_v6  ;;  %v1925_v2 = vpop.f32.mrb[54].mxu0 }
 0x5e4   :  { %v5757_v15 = vpop.f32.mrb[55].mxu0  ;;  %v7343_v42 = vadd.f32 %v2037_v0, %v7102_v44 }
 0x5e6   :  { %v2063_v48 = vsel %vm1140_vm7, %v7343_v42, -inf }
 0x5e7   :  { %2067 = vmax.xlane.f32.xlu0 %v2066_v29  ;;  %2064 = vmax.xlane.f32.xlu1 %v2063_v48 }
 0x5e9   :  { %v2026_v25 = vpop.f32.mrb[56].mxu0 }
 0x5ea   :  { %v5768_v27 = vpop.f32.mrb[57].mxu0  ;;  %v2039_v9 = vmul.f32 0.17677669, %v2026_v25 }
 0x5eb   :  { %v2029_v10 = vpop.f32.mrb[58].mxu0 }
 0x5ec   :  { %v5769_v54 = vpop.f32.mrb[59].mxu0  ;;  %v7355_v35 = vadd.f32 %v2039_v9, %v7102_v44 }
 0x5ee   :  { %v2069_v0 = vsel %vm1140_vm7, %v7355_v35, -inf }
 0x5f8   :  { %2194 = vrot.lane.b32.xlu1 %v7090_v4, %s6624_s3 }
 0x5fc   :  { %2243 = vrot.lane.b32.xlu1 %v7186_v53, %s6624_s3 }
 0x5fd   :  { %2145 = vrot.lane.b32.xlu0 %v7066_v12, %s6624_s3 }
 0x620   :  { %2070 = vmax.xlane.f32.xlu1 %v2069_v0 }
 0x62b   :  { %v2050_v5 = vpop.xlane.xlu0 %2049 }
 0x62c   :  { %v2072_v6 = vsub.f32 %v7319_v49, %v2050_v5 }
 0x62e   :  { %v2080_v2 = vmul.f32 1.442695, %v2072_v6 }
 0x630   :  { %6210 = vpow2.f32 %v2080_v2 }
 0x631   :  { %2292 = vrot.lane.b32.xlu1 %v7202_v47, %s6624_s3 }
 0x633   :  { %v2056_v15 = vpop.xlane.xlu0 %2055 }
 0x634   :  { %v2074_v29 = vsub.f32 %v7324_v31, %v2056_v15 }
 0x636   :  { %v2084_v48 = vmul.f32 1.442695, %v2074_v29 }
 0x638   :  { %6212 = vpow2.f32 %v2084_v48 }
 0x63a   :  { %v7363_v25 = vpop.eup %6210 }
 0x63b   :  { %v2096_v27 = vsel %vm1140_vm7, %v7363_v25, 0.0 }
 0x63c   :  { %2097 = vadd.xlane.f32.xlu0 %v2096_v27 }
 0x642   :  { %v7367_v10 = vpop.eup %6212 }
 0x643   :  { %v2102_v49 = vsel %vm1140_vm7, %v7367_v10, 0.0 }
 0x644   :  { %2103 = vadd.xlane.f32.xlu0 %v2102_v49 }
 0x65a   :  { %2341 = vrot.lane.b32.xlu0 %v7197_v32, %s6624_s3 }
 0x664   :  { %v2053_v54 = vpop.xlane.xlu1 %2052 }
 0x665   :  { %v2073_v9 = vsub.f32 %v2041_v43, %v2053_v54 }
 0x667   :  { %v2082_v31 = vmul.f32 1.442695, %v2073_v9 }
 0x669   :  { %6214 = vpow2.f32 %v2082_v31 }
 0x66c   :  { %v2059_v0 = vpop.xlane.xlu0 %2058 }
 0x670   :  { %v2062_v5 = vpop.xlane.xlu0 %2061 }
 0x671   :  { %v2076_v6 = vsub.f32 %v2044_v11, %v2062_v5  ;;  %v8181_v11 = vmov 0.0  }
 0x672   :  { %190 = vst.msk [vmem:[#allocation3] sm:$0xff] %vm189_vm8, %v8181_v11 }
 0x673   :  { %v7373_v2 = vpop.eup %6214  ;;  %v2088_v15 = vmul.f32 1.442695, %v2076_v6 }
 0x674   :  { %v2068_v29 = vpop.xlane.xlu0 %2067  ;;  %v2065_v48 = vpop.xlane.xlu1 %2064  ;;  %v2099_v27 = vsel %vm1140_vm7, %v7373_v2, 0.0 }
 0x675   :  { %6216 = vpow2.f32 %v2088_v15  ;;  %v2078_v49 = vsub.f32 %v2046_v26, %v2068_v29  ;;  %2100 = vadd.xlane.f32.xlu1 %v2099_v27  ;;  %v2077_v5 = vsub.f32 %v7343_v42, %v2065_v48 }
 0x677   :  { %v2092_v45 = vmul.f32 1.442695, %v2078_v49  ;;  %v2090_v6 = vmul.f32 1.442695, %v2077_v5 }
 0x678   :  { %v2146_v52 = vpop.permute.xlu0 %2145  ;;  %v2195_v63 = vpop.permute.xlu1 %2194 }
 0x679   :  { %6218 = vpow2.f32 %v2092_v45  ;;  %v2151_v43 = vsel %vm1240_vm5, %v2146_v52, 0  ;;  %v2200_v54 = vsel %vm1240_vm5, %v2195_v63, 0  ;;  %v2075_v63 = vsub.f32 %v7335_v37, %v2059_v0 }
 0x67a   :  { %5771 = vmatpush3.bf16.msra.mxu1 %v2151_v43  ;;  %5777 = vmatpush3.bf16.msra.mxu0 %v2200_v54 }
 0x67b   :  { %5782 = vmatprep.subr.bf16.mxu1 %v8181_v11  ;;  %5788 = vmatprep.subr.bf16.mxu0 %v8181_v11  ;;  %v2086_v52 = vmul.f32 1.442695, %v2075_v63 }
 0x67c   :  { %v2244_v37 = vpop.permute.xlu1 %2243 }
 0x67d   :  { %6220 = vpow2.f32 %v2086_v52  ;;  %v2249_v5 = vsel %vm1240_vm5, %v2244_v37, 0 }
 0x67e   :  { %6222 = vpow2.f32 %v2090_v6 }
 0x67f   :  { %v7381_v9 = vpop.eup %6216 }
 0x680   :  { %v2108_v26 = vsel %vm1140_vm7, %v7381_v9, 0.0 }
 0x681   :  { %2109 = vadd.xlane.f32.xlu0 %v2108_v26 }
 0x683   :  { %v7385_v31 = vpop.eup %6218 }
 0x684   :  { %v2114_v45 = vsel %vm1140_vm7, %v7385_v31, 0.0 }
 0x685   :  { %2115 = vadd.xlane.f32.xlu0 %v2114_v45 }
 0x686   :  { %2390 = vrot.lane.b32.xlu1 %v7224_v1, %s6624_s3 }
 0x687   :  { %v7399_v15 = vpop.eup %6220 }
 0x688   :  { %v2105_v42 = vsel %vm1140_vm7, %v7399_v15, 0.0  ;;  %v7405_v0 = vpop.eup %6222 }
 0x689   :  { %v2111_v48 = vsel %vm1140_vm7, %v7405_v0, 0.0 }
 0x69b   :  { %2439 = vrot.lane.b32.xlu0 %v7218_v56, %s6624_s3 }
 0x69f   :  { %2702 = vrot.lane.b32.xlu0 %v6969_v14, %s6625_s4 }
 0x6a3   :  { %2752 = vrot.lane.b32.xlu0 %v6981_v23, %s6625_s4 }
 0x6a7   :  { %2802 = vrot.lane.b32.xlu0 %v6993_v39, %s6625_s4 }
 0x6aa   :  { %2106 = vadd.xlane.f32.xlu1 %v2105_v42 }
 0x6ab   :  { %2852 = vrot.lane.b32.xlu0 %v7013_v50, %s6625_s4 }
 0x6ad   :  { %v2071_v29 = vpop.xlane.xlu1 %2070 }
 0x6ae   :  { %v2079_v27 = vsub.f32 %v7355_v35, %v2071_v29  ;;  %2112 = vadd.xlane.f32.xlu1 %v2111_v48 }
 0x6af   :  { %2902 = vrot.lane.b32.xlu0 %v7021_v57, %s6625_s4 }
 0x6b0   :  { %v2094_v49 = vmul.f32 1.442695, %v2079_v27 }
 0x6b2   :  { %6224 = vpow2.f32 %v2094_v49 }
 0x6b3   :  { %2900 = vrot.lane.b32.xlu0 %v7045_v17, %s6625_s4 }
 0x6b7   :  { %3002 = vrot.lane.b32.xlu0 %v7047_v18, %s6625_s4 }
 0x6bb   :  { %3000 = vrot.lane.b32.xlu0 %v7072_v3, %s6625_s4 }
 0x6bc   :  { %v7420_v43 = vpop.eup %6224 }
 0x6bd   :  { %v2117_v35 = vsel %vm1140_vm7, %v7420_v43, 0.0 }
 0x6be   :  { %2118 = vadd.xlane.f32.xlu1 %v2117_v35 }
 0x6c9   :  { %v2098_v54 = vpop.xlane.xlu0 %2097 }
 0x6ca   :  { %6226 = vrcp.f32 %v2098_v54 }
 0x6cf   :  { %2488 = vrot.lane.b32.xlu1 %v7242_v20, %s6624_s3 }
 0x6d1   :  { %v2104_v26 = vpop.xlane.xlu0 %2103 }
 0x6d2   :  { %6228 = vrcp.f32 %v2104_v26 }
 0x6d3   :  { %2700 = vrot.lane.b32.xlu1 %v6991_v38, %s6625_s4 }
 0x6d4   :  { %v6227_v45 = vpop.eup %6226 }
 0x6d5   :  { %v2128_v63 = vmul.f32 %v6227_v45, %v7363_v25  ;;  %v2342_v42 = vpop.permute.xlu0 %2341 }
 0x6d6   :  { %v2347_v37 = vsel %vm1240_vm5, %v2342_v42, 0 }
 0x6d7   :  { %2750 = vrot.lane.b32.xlu1 %v7017_v58, %s6625_s4  ;;  %v2136_v52 = vpack.c.bf16 %v2128_v63, %v2128_v63 }
 0x6d9   :  { %5773 = vmatmul.mubr.msk.bf16.vlgmr.msra.gmra.mrb[68].mxu1 %vm1140_vm7, %v2136_v52 }
 0x6da   :  { %5783 = vmatpush3.bf16.msra.mxu1 %v2249_v5  ;;  %5784 = vmatprep.mubr.msk.bf16.mxu1 %vm6622_vm3, %v8181_v11 }
 0x6db   :  { %2800 = vrot.lane.b32.xlu1 %v7019_v62, %s6625_s4  ;;  %5794 = vmatprep.subr.bf16.mxu1 %v8181_v11 }
 0x6dc   :  { %v6229_v6 = vpop.eup %6228 }
 0x6dd   :  { %v2130_v25 = vmul.f32 %v6229_v6, %v7367_v10  ;;  %v2293_v10 = vpop.permute.xlu1 %2292 }
 0x6de   :  { %v2298_v26 = vsel %vm1240_vm5, %v2293_v10, 0 }
 0x6df   :  { %2850 = vrot.lane.b32.xlu1 %v7043_v13, %s6625_s4  ;;  %v2138_v29 = vpack.c.bf16 %v2130_v25, %v2130_v25 }
 0x6e1   :  { %5785 = vmatmul.mubr.msk.bf16.vlgmr.msra.gmra.mrb[72].mxu1 %vm1140_vm7, %v2138_v29 }
 0x6e2   :  { %5795 = vmatpush3.bf16.msra.mxu1 %v2347_v37  ;;  %5796 = vmatprep.mubr.msk.bf16.mxu1 %vm6622_vm3, %v8181_v11 }
 0x6e3   :  { %2952 = vrot.lane.b32.xlu1 %v7039_v8, %s6625_s4  ;;  %5806 = vmatprep.subr.bf16.mxu1 %v8181_v11 }
 0x6e7   :  { %2950 = vrot.lane.b32.xlu1 %v7070_v24, %s6625_s4 }
 0x6eb   :  { %3052 = vrot.lane.b32.xlu1 %v7068_v22, %s6625_s4 }
 0x6ef   :  { %3050 = vrot.lane.b32.xlu1 %v7092_v16, %s6625_s4 }
 0x702   :  { %v2101_v48 = vpop.xlane.xlu1 %2100 }
 0x703   :  { %6230 = vrcp.f32 %v2101_v48 }
 0x706   :  { %v2391_v37 = vpop.permute.xlu1 %2390 }
 0x70d   :  { %v6231_v27 = vpop.eup %6230 }
 0x70e   :  { %v2110_v49 = vpop.xlane.xlu0 %2109  ;;  %v2129_v35 = vmul.f32 %v6231_v27, %v7373_v2 }
 0x70f   :  { %6232 = vrcp.f32 %v2110_v49 }
 0x710   :  { %v2137_v54 = vpack.c.bf16 %v2129_v35, %v2129_v35 }
 0x712   :  { %v2116_v45 = vpop.xlane.xlu0 %2115  ;;  %5779 = vmatmul.mubr.msk.bf16.vlgmr.msra.gmra.mrb[60].mxu0 %vm1140_vm7, %v2137_v54  ;;  %v2396_v54 = vsel %vm1240_vm5, %v2391_v37, 0 }
 0x713   :  { %6234 = vrcp.f32 %v2116_v45  ;;  %5789 = vmatpush3.bf16.msra.mxu0 %v2298_v26  ;;  %5790 = vmatprep.mubr.msk.bf16.mxu0 %vm6622_vm3, %v8181_v11 }
 0x714   :  { %5800 = vmatprep.subr.bf16.mxu0 %v8181_v11 }
 0x716   :  { %v2440_v5 = vpop.permute.xlu0 %2439 }
 0x717   :  { %v2445_v25 = vsel %vm1240_vm5, %v2440_v5, 0 }
 0x719   :  { %v6233_v63 = vpop.eup %6232 }
 0x71a   :  { %v2132_v52 = vmul.f32 %v6233_v63, %v7381_v9 }
 0x71c   :  { %v2140_v6 = vpack.c.bf16 %v2132_v52, %v2132_v52 }
 0x71d   :  { %v6235_v2 = vpop.eup %6234 }
 0x71e   :  { %5797 = vmatmul.mubr.msk.bf16.vlgmr.msra.gmra.mrb[76].mxu1 %vm1140_vm7, %v2140_v6  ;;  %v2134_v42 = vmul.f32 %v6235_v2, %v7385_v31 }
 0x71f   :  { %5807 = vmatpush3.bf16.msra.mxu1 %v2445_v25  ;;  %5808 = vmatprep.mubr.msk.bf16.mxu1 %vm6622_vm3, %v8181_v11 }
 0x720   :  { %v2142_v29 = vpack.c.bf16 %v2134_v42, %v2134_v42 }
 0x726   :  { %5809 = vmatmul.mubr.msk.bf16.vlgmr.msra.gmra.mrb[80].mxu1 %vm1140_vm7, %v2142_v29 }
 0x737   :  { %v2107_v10 = vpop.xlane.xlu1 %2106 }
 0x738   :  { %6236 = vrcp.f32 %v2107_v10 }
 0x73b   :  { %v2113_v9 = vpop.xlane.xlu1 %2112 }
 0x73c   :  { %6238 = vrcp.f32 %v2113_v9 }
 0x742   :  { %v6237_v48 = vpop.eup %6236 }
 0x743   :  { %v2131_v27 = vmul.f32 %v6237_v48, %v7399_v15 }
 0x745   :  { %v2139_v49 = vpack.c.bf16 %v2131_v27, %v2131_v27 }
 0x746   :  { %v6239_v35 = vpop.eup %6238 }
 0x747   :  { %5791 = vmatmul.mubr.msk.bf16.vlgmr.msra.gmra.mrb[64].mxu0 %vm1140_vm7, %v2139_v49  ;;  %v2133_v31 = vmul.f32 %v6239_v35, %v7405_v0  ;;  %v2703_v0 = vpop.permute.xlu0 %2702 }
 0x748   :  { %5801 = vmatpush3.bf16.msra.mxu0 %v2396_v54  ;;  %5802 = vmatprep.mubr.msk.bf16.mxu0 %vm6622_vm3, %v8181_v11  ;;  %v2708_v2 = vsel %vm755_vm4, %v2703_v0, 0 }
 0x749   :  { %5812 = vmatprep.subr.bf16.mxu0 %v8181_v11  ;;  %v2141_v45 = vpack.c.bf16 %v2133_v31, %v2133_v31 }
 0x74b   :  { %v2119_v26 = vpop.xlane.xlu1 %2118  ;;  %v2753_v42 = vpop.permute.xlu0 %2752 }
 0x74c   :  { %6240 = vrcp.f32 %v2119_v26  ;;  %v2758_v37 = vsel %vm755_vm4, %v2753_v42, 0  ;;  %v2540_v26 = vld [vmem:[#allocation12 + $0x20] sm:$0xff]  ;;  %v1611_v42 = vld [vmem:[#allocation12 + $0x8] sm:$0xff] }
 0x74f   :  { %5803 = vmatmul.mubr.msk.bf16.vlgmr.msra.gmra.mrb[68].mxu0 %vm1140_vm7, %v2141_v45  ;;  %v2489_v15 = vpop.permute.xlu1 %2488  ;;  %v2541_v45 = vld [vmem:[#allocation12 + $0x28] sm:$0xff] }
 0x750   :  { %v2494_v63 = vsel %vm1240_vm5, %v2489_v15, 0  ;;  %5814 = vmatprep.mubr.msk.bf16.mxu0 %vm6622_vm3, %v8181_v11  ;;  %v2542_v15 = vld [vmem:[#allocation12 + $0x30] sm:$0xff] }
 0x751   :  { %5813 = vmatpush3.bf16.msra.mxu0 %v2494_v63  ;;  %v2544_v63 = vpack.c.bf16 %v2541_v45, %v2540_v26 }
 0x752   :  { %5842 = vmatprep.subr.bf16.mxu0 %v8181_v11 }
 0x753   :  { %v2701_v25 = vpop.permute.xlu1 %2700  ;;  %5818 = vmatprep.subr.bf16.mxu1 %v2544_v63 }
 0x754   :  { %5819 = vmatpush3.bf16.msra.mxu1 %v2544_v63 }
 0x756   :  { %v6241_v52 = vpop.eup %6240 }
 0x757   :  { %v2135_v5 = vmul.f32 %v6241_v52, %v7420_v43  ;;  %v2751_v29 = vpop.permute.xlu1 %2750  ;;  %v2803_v43 = vpop.permute.xlu0 %2802  ;;  %v2543_v52 = vld [vmem:[#allocation12 + $0x38] sm:$0xff] }
 0x758   :  { %v2808_v9 = vsel %vm755_vm4, %v2803_v43, 0 }
 0x759   :  { %v2143_v6 = vpack.c.bf16 %v2135_v5, %v2135_v5  ;;  %v2545_v5 = vpack.c.bf16 %v2543_v52, %v2542_v15 }
 0x75b   :  { %5815 = vmatmul.mubr.msk.bf16.vlgmr.msra.gmra.mrb[72].mxu0 %vm1140_vm7, %v2143_v6  ;;  %v2801_v10 = vpop.permute.xlu1 %2800  ;;  %v2853_v27 = vpop.permute.xlu0 %2852  ;;  %5820 = vmatprep.subr.bf16.mxu1 %v2545_v5 }
 0x75c   :  { %5843 = vmatpush3.bf16.xpose.msra.mxu0 %v2708_v2  ;;  %5844 = vmatprep.mubr.msk.bf16.mxu0 %vm6622_vm3, %v8181_v11  ;;  %v2858_v49 = vsel %vm755_vm4, %v2853_v27, 0 }
 0x75d   :  { %5848 = vmatprep.subr.bf16.mxu0 %v8181_v11  ;;  %5821 = vmatpush3.bf16.msra.mxu1 %v2545_v5 }
 0x75f   :  { %v2851_v48 = vpop.permute.xlu1 %2850 }
 0x763   :  { %5845 = vmatmul.mubr.msk.bf16.vlgmr.msra.gmra.mrb[76].mxu0 %vm755_vm4, %v2701_v25  ;;  %v2953_v35 = vpop.permute.xlu1 %2952  ;;  %v1610_v25 = vld [vmem:[#allocation12] sm:$0xff] }
 0x764   :  { %5849 = vmatpush3.bf16.xpose.msra.mxu0 %v2758_v37  ;;  %5850 = vmatprep.mubr.msk.bf16.mxu0 %vm6622_vm3, %v8181_v11  ;;  %v2958_v31 = vsel %vm755_vm4, %v2953_v35, 0 }
 0x765   :  { %5854 = vmatprep.subr.bf16.mxu0 %v8181_v11 }
 0x767   :  { %v2951_v54 = vpop.permute.xlu1 %2950 }
 0x76b   :  { %5851 = vmatmul.mubr.msk.bf16.vlgmr.msra.gmra.mrb[80].mxu0 %vm755_vm4, %v2751_v29  ;;  %v3053_v0 = vpop.permute.xlu1 %3052  ;;  %v1614_v29 = vpack.c.bf16 %v1611_v42, %v1610_v25 }
 0x76c   :  { %5855 = vmatpush3.bf16.xpose.msra.mxu0 %v2808_v9  ;;  %5856 = vmatprep.mubr.msk.bf16.mxu0 %vm6622_vm3, %v8181_v11  ;;  %v3058_v6 = vsel %vm755_vm4, %v3053_v0, 0 }
 0x76d   :  { %5860 = vmatprep.subr.bf16.mxu0 %v8181_v11  ;;  %5830 = vmatprep.subr.bf16.mxu1 %v1614_v29 }
 0x76f   :  { %v3051_v2 = vpop.permute.xlu1 %3050 }
 0x773   :  { %5857 = vmatmul.mubr.msk.bf16.vlgmr.msra.gmra.mrb[84].mxu0 %vm755_vm4, %v2801_v10 }
 0x774   :  { %5861 = vmatpush3.bf16.xpose.msra.mxu0 %v2858_v49  ;;  %5862 = vmatprep.mubr.msk.bf16.mxu0 %vm6622_vm3, %v8181_v11 }
 0x775   :  { %5872 = vmatprep.subr.bf16.mxu0 %v8181_v11 }
 0x77b   :  { %5863 = vmatmul.mubr.msk.bf16.vlgmr.msra.gmra.mrb[88].mxu0 %vm755_vm4, %v2851_v48 }
 0x77c   :  { %5873 = vmatpush3.bf16.xpose.msra.mxu0 %v2958_v31  ;;  %5874 = vmatprep.mubr.msk.bf16.mxu0 %vm6622_vm3, %v8181_v11 }
 0x77d   :  { %5884 = vmatprep.subr.bf16.mxu0 %v8181_v11 }
 0x783   :  { %5875 = vmatmul.mubr.msk.bf16.vlgmr.msra.gmra.mrb[92].mxu0 %vm755_vm4, %v2951_v54 }
 0x784   :  { %5885 = vmatpush3.bf16.xpose.msra.mxu0 %v3058_v6  ;;  %5886 = vmatprep.mubr.msk.bf16.mxu0 %vm6622_vm3, %v8181_v11 }
 0x785   :  { %5896 = vmatprep.subr.bf16.mxu0 %v8181_v11 }
 0x78b   :  { %5887 = vmatmul.mubr.msk.bf16.vlgmr.msra.gmra.mrb[96].mxu0 %vm755_vm4, %v3051_v2 }
 0x78c   :  { %5898 = vmatprep.mubr.msk.bf16.mxu0 %vm6622_vm3, %v8181_v11 }
 0x7ac   :  { %v2187_v37 = vpop.f32.mrb[68].mxu1 }
 0x7ad   :  { %v5774_v43 = vpop.f32.mrb[69].mxu1 }
 0x7ae   :  { %v2190_v10 = vpop.f32.mrb[70].mxu1  ;;  %v1612_v43 = vld [vmem:[#allocation12 + $0x10] sm:$0xff] }
 0x7af   :  { %v5775_v9 = vpop.f32.mrb[71].mxu1  ;;  %v1613_v10 = vld [vmem:[#allocation12 + $0x18] sm:$0xff] }
 0x7b4   :  { %v2285_v48 = vpop.f32.mrb[72].mxu1 }
 0x7b5   :  { %v5786_v27 = vpop.f32.mrb[73].mxu1 }
 0x7b6   :  { %v2288_v49 = vpop.f32.mrb[74].mxu1 }
 0x7b7   :  { %v5787_v35 = vpop.f32.mrb[75].mxu1 }
 0x7b8   :  { %v1615_v35 = vpack.c.bf16 %v1613_v10, %v1612_v43 }
 0x7e5   :  { %v2236_v54 = vpop.f32.mrb[60].mxu0 }
 0x7e6   :  { %v2536_v31 = vpack.c.bf16 %v2236_v54, %v2187_v37  ;;  %v5780_v26 = vpop.f32.mrb[61].mxu0 }
 0x7e7   :  { %v2239_v45 = vpop.f32.mrb[62].mxu0 }
 0x7e8   :  { %v5781_v15 = vpop.f32.mrb[63].mxu0  ;;  %5822 = vmatprep.mubr.msk.bf16.mxu1 %vm755_vm4, %v2536_v31 }
 0x7f1   :  { %v2383_v63 = vpop.f32.mrb[76].mxu1 }
 0x7f2   :  { %v5798_v52 = vpop.f32.mrb[77].mxu1 }
 0x7f3   :  { %v2386_v5 = vpop.f32.mrb[78].mxu1 }
 0x7f4   :  { %v5799_v0 = vpop.f32.mrb[79].mxu1 }
 0x7f9   :  { %v2481_v6 = vpop.f32.mrb[80].mxu1 }
 0x7fa   :  { %v5810_v2 = vpop.f32.mrb[81].mxu1 }
 0x7fb   :  { %v2484_v25 = vpop.f32.mrb[82].mxu1 }
 0x7fc   :  { %v5811_v42 = vpop.f32.mrb[83].mxu1 }
 0x81a   :  { %v2334_v9 = vpop.f32.mrb[64].mxu0 }
 0x81b   :  { %v2537_v27 = vpack.c.bf16 %v2334_v9, %v2285_v48  ;;  %v5792_v49 = vpop.f32.mrb[65].mxu0 }
 0x81c   :  { %v2337_v37 = vpop.f32.mrb[66].mxu0 }
 0x81d   :  { %v5793_v54 = vpop.f32.mrb[67].mxu0  ;;  %5823 = vmatmul.mubr.msk.bf16.vlgmr.msra.gmra.mrb[84].mxu1 %vm755_vm4, %v2537_v27 }
 0x81e   :  { %5831 = vmatpush3.bf16.msra.mxu1 %v1614_v29  ;;  %v8182_v29 = vpack.c.bf16 %v7302_v30, %v7298_v21  ;;  %v8184_v21 = vpack.c.bf16 %v7314_v19, %v7306_v55 }
 0x81f   :  { %5832 = vmatprep.subr.bf16.mxu1 %v1615_v35 }
 0x822   :  { %v2432_v31 = vpop.f32.mrb[68].mxu0  ;;  %5833 = vmatpush3.bf16.msra.mxu1 %v1615_v35 }
 0x823   :  { %v2538_v26 = vpack.c.bf16 %v2432_v31, %v2383_v63  ;;  %v5804_v45 = vpop.f32.mrb[69].mxu0  ;;  %5866 = vmatprep.subr.bf16.mxu1 %v8181_v11  ;;  %v2903_v63 = vpop.permute.xlu0 %2902 }
 0x824   :  { %v2435_v15 = vpop.f32.mrb[70].mxu0  ;;  %v2908_v27 = vsel %vm755_vm4, %v2903_v63, 0 }
 0x825   :  { %v5805_v52 = vpop.f32.mrb[71].mxu0  ;;  %5826 = vmatprep.mubr.msk.bf16.mxu1 %vm755_vm4, %v2538_v26  ;;  %v8185_v26 = vpack.c.bf16 %v7328_v41, %v7312_v7 }
 0x827   :  { %v2901_v54 = vpop.permute.xlu0 %2900 }
 0x82b   :  { %v3003_v15 = vpop.permute.xlu0 %3002 }
 0x82e   :  { %v2530_v5 = vpop.f32.mrb[72].mxu0 }
 0x82f   :  { %v2539_v48 = vpack.c.bf16 %v2530_v5, %v2481_v6  ;;  %v5816_v0 = vpop.f32.mrb[73].mxu0  ;;  %v8183_v6 = vpack.c.bf16 %v7308_v33, %v7300_v46 }
 0x830   :  { %v2533_v2 = vpop.f32.mrb[74].mxu0 }
 0x831   :  { %v5817_v25 = vpop.f32.mrb[75].mxu0  ;;  %5827 = vmatmul.mubr.msk.bf16.gmra.mrb[88].mxu1 %vm755_vm4, %v2539_v48  ;;  %v3008_v2 = vsel %vm755_vm4, %v3003_v15, 0 }
 0x832   :  { %5834 = vmatprep.mubr.msk.bf16.mxu1 %vm755_vm4, %v8182_v29 }
 0x836   :  { %v2744_v42 = vpop.f32.mrb[76].mxu0 }
 0x837   :  { %v3100_v43 = vmul.f32 0.17677669, %v2744_v42  ;;  %v5846_v10 = vpop.f32.mrb[77].mxu0 }
 0x838   :  { %v2747_v9 = vpop.f32.mrb[78].mxu0 }
 0x839   :  { %5835 = vmatmul.mubr.msk.bf16.vlgmr.msra.gmra.mrb[84].mxu1 %vm755_vm4, %v8183_v6  ;;  %v5847_v49 = vpop.f32.mrb[79].mxu0  ;;  %v7528_v35 = vadd.f32 %v3100_v43, %v7102_v44  ;;  %v3001_v43 = vpop.permute.xlu0 %3000 }
 0x83a   :  { %5867 = vmatpush3.bf16.xpose.msra.mxu1 %v2908_v27  ;;  %5838 = vmatprep.mubr.msk.bf16.mxu1 %vm755_vm4, %v8184_v21 }
 0x83b   :  { %v3116_v30 = vsel %vm1140_vm7, %v7528_v35, -inf  ;;  %5878 = vmatprep.subr.bf16.mxu1 %v8181_v11 }
 0x83c   :  { %3117 = vmax.xlane.f32.xlu0 %v3116_v30 }
 0x83e   :  { %v2794_v37 = vpop.f32.mrb[80].mxu0 }
 0x83f   :  { %v3101_v46 = vmul.f32 0.17677669, %v2794_v37  ;;  %v5852_v33 = vpop.f32.mrb[81].mxu0 }
 0x840   :  { %v2797_v31 = vpop.f32.mrb[82].mxu0 }
 0x841   :  { %5839 = vmatmul.mubr.msk.bf16.gmra.mrb[88].mxu1 %vm755_vm4, %v8185_v26  ;;  %v5853_v45 = vpop.f32.mrb[83].mxu0  ;;  %v3109_v55 = vadd.f32 %v3101_v46, %v7102_v44 }
 0x842   :  { %5868 = vmatprep.mubr.msk.bf16.mxu1 %vm6622_vm3, %v8181_v11 }
 0x843   :  { %v3119_v19 = vsel %vm1140_vm7, %v3109_v55, -inf }
 0x844   :  { %3120 = vmax.xlane.f32.xlu1 %v3119_v19 }
 0x846   :  { %v2844_v52 = vpop.f32.mrb[84].mxu0 }
 0x847   :  { %v3102_v5 = vmul.f32 0.17677669, %v2844_v52  ;;  %v5858_v48 = vpop.f32.mrb[85].mxu0 }
 0x848   :  { %v2847_v0 = vpop.f32.mrb[86].mxu0 }
 0x849   :  { %v5859_v25 = vpop.f32.mrb[87].mxu0  ;;  %5869 = vmatmul.mubr.msk.bf16.vlgmr.msra.gmra.mrb[92].mxu1 %vm755_vm4, %v2901_v54  ;;  %v7548_v7 = vadd.f32 %v3102_v5, %v7102_v44 }
 0x84a   :  { %5879 = vmatpush3.bf16.xpose.msra.mxu1 %v3008_v2  ;;  %5880 = vmatprep.mubr.msk.bf16.mxu1 %vm6622_vm3, %v8181_v11 }
 0x84b   :  { %v3122_v41 = vsel %vm1140_vm7, %v7548_v7, -inf  ;;  %5890 = vmatprep.subr.bf16.mxu1 %v8181_v11 }
 0x84c   :  { %3123 = vmax.xlane.f32.xlu0 %v3122_v41 }
 0x84e   :  { %v2894_v29 = vpop.f32.mrb[88].mxu0 }
 0x84f   :  { %v3103_v63 = vmul.f32 0.17677669, %v2894_v29  ;;  %v5864_v42 = vpop.f32.mrb[89].mxu0 }
 0x850   :  { %v2897_v10 = vpop.f32.mrb[90].mxu0 }
 0x851   :  { %v5865_v9 = vpop.f32.mrb[91].mxu0  ;;  %5881 = vmatmul.mubr.msk.bf16.vlgmr.msra.gmra.mrb[96].mxu1 %vm755_vm4, %v3001_v43  ;;  %v3111_v27 = vadd.f32 %v3103_v63, %v7102_v44 }
 0x852   :  { %5892 = vmatprep.mubr.msk.bf16.mxu1 %vm6622_vm3, %v8181_v11 }
 0x853   :  { %v3125_v6 = vsel %vm1140_vm7, %v3111_v27, -inf }
 0x854   :  { %3126 = vmax.xlane.f32.xlu0 %v3125_v6 }
 0x856   :  { %v2994_v49 = vpop.f32.mrb[92].mxu0 }
 0x857   :  { %v3105_v21 = vmul.f32 0.17677669, %v2994_v49  ;;  %v5876_v30 = vpop.f32.mrb[93].mxu0 }
 0x858   :  { %v2997_v37 = vpop.f32.mrb[94].mxu0 }
 0x859   :  { %v5877_v46 = vpop.f32.mrb[95].mxu0  ;;  %v3113_v33 = vadd.f32 %v3105_v21, %v7102_v44 }
 0x85b   :  { %v3131_v54 = vsel %vm1140_vm7, %v3113_v33, -inf }
 0x85c   :  { %3132 = vmax.xlane.f32.xlu1 %v3131_v54 }
 0x85e   :  { %v3094_v31 = vpop.f32.mrb[96].mxu0 }
 0x85f   :  { %v3107_v26 = vmul.f32 0.17677669, %v3094_v31  ;;  %v5888_v45 = vpop.f32.mrb[97].mxu0 }
 0x860   :  { %v3097_v19 = vpop.f32.mrb[98].mxu0 }
 0x861   :  { %v5889_v15 = vpop.f32.mrb[99].mxu0  ;;  %v3115_v52 = vadd.f32 %v3107_v26, %v7102_v44 }
 0x863   :  { %v3137_v5 = vsel %vm1140_vm7, %v3115_v52, -inf }
 0x864   :  { %3138 = vmax.xlane.f32.xlu1 %v3137_v5 }
 0x8c9   :  { %v3118_v25 = vpop.xlane.xlu0 %3117 }
 0x8ca   :  { %v3140_v26 = vsub.f32 %v7528_v35, %v3118_v25 }
 0x8cc   :  { %v3148_v45 = vmul.f32 1.442695, %v3140_v26 }
 0x8d1   :  { %v3121_v48 = vpop.xlane.xlu1 %3120 }
 0x8d2   :  { %v3141_v0 = vsub.f32 %v3109_v55, %v3121_v48 }
 0x8d4   :  { %v3150_v2 = vmul.f32 1.442695, %v3141_v0 }
 0x8d6   :  { %6242 = vpow2.f32 %v3150_v2 }
 0x8d9   :  { %v3124_v41 = vpop.xlane.xlu0 %3123 }
 0x8da   :  { %v3142_v19 = vsub.f32 %v7548_v7, %v3124_v41 }
 0x8e0   :  { %v7564_v29 = vpop.eup %6242 }
 0x8e1   :  { %v3127_v63 = vpop.xlane.xlu0 %3126  ;;  %v3167_v42 = vsel %vm1140_vm7, %v7564_v29, 0.0 }
 0x8e2   :  { %v3143_v43 = vsub.f32 %v3111_v27, %v3127_v63  ;;  %3168 = vadd.xlane.f32.xlu1 %v3167_v42  ;;  %v3152_v63 = vmul.f32 1.442695, %v3142_v19 }
 0x8e4   :  { %v3154_v10 = vmul.f32 1.442695, %v3143_v43 }
 0x8e6   :  { %6244 = vpow2.f32 %v3154_v10 }
 0x8e9   :  { %v3133_v9 = vpop.xlane.xlu1 %3132 }
 0x8ea   :  { %v3145_v6 = vsub.f32 %v3113_v33, %v3133_v9 }
 0x8ec   :  { %v3158_v49 = vmul.f32 1.442695, %v3145_v6 }
 0x8ee   :  { %6246 = vpow2.f32 %v3158_v49 }
 0x8f0   :  { %v7568_v21 = vpop.eup %6244 }
 0x8f1   :  { %v3139_v55 = vpop.xlane.xlu1 %3138  ;;  %v3173_v30 = vsel %vm1140_vm7, %v7568_v21, 0.0 }
 0x8f2   :  { %v3147_v37 = vsub.f32 %v3115_v52, %v3139_v55  ;;  %3174 = vadd.xlane.f32.xlu1 %v3173_v30 }
 0x8f4   :  { %v3162_v46 = vmul.f32 1.442695, %v3147_v37 }
 0x8f6   :  { %6248 = vpow2.f32 %v3162_v46 }
 0x8f7   :  { %6250 = vpow2.f32 %v3148_v45 }
 0x8f8   :  { %v7572_v54 = vpop.eup %6246  ;;  %6252 = vpow2.f32 %v3152_v63 }
 0x8f9   :  { %v3179_v27 = vsel %vm1140_vm7, %v7572_v54, 0.0 }
 0x8fa   :  { %3180 = vadd.xlane.f32.xlu1 %v3179_v27 }
 0x900   :  { %v7576_v31 = vpop.eup %6248 }
 0x901   :  { %v3185_v33 = vsel %vm1140_vm7, %v7576_v31, 0.0  ;;  %v7604_v6 = vpop.eup %6250 }
 0x902   :  { %3186 = vadd.xlane.f32.xlu1 %v3185_v33  ;;  %v3164_v49 = vsel %vm1140_vm7, %v7604_v6, 0.0  ;;  %v7610_v55 = vpop.eup %6252 }
 0x913   :  { %3260 = vrot.lane.b32.xlu1 %v7090_v4, %s6625_s4 }
 0x917   :  { %3308 = vrot.lane.b32.xlu1 %v7186_v53, %s6625_s4 }
 0x91b   :  { %3356 = vrot.lane.b32.xlu1 %v7202_v47, %s6625_s4 }
 0x91c   :  { %v2944_v15 = vpop.f32.mrb[92].mxu1 }
 0x91d   :  { %v3104_v52 = vmul.f32 0.17677669, %v2944_v15  ;;  %v5870_v5 = vpop.f32.mrb[93].mxu1 }
 0x91e   :  { %v2947_v48 = vpop.f32.mrb[94].mxu1 }
 0x91f   :  { %v5871_v0 = vpop.f32.mrb[95].mxu1  ;;  %3452 = vrot.lane.b32.xlu1 %v7224_v1, %s6625_s4  ;;  %v7591_v2 = vadd.f32 %v3104_v52, %v7102_v44 }
 0x921   :  { %v3128_v35 = vsel %vm1140_vm7, %v7591_v2, -inf }
 0x922   :  { %3129 = vmax.xlane.f32.xlu0 %v3128_v35 }
 0x923   :  { %3548 = vrot.lane.b32.xlu1 %v7242_v20, %s6625_s4 }
 0x924   :  { %v3044_v7 = vpop.f32.mrb[96].mxu1 }
 0x925   :  { %v3106_v25 = vmul.f32 0.17677669, %v3044_v7  ;;  %v5882_v41 = vpop.f32.mrb[97].mxu1 }
 0x926   :  { %v3047_v42 = vpop.f32.mrb[98].mxu1 }
 0x927   :  { %v5883_v43 = vpop.f32.mrb[99].mxu1  ;;  %3691 = vrot.lane.b32.xlu1 %v6991_v38, %s6626_s18  ;;  %v7600_v10 = vadd.f32 %v3106_v25, %v7102_v44  ;;  %v3170_v38 = vsel %vm1140_vm7, %v7610_v55, 0.0 }
 0x929   :  { %v3134_v9 = vsel %vm1140_vm7, %v7600_v10, -inf }
 0x92a   :  { %3135 = vmax.xlane.f32.xlu0 %v3134_v9 }
 0x92b   :  { %3741 = vrot.lane.b32.xlu1 %v7017_v58, %s6626_s18 }
 0x92e   :  { %3165 = vadd.xlane.f32.xlu0 %v3164_v49 }
 0x92f   :  { %3843 = vrot.lane.b32.xlu1 %v7013_v50, %s6626_s18 }
 0x932   :  { %3171 = vadd.xlane.f32.xlu0 %v3170_v38 }
 0x933   :  { %3841 = vrot.lane.b32.xlu1 %v7043_v13, %s6626_s18 }
 0x937   :  { %3943 = vrot.lane.b32.xlu1 %v7039_v8, %s6626_s18 }
 0x93b   :  { %3941 = vrot.lane.b32.xlu1 %v7070_v24, %s6626_s18 }
 0x93f   :  { %4043 = vrot.lane.b32.xlu1 %v7068_v22, %s6626_s18 }
 0x943   :  { %4041 = vrot.lane.b32.xlu1 %v7092_v16, %s6626_s18 }
 0x948   :  { %3212 = vrot.lane.b32.xlu0 %v7066_v12, %s6625_s4 }
 0x94c   :  { %3404 = vrot.lane.b32.xlu0 %v7197_v32, %s6625_s4 }
 0x96f   :  { %v3169_v50 = vpop.xlane.xlu1 %3168 }
 0x970   :  { %6254 = vrcp.f32 %v3169_v50 }
 0x97a   :  { %v6255_v8 = vpop.eup %6254 }
 0x97b   :  { %v3197_v24 = vmul.f32 %v6255_v8, %v7564_v29 }
 0x97d   :  { %v3205_v16 = vpack.c.bf16 %v3197_v24, %v3197_v24 }
 0x97f   :  { %v3175_v58 = vpop.xlane.xlu1 %3174 }
 0x980   :  { %6256 = vrcp.f32 %v3175_v58 }
 0x987   :  { %v3181_v13 = vpop.xlane.xlu1 %3180 }
 0x988   :  { %6258 = vrcp.f32 %v3181_v13 }
 0x98a   :  { %v6257_v46 = vpop.eup %6256 }
 0x98b   :  { %v3199_v33 = vmul.f32 %v6257_v46, %v7568_v21 }
 0x98d   :  { %v3207_v45 = vpack.c.bf16 %v3199_v33, %v3199_v33 }
 0x98f   :  { %v3187_v30 = vpop.xlane.xlu1 %3186 }
 0x990   :  { %6260 = vrcp.f32 %v3187_v30 }
 0x992   :  { %v6259_v19 = vpop.eup %6258 }
 0x993   :  { %v3261_v37 = vpop.permute.xlu1 %3260  ;;  %v3201_v21 = vmul.f32 %v6259_v19, %v7572_v54 }
 0x994   :  { %v3266_v22 = vsel %vm1240_vm5, %v3261_v37, 0 }
 0x995   :  { %5897 = vmatpush3.bf16.msra.mxu0 %v3266_v22  ;;  %v3209_v48 = vpack.c.bf16 %v3201_v21, %v3201_v21  ;;  %v3602_v21 = vld [vmem:[#allocation12 + $0x50] sm:$0xff] }
 0x996   :  { %5908 = vmatprep.subr.bf16.mxu0 %v8181_v11 }
 0x997   :  { %v3309_v27 = vpop.permute.xlu1 %3308 }
 0x998   :  { %5899 = vmatmul.mubr.msk.bf16.vlgmr.msra.gmra.mrb[100].mxu0 %vm1140_vm7, %v3205_v16  ;;  %v3314_v22 = vsel %vm1240_vm5, %v3309_v27, 0 }
 0x999   :  { %5910 = vmatprep.mubr.msk.bf16.mxu0 %vm6622_vm3, %v8181_v11 }
 0x99a   :  { %v6261_v0 = vpop.eup %6260 }
 0x99b   :  { %v3357_v26 = vpop.permute.xlu1 %3356  ;;  %v3203_v35 = vmul.f32 %v6261_v0, %v7576_v31 }
 0x99c   :  { %v3362_v29 = vsel %vm1240_vm5, %v3357_v26, 0 }
 0x99d   :  { %5909 = vmatpush3.bf16.msra.mxu0 %v3362_v29  ;;  %v3211_v7 = vpack.c.bf16 %v3203_v35, %v3203_v35 }
 0x99e   :  { %5920 = vmatprep.subr.bf16.mxu0 %v8181_v11 }
 0x99f   :  { %v3453_v15 = vpop.permute.xlu1 %3452 }
 0x9a0   :  { %v3458_v52 = vsel %vm1240_vm5, %v3453_v15, 0  ;;  %5911 = vmatmul.mubr.msk.bf16.vlgmr.msra.gmra.mrb[104].mxu0 %vm1140_vm7, %v3207_v45 }
 0x9a1   :  { %5921 = vmatpush3.bf16.msra.mxu0 %v3458_v52  ;;  %5922 = vmatprep.mubr.msk.bf16.mxu0 %vm6622_vm3, %v8181_v11 }
 0x9a2   :  { %5932 = vmatprep.subr.bf16.mxu0 %v8181_v11 }
 0x9a3   :  { %v3549_v5 = vpop.permute.xlu1 %3548 }
 0x9a4   :  { %v3554_v63 = vsel %vm1240_vm5, %v3549_v5, 0  ;;  %v3603_v5 = vld [vmem:[#allocation12 + $0x58] sm:$0xff] }
 0x9a5   :  { %v3605_v35 = vpack.c.bf16 %v3603_v5, %v3602_v21 }
 0x9a8   :  { %5923 = vmatmul.mubr.msk.bf16.vlgmr.msra.gmra.mrb[108].mxu0 %vm1140_vm7, %v3209_v48 }
 0x9a9   :  { %5933 = vmatpush3.bf16.msra.mxu0 %v3554_v63  ;;  %5934 = vmatprep.mubr.msk.bf16.mxu0 %vm6622_vm3, %v8181_v11 }
 0x9aa   :  { %5950 = vmatprep.subr.bf16.mxu0 %v8181_v11 }
 0x9af   :  { %v3130_v25 = vpop.xlane.xlu0 %3129 }
 0x9b0   :  { %v3144_v54 = vsub.f32 %v7591_v2, %v3130_v25  ;;  %5935 = vmatmul.mubr.msk.bf16.vlgmr.msra.gmra.mrb[112].mxu0 %vm1140_vm7, %v3211_v7 }
 0x9b1   :  { %5952 = vmatprep.mubr.msk.bf16.mxu0 %vm6622_vm3, %v8181_v11 }
 0x9b2   :  { %v3156_v41 = vmul.f32 1.442695, %v3144_v54 }
 0x9b4   :  { %6262 = vpow2.f32 %v3156_v41 }
 0x9b7   :  { %v3136_v42 = vpop.xlane.xlu0 %3135 }
 0x9b8   :  { %v3146_v43 = vsub.f32 %v7600_v10, %v3136_v42 }
 0x9ba   :  { %v3160_v9 = vmul.f32 1.442695, %v3146_v43 }
 0x9bb   :  { %v3166_v49 = vpop.xlane.xlu0 %3165 }
 0x9bc   :  { %6264 = vpow2.f32 %v3160_v9 }
 0x9bd   :  { %6266 = vrcp.f32 %v3166_v49 }
 0x9be   :  { %v6263_v31 = vpop.eup %6262 }
 0x9bf   :  { %v3172_v38 = vpop.xlane.xlu0 %3171  ;;  %v3176_v50 = vsel %vm1140_vm7, %v6263_v31, 0.0 }
 0x9c0   :  { %3177 = vadd.xlane.f32.xlu0 %v3176_v50  ;;  %6268 = vrcp.f32 %v3172_v38 }
 0x9c3   :  { %v3213_v2 = vpop.permute.xlu0 %3212 }
 0x9c4   :  { %v3218_v58 = vsel %vm1240_vm5, %v3213_v2, 0 }
 0x9c5   :  { %5891 = vmatpush3.bf16.msra.mxu1 %v3218_v58 }
 0x9c6   :  { %v6265_v13 = vpop.eup %6264  ;;  %5902 = vmatprep.subr.bf16.mxu1 %v8181_v11 }
 0x9c7   :  { %v6267_v8 = vpop.eup %6266  ;;  %v3182_v10 = vsel %vm1140_vm7, %v6265_v13, 0.0  ;;  %v3405_v46 = vpop.permute.xlu0 %3404 }
 0x9c8   :  { %v3196_v30 = vmul.f32 %v6267_v8, %v7604_v6  ;;  %3183 = vadd.xlane.f32.xlu0 %v3182_v10  ;;  %v3410_v26 = vsel %vm1240_vm5, %v3405_v46, 0 }
 0x9ca   :  { %v3204_v24 = vpack.c.bf16 %v3196_v30, %v3196_v30  ;;  %v6269_v37 = vpop.eup %6268 }
 0x9cb   :  { %v3198_v16 = vmul.f32 %v6269_v37, %v7610_v55  ;;  %v3600_v55 = vld [vmem:[#allocation12 + $0x40] sm:$0xff] }
 0x9cc   :  { %5893 = vmatmul.mubr.msk.bf16.vlgmr.msra.gmra.mrb[100].mxu1 %vm1140_vm7, %v3204_v24 }
 0x9cd   :  { %5903 = vmatpush3.bf16.msra.mxu1 %v3314_v22  ;;  %5904 = vmatprep.mubr.msk.bf16.mxu1 %vm6622_vm3, %v8181_v11  ;;  %v3206_v33 = vpack.c.bf16 %v3198_v16, %v3198_v16 }
 0x9ce   :  { %5914 = vmatprep.subr.bf16.mxu1 %v8181_v11 }
 0x9d4   :  { %5905 = vmatmul.mubr.msk.bf16.vlgmr.msra.gmra.mrb[104].mxu1 %vm1140_vm7, %v3206_v33 }
 0x9d5   :  { %5915 = vmatpush3.bf16.msra.mxu1 %v3410_v26  ;;  %5916 = vmatprep.mubr.msk.bf16.mxu1 %vm6622_vm3, %v8181_v11 }
 0x9d6   :  { %5926 = vmatprep.subr.bf16.mxu1 %v8181_v11 }
 0x9de   :  { %3500 = vrot.lane.b32.xlu0 %v7218_v56, %s6625_s4 }
 0x9e2   :  { %3693 = vrot.lane.b32.xlu0 %v6969_v14, %s6626_s18 }
 0x9e6   :  { %3743 = vrot.lane.b32.xlu0 %v6981_v23, %s6626_s18 }
 0x9ea   :  { %3793 = vrot.lane.b32.xlu0 %v6993_v39, %s6626_s18  ;;  %v3692_v39 = vpop.permute.xlu1 %3691 }
 0x9ee   :  { %3791 = vrot.lane.b32.xlu0 %v7019_v62, %s6626_s18  ;;  %v3601_v62 = vld [vmem:[#allocation12 + $0x48] sm:$0xff]  ;;  %v3742_v19 = vpop.permute.xlu1 %3741 }
 0x9ef   :  { %v3604_v45 = vpack.c.bf16 %v3601_v62, %v3600_v55 }
 0x9f2   :  { %3893 = vrot.lane.b32.xlu0 %v7021_v57, %s6626_s18  ;;  %v3844_v48 = vpop.permute.xlu1 %3843 }
 0x9f3   :  { %v3849_v43 = vsel %vm755_vm4, %v3844_v48, 0 }
 0x9f6   :  { %3891 = vrot.lane.b32.xlu0 %v7045_v17, %s6626_s18  ;;  %v3842_v25 = vpop.permute.xlu1 %3841 }
 0x9fa   :  { %3993 = vrot.lane.b32.xlu0 %v7047_v18, %s6626_s18  ;;  %v3944_v49 = vpop.permute.xlu1 %3943 }
 0x9fb   :  { %v3949_v58 = vsel %vm755_vm4, %v3944_v49, 0 }
 0x9fe   :  { %3991 = vrot.lane.b32.xlu0 %v7072_v3, %s6626_s18  ;;  %v3942_v50 = vpop.permute.xlu1 %3941 }
 0xa02   :  { %v4044_v8 = vpop.permute.xlu1 %4043 }
 0xa03   :  { %v4049_v37 = vsel %vm755_vm4, %v4044_v8, 0 }
 0xa06   :  { %v4042_v33 = vpop.permute.xlu1 %4041 }
 0xa4d   :  { %v3178_v14 = vpop.xlane.xlu0 %3177 }
 0xa4e   :  { %6270 = vrcp.f32 %v3178_v14 }
 0xa55   :  { %v3184_v23 = vpop.xlane.xlu0 %3183 }
 0xa56   :  { %6272 = vrcp.f32 %v3184_v23 }
 0xa58   :  { %v6271_v6 = vpop.eup %6270 }
 0xa59   :  { %v3200_v27 = vmul.f32 %v6271_v6, %v6263_v31  ;;  %v3501_v29 = vpop.permute.xlu0 %3500 }
 0xa5a   :  { %v3506_v17 = vsel %vm1240_vm5, %v3501_v29, 0 }
 0xa5b   :  { %v3208_v57 = vpack.c.bf16 %v3200_v27, %v3200_v27 }
 0xa5d   :  { %v3694_v15 = vpop.permute.xlu0 %3693  ;;  %5917 = vmatmul.mubr.msk.bf16.vlgmr.msra.gmra.mrb[108].mxu1 %vm1140_vm7, %v3208_v57 }
 0xa5e   :  { %v3699_v18 = vsel %vm755_vm4, %v3694_v15, 0  ;;  %5927 = vmatpush3.bf16.msra.mxu1 %v3506_v17  ;;  %5928 = vmatprep.mubr.msk.bf16.mxu1 %vm6622_vm3, %v8181_v11 }
 0xa5f   :  { %5951 = vmatpush3.bf16.xpose.msra.mxu0 %v3699_v18  ;;  %5938 = vmatprep.subr.bf16.mxu1 %v3604_v45 }
 0xa60   :  { %v6273_v3 = vpop.eup %6272  ;;  %5956 = vmatprep.subr.bf16.mxu0 %v8181_v11 }
 0xa61   :  { %v3202_v52 = vmul.f32 %v6273_v3, %v6265_v13  ;;  %v3744_v0 = vpop.permute.xlu0 %3743 }
 0xa62   :  { %v3749_v7 = vsel %vm755_vm4, %v3744_v0, 0 }
 0xa63   :  { %v3210_v63 = vpack.c.bf16 %v3202_v52, %v3202_v52 }
 0xa65   :  { %5929 = vmatmul.mubr.msk.bf16.vlgmr.msra.gmra.mrb[112].mxu1 %vm1140_vm7, %v3210_v63  ;;  %v3794_v27 = vpop.permute.xlu0 %3793 }
 0xa66   :  { %5953 = vmatmul.mubr.msk.bf16.vlgmr.msra.gmra.mrb[116].mxu0 %vm755_vm4, %v3692_v39  ;;  %5939 = vmatpush3.bf16.msra.mxu1 %v3604_v45  ;;  %v3799_v17 = vsel %vm755_vm4, %v3794_v27, 0 }
 0xa67   :  { %5957 = vmatpush3.bf16.xpose.msra.mxu0 %v3749_v7  ;;  %5958 = vmatprep.mubr.msk.bf16.mxu0 %vm6622_vm3, %v8181_v11 }
 0xa68   :  { %5968 = vmatprep.subr.bf16.mxu0 %v8181_v11  ;;  %5940 = vmatprep.subr.bf16.mxu1 %v3605_v35 }
 0xa69   :  { %v3792_v48 = vpop.permute.xlu0 %3791 }
 0xa6a   :  { %5941 = vmatpush3.bf16.msra.mxu1 %v3605_v35 }
 0xa6b   :  { %v3302_v54 = vpop.f32.mrb[100].mxu0  ;;  %5962 = vmatprep.subr.bf16.mxu1 %v8181_v11 }
 0xa6c   :  { %v5900_v41 = vpop.f32.mrb[101].mxu0 }
 0xa6d   :  { %v3305_v42 = vpop.f32.mrb[102].mxu0 }
 0xa6e   :  { %v5901_v9 = vpop.f32.mrb[103].mxu0  ;;  %5959 = vmatmul.mubr.msk.bf16.vlgmr.msra.gmra.mrb[120].mxu0 %vm755_vm4, %v3742_v19 }
 0xa6f   :  { %5969 = vmatpush3.bf16.xpose.msra.mxu0 %v3849_v43  ;;  %5970 = vmatprep.mubr.msk.bf16.mxu0 %vm6622_vm3, %v8181_v11  ;;  %v3894_v9 = vpop.permute.xlu0 %3893 }
 0xa70   :  { %5980 = vmatprep.subr.bf16.mxu0 %v8181_v11  ;;  %v3899_v8 = vsel %vm755_vm4, %v3894_v9, 0 }
 0xa73   :  { %v3398_v31 = vpop.f32.mrb[104].mxu0 }
 0xa74   :  { %v5912_v38 = vpop.f32.mrb[105].mxu0 }
 0xa75   :  { %v3401_v2 = vpop.f32.mrb[106].mxu0 }
 0xa76   :  { %v5913_v13 = vpop.f32.mrb[107].mxu0  ;;  %5971 = vmatmul.mubr.msk.bf16.vlgmr.msra.gmra.mrb[124].mxu0 %vm755_vm4, %v3842_v25  ;;  %v3892_v2 = vpop.permute.xlu0 %3891 }
 0xa77   :  { %5981 = vmatpush3.bf16.xpose.msra.mxu0 %v3949_v58  ;;  %5982 = vmatprep.mubr.msk.bf16.mxu0 %vm6622_vm3, %v8181_v11 }
 0xa78   :  { %5992 = vmatprep.subr.bf16.mxu0 %v8181_v11 }
 0xa7b   :  { %v3494_v10 = vpop.f32.mrb[108].mxu0 }
 0xa7c   :  { %v5924_v30 = vpop.f32.mrb[109].mxu0 }
 0xa7d   :  { %v3497_v24 = vpop.f32.mrb[110].mxu0 }
 0xa7e   :  { %v5925_v22 = vpop.f32.mrb[111].mxu0  ;;  %5983 = vmatmul.mubr.msk.bf16.vlgmr.msra.gmra.mrb[128].mxu0 %vm755_vm4, %v3942_v50 }
 0xa7f   :  { %5993 = vmatpush3.bf16.xpose.msra.mxu0 %v4049_v37  ;;  %5994 = vmatprep.mubr.msk.bf16.mxu0 %vm6622_vm3, %v8181_v11  ;;  %v3994_v22 = vpop.permute.xlu0 %3993 }
 0xa80   :  { %6004 = vmatprep.subr.bf16.mxu0 %v8181_v11 }
 0xa83   :  { %v3590_v16 = vpop.f32.mrb[112].mxu0 }
 0xa84   :  { %v5936_v46 = vpop.f32.mrb[113].mxu0 }
 0xa85   :  { %v3593_v26 = vpop.f32.mrb[114].mxu0 }
 0xa86   :  { %v5937_v14 = vpop.f32.mrb[115].mxu0  ;;  %5995 = vmatmul.mubr.msk.bf16.vlgmr.msra.gmra.mrb[132].mxu0 %vm755_vm4, %v4042_v33  ;;  %v3999_v26 = vsel %vm755_vm4, %v3994_v22, 0 }
 0xa87   :  { %6006 = vmatprep.mubr.msk.bf16.mxu0 %vm6622_vm3, %v8181_v11 }
 0xa9f   :  { %v3254_v23 = vpop.f32.mrb[100].mxu1 }
 0xaa0   :  { %v3596_v39 = vpack.c.bf16 %v3302_v54, %v3254_v23  ;;  %v5894_v6 = vpop.f32.mrb[101].mxu1 }
 0xaa1   :  { %v3257_v55 = vpop.f32.mrb[102].mxu1 }
 0xaa2   :  { %v5895_v62 = vpop.f32.mrb[103].mxu1  ;;  %5942 = vmatprep.mubr.msk.bf16.mxu1 %vm755_vm4, %v3596_v39 }
 0xaa3   :  { %v3992_v62 = vpop.permute.xlu0 %3991 }
 0xaa7   :  { %v3350_v29 = vpop.f32.mrb[104].mxu1 }
 0xaa8   :  { %v3597_v57 = vpack.c.bf16 %v3398_v31, %v3350_v29  ;;  %v5906_v45 = vpop.f32.mrb[105].mxu1 }
 0xaa9   :  { %v3353_v19 = vpop.f32.mrb[106].mxu1 }
 0xaaa   :  { %v5907_v15 = vpop.f32.mrb[107].mxu1  ;;  %5943 = vmatmul.mubr.msk.bf16.vlgmr.msra.gmra.mrb[84].mxu1 %vm755_vm4, %v3597_v57 }
 0xaab   :  { %5963 = vmatpush3.bf16.xpose.msra.mxu1 %v3799_v17 }
 0xaac   :  { %5974 = vmatprep.subr.bf16.mxu1 %v8181_v11 }
 0xb30   :  { %v3446_v18 = vpop.f32.mrb[108].mxu1 }
 0xb31   :  { %v3598_v3 = vpack.c.bf16 %v3494_v10, %v3446_v18  ;;  %v5918_v52 = vpop.f32.mrb[109].mxu1 }
 0xb32   :  { %v3449_v21 = vpop.f32.mrb[110].mxu1 }
 0xb33   :  { %v5919_v5 = vpop.f32.mrb[111].mxu1  ;;  %5946 = vmatprep.mubr.msk.bf16.mxu1 %vm755_vm4, %v3598_v3 }
 0xb38   :  { %v3542_v0 = vpop.f32.mrb[112].mxu1 }
 0xb39   :  { %v3599_v63 = vpack.c.bf16 %v3590_v16, %v3542_v0  ;;  %v5930_v35 = vpop.f32.mrb[113].mxu1  ;;  %v3735_v7 = vpop.f32.mrb[116].mxu0 }
 0xb3a   :  { %v4091_v25 = vmul.f32 0.17677669, %v3735_v7  ;;  %v3545_v54 = vpop.f32.mrb[114].mxu1  ;;  %v5954_v41 = vpop.f32.mrb[117].mxu0 }
 0xb3b   :  { %v5931_v42 = vpop.f32.mrb[115].mxu1  ;;  %5947 = vmatmul.mubr.msk.bf16.gmra.mrb[88].mxu1 %vm755_vm4, %v3599_v63  ;;  %v3738_v43 = vpop.f32.mrb[118].mxu0 }
 0xb3c   :  { %v4099_v49 = vadd.f32 %v4091_v25, %v7102_v44  ;;  %v5955_v31 = vpop.f32.mrb[119].mxu0  ;;  %5964 = vmatprep.mubr.msk.bf16.mxu1 %vm6622_vm3, %v8181_v11 }
 0xb3e   :  { %v4107_v38 = vsel %vm1140_vm7, %v4099_v49, -inf }
 0xb3f   :  { %4108 = vmax.xlane.f32.xlu0 %v4107_v38 }
 0xb41   :  { %v3785_v50 = vpop.f32.mrb[120].mxu0 }
 0xb42   :  { %v4092_v58 = vmul.f32 0.17677669, %v3785_v50  ;;  %v5960_v13 = vpop.f32.mrb[121].mxu0 }
 0xb43   :  { %v3788_v10 = vpop.f32.mrb[122].mxu0  ;;  %5965 = vmatmul.mubr.msk.bf16.vlgmr.msra.gmra.mrb[116].mxu1 %vm755_vm4, %v3792_v48 }
 0xb44   :  { %v4100_v30 = vadd.f32 %v4092_v58, %v7102_v44  ;;  %5975 = vmatpush3.bf16.xpose.msra.mxu1 %v3899_v8  ;;  %v5961_v24 = vpop.f32.mrb[123].mxu0  ;;  %5976 = vmatprep.mubr.msk.bf16.mxu1 %vm6622_vm3, %v8181_v11 }
 0xb45   :  { %5986 = vmatprep.subr.bf16.mxu1 %v8181_v11 }
 0xb46   :  { %v4110_v37 = vsel %vm1140_vm7, %v4100_v30, -inf }
 0xb47   :  { %4111 = vmax.xlane.f32.xlu1 %v4110_v37 }
 0xb49   :  { %v3885_v16 = vpop.f32.mrb[124].mxu0 }
 0xb4a   :  { %v4094_v46 = vmul.f32 0.17677669, %v3885_v16  ;;  %v5972_v33 = vpop.f32.mrb[125].mxu0 }
 0xb4b   :  { %v3888_v14 = vpop.f32.mrb[126].mxu0  ;;  %5977 = vmatmul.mubr.msk.bf16.vlgmr.msra.gmra.mrb[120].mxu1 %vm755_vm4, %v3892_v2 }
 0xb4c   :  { %v4102_v23 = vadd.f32 %v4094_v46, %v7102_v44  ;;  %5987 = vmatpush3.bf16.xpose.msra.mxu1 %v3999_v26  ;;  %v5973_v39 = vpop.f32.mrb[127].mxu0  ;;  %5988 = vmatprep.mubr.msk.bf16.mxu1 %vm6622_vm3, %v8181_v11 }
 0xb4d   :  { %5998 = vmatprep.subr.bf16.mxu1 %v8181_v11 }
 0xb4e   :  { %v4116_v6 = vsel %vm1140_vm7, %v4102_v23, -inf }
 0xb4f   :  { %4117 = vmax.xlane.f32.xlu0 %v4116_v6 }
 0xb51   :  { %v3985_v55 = vpop.f32.mrb[128].mxu0 }
 0xb52   :  { %v4096_v27 = vmul.f32 0.17677669, %v3985_v55  ;;  %v5984_v29 = vpop.f32.mrb[129].mxu0 }
 0xb53   :  { %v3988_v57 = vpop.f32.mrb[130].mxu0  ;;  %5989 = vmatmul.mubr.msk.bf16.vlgmr.msra.gmra.mrb[124].mxu1 %vm755_vm4, %v3992_v62 }
 0xb54   :  { %v4104_v45 = vadd.f32 %v4096_v27, %v7102_v44  ;;  %v5985_v19 = vpop.f32.mrb[131].mxu0  ;;  %6000 = vmatprep.mubr.msk.bf16.mxu1 %vm6622_vm3, %v8181_v11 }
 0xb56   :  { %v4122_v17 = vsel %vm1140_vm7, %v4104_v45, -inf }
 0xb57   :  { %4123 = vmax.xlane.f32.xlu1 %v4122_v17 }
 0xb59   :  { %v4085_v15 = vpop.f32.mrb[132].mxu0 }
 0xb5a   :  { %v4098_v18 = vmul.f32 0.17677669, %v4085_v15  ;;  %v5996_v3 = vpop.f32.mrb[133].mxu0 }
 0xb5b   :  { %v4088_v52 = vpop.f32.mrb[134].mxu0 }
 0xb5c   :  { %v4106_v21 = vadd.f32 %v4098_v18, %v7102_v44  ;;  %v5997_v5 = vpop.f32.mrb[135].mxu0 }
 0xb5e   :  { %v4128_v48 = vsel %vm1140_vm7, %v4106_v21, -inf }
 0xb5f   :  { %4129 = vmax.xlane.f32.xlu1 %v4128_v48 }
 0xbcc   :  { %v4109_v0 = vpop.xlane.xlu0 %4108 }
 0xbcd   :  { %v4131_v63 = vsub.f32 %v4099_v49, %v4109_v0 }
 0xbcf   :  { %v4139_v35 = vmul.f32 1.442695, %v4131_v63 }
 0xbd1   :  { %6274 = vpow2.f32 %v4139_v35 }
 0xbd4   :  { %v4112_v7 = vpop.xlane.xlu1 %4111 }
 0xbd5   :  { %v4132_v25 = vsub.f32 %v4100_v30, %v4112_v7 }
 0xbd7   :  { %v4141_v54 = vmul.f32 1.442695, %v4132_v25 }
 0xbd9   :  { %6276 = vpow2.f32 %v4141_v54 }
 0xbdb   :  { %v7752_v41 = vpop.eup %6274 }
 0xbdc   :  { %v4118_v42 = vpop.xlane.xlu0 %4117  ;;  %v4155_v43 = vsel %vm1140_vm7, %v7752_v41, 0.0 }
 0xbdd   :  { %v4134_v9 = vsub.f32 %v4102_v23, %v4118_v42  ;;  %4156 = vadd.xlane.f32.xlu0 %v4155_v43 }
 0xbdf   :  { %v4145_v31 = vmul.f32 1.442695, %v4134_v9 }
 0xbe1   :  { %6278 = vpow2.f32 %v4145_v31 }
 0xbe3   :  { %v6277_v38 = vpop.eup %6276 }
 0xbe4   :  { %v4124_v50 = vpop.xlane.xlu1 %4123  ;;  %v4158_v49 = vsel %vm1140_vm7, %v6277_v38, 0.0 }
 0xbe5   :  { %v4136_v2 = vsub.f32 %v4104_v45, %v4124_v50  ;;  %4159 = vadd.xlane.f32.xlu1 %v4158_v49 }
 0xbe7   :  { %v4149_v58 = vmul.f32 1.442695, %v4136_v2 }
 0xbe9   :  { %6280 = vpow2.f32 %v4149_v58 }
 0xbeb   :  { %v6279_v13 = vpop.eup %6278 }
 0xbec   :  { %v4130_v8 = vpop.xlane.xlu1 %4129  ;;  %v4164_v10 = vsel %vm1140_vm7, %v6279_v13, 0.0 }
 0xbed   :  { %v4138_v30 = vsub.f32 %v4106_v21, %v4130_v8  ;;  %4165 = vadd.xlane.f32.xlu1 %v4164_v10 }
 0xbef   :  { %v4153_v24 = vmul.f32 1.442695, %v4138_v30 }
 0xbf1   :  { %6282 = vpow2.f32 %v4153_v24 }
 0xbf3   :  { %v7758_v37 = vpop.eup %6280 }
 0xbf4   :  { %v4170_v22 = vsel %vm1140_vm7, %v7758_v37, 0.0 }
 0xbf5   :  { %4171 = vadd.xlane.f32.xlu1 %v4170_v22 }
 0xbfb   :  { %v7762_v16 = vpop.eup %6282 }
 0xbfc   :  { %v4176_v46 = vsel %vm1140_vm7, %v7762_v16, 0.0 }
 0xbfd   :  { %4177 = vadd.xlane.f32.xlu1 %v4176_v46 }
 0xc0e   :  { %4251 = vrot.lane.b32.xlu1 %v7090_v4, %s6626_s18 }
 0xc12   :  { %4299 = vrot.lane.b32.xlu1 %v7186_v53, %s6626_s18 }
 0xc16   :  { %v3835_v33 = vpop.f32.mrb[116].mxu1  ;;  %4347 = vrot.lane.b32.xlu1 %v7202_v47, %s6626_s18 }
 0xc17   :  { %v4093_v26 = vmul.f32 0.17677669, %v3835_v33  ;;  %v5966_v14 = vpop.f32.mrb[117].mxu1 }
 0xc18   :  { %v3838_v23 = vpop.f32.mrb[118].mxu1 }
 0xc19   :  { %v7773_v39 = vadd.f32 %v4093_v26, %v7102_v44  ;;  %v5967_v6 = vpop.f32.mrb[119].mxu1 }
 0xc1a   :  { %4443 = vrot.lane.b32.xlu1 %v7224_v1, %s6626_s18 }
 0xc1b   :  { %v4113_v4 = vsel %vm1140_vm7, %v7773_v39, -inf }
 0xc1c   :  { %4114 = vmax.xlane.f32.xlu0 %v4113_v4 }
 0xc1e   :  { %v3935_v55 = vpop.f32.mrb[120].mxu1  ;;  %4539 = vrot.lane.b32.xlu1 %v7242_v20, %s6626_s18 }
 0xc1f   :  { %v4095_v53 = vmul.f32 0.17677669, %v3935_v55  ;;  %v5978_v47 = vpop.f32.mrb[121].mxu1 }
 0xc20   :  { %v3938_v62 = vpop.f32.mrb[122].mxu1 }
 0xc21   :  { %v7782_v27 = vadd.f32 %v4095_v53, %v7102_v44  ;;  %v5979_v29 = vpop.f32.mrb[123].mxu1 }
 0xc23   :  { %v4119_v57 = vsel %vm1140_vm7, %v7782_v27, -inf }
 0xc24   :  { %4120 = vmax.xlane.f32.xlu0 %v4119_v57 }
 0xc26   :  { %v4035_v1 = vpop.f32.mrb[124].mxu1 }
 0xc27   :  { %v4097_v45 = vmul.f32 0.17677669, %v4035_v1  ;;  %v5990_v19 = vpop.f32.mrb[125].mxu1 }
 0xc28   :  { %v4038_v17 = vpop.f32.mrb[126].mxu1 }
 0xc29   :  { %v7787_v15 = vadd.f32 %v4097_v45, %v7102_v44  ;;  %v5991_v18 = vpop.f32.mrb[127].mxu1 }
 0xc2b   :  { %v4125_v20 = vsel %vm1140_vm7, %v7787_v15, -inf }
 0xc2c   :  { %4126 = vmax.xlane.f32.xlu0 %v4125_v20 }
 0xc42   :  { %4203 = vrot.lane.b32.xlu0 %v7066_v12, %s6626_s18 }
 0xc6a   :  { %v4157_v8 = vpop.xlane.xlu0 %4156 }
 0xc72   :  { %v4160_v3 = vpop.xlane.xlu1 %4159 }
 0xc73   :  { %6284 = vrcp.f32 %v4160_v3 }
 0xc7a   :  { %v4166_v52 = vpop.xlane.xlu1 %4165 }
 0xc7b   :  { %6286 = vrcp.f32 %v4166_v52 }
 0xc7d   :  { %v6285_v5 = vpop.eup %6284 }
 0xc7e   :  { %v4188_v0 = vmul.f32 %v6285_v5, %v6277_v38 }
 0xc80   :  { %v4196_v35 = vpack.c.bf16 %v4188_v0, %v4188_v0 }
 0xc82   :  { %v4172_v21 = vpop.xlane.xlu1 %4171 }
 0xc83   :  { %6288 = vrcp.f32 %v4172_v21 }
 0xc85   :  { %v6287_v7 = vpop.eup %6286 }
 0xc86   :  { %v4190_v12 = vmul.f32 %v6287_v7, %v6279_v13 }
 0xc88   :  { %v4198_v43 = vpack.c.bf16 %v4190_v12, %v4190_v12 }
 0xc8a   :  { %v4178_v48 = vpop.xlane.xlu1 %4177 }
 0xc8b   :  { %6290 = vrcp.f32 %v4178_v48 }
 0xc8d   :  { %v6289_v9 = vpop.eup %6288 }
 0xc8e   :  { %v4252_v63 = vpop.permute.xlu1 %4251  ;;  %v4192_v50 = vmul.f32 %v6289_v9, %v7758_v37 }
 0xc8f   :  { %v4257_v44 = vsel %vm1240_vm5, %v4252_v63, 0 }
 0xc90   :  { %6005 = vmatpush3.bf16.msra.mxu0 %v4257_v44  ;;  %v4200_v2 = vpack.c.bf16 %v4192_v50, %v4192_v50  ;;  %v4592_v50 = vld [vmem:[#allocation12 + $0x68] sm:$0xff] }
 0xc91   :  { %6016 = vmatprep.subr.bf16.mxu0 %v8181_v11 }
 0xc92   :  { %v4300_v25 = vpop.permute.xlu1 %4299 }
 0xc93   :  { %6007 = vmatmul.mubr.msk.bf16.vlgmr.msra.gmra.mrb[136].mxu0 %vm1140_vm7, %v4196_v35 }
 0xc94   :  { %6018 = vmatprep.mubr.msk.bf16.mxu0 %vm6622_vm3, %v8181_v11 }
 0xc95   :  { %v6291_v58 = vpop.eup %6290 }
 0xc96   :  { %v4348_v54 = vpop.permute.xlu1 %4347  ;;  %v4194_v10 = vmul.f32 %v6291_v58, %v7762_v16 }
 0xc97   :  { %v4353_v42 = vsel %vm1240_vm5, %v4348_v54, 0 }
 0xc98   :  { %6017 = vmatpush3.bf16.msra.mxu0 %v4353_v42  ;;  %v4202_v24 = vpack.c.bf16 %v4194_v10, %v4194_v10 }
 0xc99   :  { %6028 = vmatprep.subr.bf16.mxu0 %v8181_v11 }
 0xc9a   :  { %v4444_v31 = vpop.permute.xlu1 %4443 }
 0xc9b   :  { %v4449_v38 = vsel %vm1240_vm5, %v4444_v31, 0  ;;  %6019 = vmatmul.mubr.msk.bf16.vlgmr.msra.gmra.mrb[140].mxu0 %vm1140_vm7, %v4198_v43 }
 0xc9c   :  { %6029 = vmatpush3.bf16.msra.mxu0 %v4449_v38  ;;  %6030 = vmatprep.mubr.msk.bf16.mxu0 %vm6622_vm3, %v8181_v11  ;;  %v4591_v38 = vld [vmem:[#allocation12 + $0x60] sm:$0xff] }
 0xc9d   :  { %6040 = vmatprep.subr.bf16.mxu0 %v8181_v11 }
 0xc9e   :  { %v4540_v49 = vpop.permute.xlu1 %4539 }
 0xc9f   :  { %v4545_v13 = vsel %vm1240_vm5, %v4540_v49, 0 }
 0xca3   :  { %6031 = vmatmul.mubr.msk.bf16.vlgmr.msra.gmra.mrb[144].mxu0 %vm1140_vm7, %v4200_v2 }
 0xca4   :  { %6041 = vmatpush3.bf16.msra.mxu0 %v4545_v13  ;;  %6042 = vmatprep.mubr.msk.bf16.mxu0 %vm6622_vm3, %v8181_v11  ;;  %v4595_v13 = vpack.c.bf16 %v4592_v50, %v4591_v38 }
 0xca9   :  { %v4115_v30 = vpop.xlane.xlu0 %4114 }
 0xcaa   :  { %v4133_v37 = vsub.f32 %v7773_v39, %v4115_v30  ;;  %v4305_v39 = vsel %vm1240_vm5, %v4300_v25, 0 }
 0xcab   :  { %6043 = vmatmul.mubr.msk.bf16.vlgmr.msra.gmra.mrb[148].mxu0 %vm1140_vm7, %v4202_v24  ;;  %v4593_v24 = vld [vmem:[#allocation12 + $0x70] sm:$0xff] }
 0xcac   :  { %v4143_v22 = vmul.f32 1.442695, %v4133_v37  ;;  %v4594_v37 = vld [vmem:[#allocation12 + $0x78] sm:$0xff] }
 0xcae   :  { %6292 = vpow2.f32 %v4143_v22 }
 0xcaf   :  { %6294 = vrcp.f32 %v4157_v8 }
 0xcb1   :  { %v4121_v46 = vpop.xlane.xlu0 %4120 }
 0xcb8   :  { %v6293_v33 = vpop.eup %6292 }
 0xcb9   :  { %v6295_v26 = vpop.eup %6294  ;;  %v4127_v14 = vpop.xlane.xlu0 %4126  ;;  %v4161_v23 = vsel %vm1140_vm7, %v6293_v33, 0.0 }
 0xcba   :  { %4162 = vadd.xlane.f32.xlu0 %v4161_v23  ;;  %v4187_v6 = vmul.f32 %v6295_v26, %v7752_v41  ;;  %v4135_v41 = vsub.f32 %v7782_v27, %v4121_v46  ;;  %v4137_v47 = vsub.f32 %v7787_v15, %v4127_v14  ;;  %v4596_v46 = vpack.c.bf16 %v4594_v37, %v4593_v24 }
 0xcbc   :  { %v4195_v55 = vpack.c.bf16 %v4187_v6, %v4187_v6  ;;  %v4147_v53 = vmul.f32 1.442695, %v4135_v41  ;;  %v4151_v62 = vmul.f32 1.442695, %v4137_v47 }
 0xcbd   :  { %v4204_v4 = vpop.permute.xlu0 %4203 }
 0xcbe   :  { %v4209_v16 = vsel %vm1240_vm5, %v4204_v4, 0  ;;  %6296 = vpow2.f32 %v4147_v53 }
 0xcbf   :  { %5999 = vmatpush3.bf16.msra.mxu1 %v4209_v16  ;;  %6298 = vpow2.f32 %v4151_v62 }
 0xcc0   :  { %6010 = vmatprep.subr.bf16.mxu1 %v8181_v11 }
 0xcc2   :  { %6001 = vmatmul.mubr.msk.bf16.vlgmr.msra.gmra.mrb[128].mxu1 %vm1140_vm7, %v4195_v55 }
 0xcc3   :  { %6011 = vmatpush3.bf16.msra.mxu1 %v4305_v39  ;;  %6012 = vmatprep.mubr.msk.bf16.mxu1 %vm6622_vm3, %v8181_v11 }
 0xcc4   :  { %6022 = vmatprep.subr.bf16.mxu1 %v8181_v11 }
 0xcc8   :  { %v6297_v29 = vpop.eup %6296 }
 0xcc9   :  { %v4167_v57 = vsel %vm1140_vm7, %v6297_v29, 0.0  ;;  %v6299_v1 = vpop.eup %6298 }
 0xcca   :  { %v4173_v45 = vsel %vm1140_vm7, %v6299_v1, 0.0 }
 0xcd0   :  { %4395 = vrot.lane.b32.xlu0 %v7197_v32, %s6626_s18 }
 0xcef   :  { %4168 = vadd.xlane.f32.xlu0 %v4167_v57 }
 0xcf3   :  { %4174 = vadd.xlane.f32.xlu0 %v4173_v45 }
 0xd09   :  { %4491 = vrot.lane.b32.xlu0 %v7218_v56, %s6626_s18 }
 0xd47   :  { %v4163_v32 = vpop.xlane.xlu0 %4162 }
 0xd48   :  { %6300 = vrcp.f32 %v4163_v32 }
 0xd4b   :  { %v4396_v17 = vpop.permute.xlu0 %4395 }
 0xd4c   :  { %v4401_v18 = vsel %vm1240_vm5, %v4396_v17, 0  ;;  %v5379_v17 = vld [vmem:[#allocation13] ss:$0 sm:$0xff] }
 0xd52   :  { %v6301_v27 = vpop.eup %6300 }
 0xd53   :  { %v4189_v19 = vmul.f32 %v6301_v27, %v6293_v33 }
 0xd55   :  { %v4197_v15 = vpack.c.bf16 %v4189_v19, %v4189_v19 }
 0xd57   :  { %6013 = vmatmul.mubr.msk.bf16.vlgmr.msra.gmra.mrb[132].mxu1 %vm1140_vm7, %v4197_v15 }
 0xd58   :  { %6023 = vmatpush3.bf16.msra.mxu1 %v4401_v18  ;;  %6024 = vmatprep.mubr.msk.bf16.mxu1 %vm6622_vm3, %v8181_v11 }
 0xd59   :  { %6034 = vmatprep.subr.bf16.mxu1 %v8181_v11 }
 0xd66   :  { %v4293_v20 = vpop.f32.mrb[136].mxu0 }
 0xd67   :  { %v6008_v3 = vpop.f32.mrb[137].mxu0 }
 0xd68   :  { %v4296_v52 = vpop.f32.mrb[138].mxu0 }
 0xd69   :  { %v6009_v56 = vpop.f32.mrb[139].mxu0 }
 0xd6e   :  { %v4389_v21 = vpop.f32.mrb[140].mxu0 }
 0xd6f   :  { %v6020_v5 = vpop.f32.mrb[141].mxu0 }
 0xd70   :  { %v4392_v48 = vpop.f32.mrb[142].mxu0 }
 0xd71   :  { %v6021_v0 = vpop.f32.mrb[143].mxu0 }
 0xd76   :  { %v4485_v63 = vpop.f32.mrb[144].mxu0 }
 0xd77   :  { %v6032_v44 = vpop.f32.mrb[145].mxu0 }
 0xd78   :  { %v4488_v35 = vpop.f32.mrb[146].mxu0 }
 0xd79   :  { %v6033_v7 = vpop.f32.mrb[147].mxu0 }
 0xd7c   :  { %v4169_v25 = vpop.xlane.xlu0 %4168 }
 0xd7d   :  { %6302 = vrcp.f32 %v4169_v25 }
 0xd7e   :  { %v4581_v12 = vpop.f32.mrb[148].mxu0 }
 0xd7f   :  { %v6044_v54 = vpop.f32.mrb[149].mxu0 }
 0xd80   :  { %v4175_v42 = vpop.xlane.xlu0 %4174  ;;  %v4584_v43 = vpop.f32.mrb[150].mxu0 }
 0xd81   :  { %6304 = vrcp.f32 %v4175_v42  ;;  %v6045_v9 = vpop.f32.mrb[151].mxu0 }
 0xd84   :  { %v4492_v2 = vpop.permute.xlu0 %4491 }
 0xd85   :  { %v4497_v10 = vsel %vm1240_vm5, %v4492_v2, 0 }
 0xd87   :  { %v6303_v31 = vpop.eup %6302 }
 0xd88   :  { %v4191_v49 = vmul.f32 %v6303_v31, %v6297_v29  ;;  %v4825_v31 = vld [vmem:[#allocation16 + $0x8] sm:$0xff] }
 0xd8a   :  { %v4199_v58 = vpack.c.bf16 %v4191_v49, %v4191_v49 }
 0xd8b   :  { %v6305_v8 = vpop.eup %6304 }
 0xd8c   :  { %6025 = vmatmul.mubr.msk.bf16.vlgmr.msra.gmra.mrb[136].mxu1 %vm1140_vm7, %v4199_v58  ;;  %v4193_v30 = vmul.f32 %v6305_v8, %v6299_v1 }
 0xd8d   :  { %6035 = vmatpush3.bf16.msra.mxu1 %v4497_v10  ;;  %6036 = vmatprep.mubr.msk.bf16.mxu1 %vm6622_vm3, %v8181_v11 }
 0xd8e   :  { %6046 = vmatprep.subr.bf16.mxu1 %v4595_v13  ;;  %v4201_v22 = vpack.c.bf16 %v4193_v30, %v4193_v30 }
 0xd94   :  { %6037 = vmatmul.mubr.msk.bf16.vlgmr.msra.gmra.mrb[140].mxu1 %vm1140_vm7, %v4201_v22 }
 0xd95   :  { %v4245_v33 = vpop.f32.mrb[128].mxu1  ;;  %6047 = vmatpush3.bf16.msra.mxu1 %v4595_v13 }
 0xd96   :  { %v4587_v26 = vpack.c.bf16 %v4293_v20, %v4245_v33  ;;  %v6002_v14 = vpop.f32.mrb[129].mxu1  ;;  %6048 = vmatprep.subr.bf16.mxu1 %v4596_v46 }
 0xd97   :  { %v4248_v23 = vpop.f32.mrb[130].mxu1  ;;  %v4827_v14 = vld [vmem:[#allocation16 + $0x18] sm:$0xff] }
 0xd98   :  { %v6003_v6 = vpop.f32.mrb[131].mxu1  ;;  %6050 = vmatprep.mubr.msk.bf16.mxu1 %vm755_vm4, %v4587_v26  ;;  %v4826_v26 = vld [vmem:[#allocation16 + $0x10] sm:$0xff] }
 0xd99   :  { %6049 = vmatpush3.bf16.msra.mxu1 %v4596_v46  ;;  %v4841_v23 = vpack.c.bf16 %v4827_v14, %v4826_v26  ;;  %v4828_v6 = vld [vmem:[#allocation16 + $0x20] sm:$0xff] }
 0xe2a   :  { %v4341_v4 = vpop.f32.mrb[132].mxu1 }
 0xe2b   :  { %v4588_v16 = vpack.c.bf16 %v4389_v21, %v4341_v4  ;;  %v6014_v55 = vpop.f32.mrb[133].mxu1  ;;  %v4829_v4 = vld [vmem:[#allocation16 + $0x28] sm:$0xff] }
 0xe2c   :  { %v4344_v39 = vpop.f32.mrb[134].mxu1  ;;  %v4830_v55 = vld [vmem:[#allocation16 + $0x30] sm:$0xff] }
 0xe2d   :  { %v6015_v41 = vpop.f32.mrb[135].mxu1  ;;  %6051 = vmatmul.mubr.msk.bf16.vlgmr.msra.gmra.mrb[84].mxu1 %vm755_vm4, %v4588_v16  ;;  %v4842_v16 = vpack.c.bf16 %v4829_v4, %v4828_v6  ;;  %v4831_v39 = vld [vmem:[#allocation16 + $0x38] sm:$0xff] }
 0xe2e   :  { %v4843_v41 = vpack.c.bf16 %v4831_v39, %v4830_v55 }
 0xe5f   :  { %v4437_v53 = vpop.f32.mrb[136].mxu1 }
 0xe60   :  { %v4589_v47 = vpack.c.bf16 %v4485_v63, %v4437_v53  ;;  %v6026_v62 = vpop.f32.mrb[137].mxu1  ;;  %v4832_v53 = vld [vmem:[#allocation16 + $0x40] sm:$0xff] }
 0xe61   :  { %v4440_v29 = vpop.f32.mrb[138].mxu1 }
 0xe62   :  { %v6027_v57 = vpop.f32.mrb[139].mxu1  ;;  %6054 = vmatprep.mubr.msk.bf16.mxu1 %vm755_vm4, %v4589_v47  ;;  %v4833_v47 = vld [vmem:[#allocation16 + $0x48] sm:$0xff]  ;;  %v4834_v29 = vld [vmem:[#allocation16 + $0x50] sm:$0xff] }
 0xe63   :  { %v4844_v62 = vpack.c.bf16 %v4833_v47, %v4832_v53  ;;  %v4835_v57 = vld [vmem:[#allocation16 + $0x58] sm:$0xff] }
 0xe64   :  { %v5380_v53 = vld [vmem:[#allocation15] ss:$0 sm:$0xff] }
 0xe67   :  { %v4533_v1 = vpop.f32.mrb[140].mxu1 }
 0xe68   :  { %v4590_v45 = vpack.c.bf16 %v4581_v12, %v4533_v1  ;;  %v6038_v32 = vpop.f32.mrb[141].mxu1  ;;  %v4845_v1 = vpack.c.bf16 %v4835_v57, %v4834_v29 }
 0xe69   :  { %v4536_v27 = vpop.f32.mrb[142].mxu1  ;;  %v4837_v32 = vld [vmem:[#allocation16 + $0x68] sm:$0xff] }
 0xe6a   :  { %v6039_v19 = vpop.f32.mrb[143].mxu1  ;;  %6055 = vmatmul.mubr.msk.bf16.gmra.mrb[88].mxu1 %vm755_vm4, %v4590_v45  ;;  %v4836_v45 = vld [vmem:[#allocation16 + $0x60] sm:$0xff] }
 0xe6b   :  { %v4846_v27 = vpack.c.bf16 %v4837_v32, %v4836_v45  ;;  %v4838_v19 = vld [vmem:[#allocation16 + $0x70] sm:$0xff]  ;;  %v5381_v45 = vld [vmem:[#allocation15 + $0x1] ss:$0 sm:$0xff] }
 0xf00   :  { %v6052_v15 = vpop.f32.mrb[84].mxu1 }
 0xf01   :  { %v4643_v18 = vpop.f32.mrb[85].mxu1  ;;  %v4691_v56 = vadd.f32 %v6052_v15, %v5379_v17 }
 0xf02   :  { %v4689_v20 = vadd.f32 %v5379_v17, %v4643_v18  ;;  %v6053_v3 = vpop.f32.mrb[86].mxu1 }
 0xf03   :  { %v4646_v52 = vpop.f32.mrb[87].mxu1  ;;  %v4699_v0 = vadd.f32 %v4691_v56, %v6921_v40  ;;  %v4692_v63 = vadd.f32 %v6053_v3, %v5379_v17 }
 0xf04   :  { %v4697_v21 = vadd.f32 %v4689_v20, %v6917_v34  ;;  %v4690_v5 = vadd.f32 %v5379_v17, %v4646_v52 }
 0xf05   :  { %v4700_v44 = vadd.f32 %v4692_v63, %v6915_v28 }
 0xf06   :  { %v4698_v48 = vadd.f32 %v4690_v5, %v6919_v36  ;;  %4707 = vadd.xlane.f32.xlu0 %v4697_v21 }
 0xf08   :  { %4709 = vadd.xlane.f32.xlu1 %v4698_v48 }
 0xf0a   :  { %4711 = vadd.xlane.f32.xlu0 %v4699_v0 }
 0xf0e   :  { %4713 = vadd.xlane.f32.xlu0 %v4700_v44 }
 0xf3d   :  { %v6056_v35 = vpop.f32.mrb[88].mxu1 }
 0xf3e   :  { %v4695_v7 = vadd.f32 %v6056_v35, %v5379_v17  ;;  %v4659_v25 = vpop.f32.mrb[89].mxu1 }
 0xf3f   :  { %v4693_v12 = vadd.f32 %v5379_v17, %v4659_v25  ;;  %v6057_v54 = vpop.f32.mrb[90].mxu1 }
 0xf40   :  { %v4696_v42 = vadd.f32 %v6057_v54, %v5379_v17  ;;  %v4662_v43 = vpop.f32.mrb[91].mxu1  ;;  %v7856_v40 = vadd.f32 %v4695_v7, %v6932_v51 }
 0xf41   :  { %v7849_v34 = vadd.f32 %v4693_v12, %v6934_v59  ;;  %v4694_v36 = vadd.f32 %v5379_v17, %v4662_v43  ;;  %v4824_v59 = vld [vmem:[#allocation16] sm:$0xff]  ;;  %v4839_v17 = vld [vmem:[#allocation16 + $0x78] sm:$0xff] }
 0xf42   :  { %v7860_v28 = vadd.f32 %v4696_v42, %v6936_v60  ;;  %v4840_v38 = vpack.c.bf16 %v4825_v31, %v4824_v59  ;;  %v4847_v15 = vpack.c.bf16 %v4839_v17, %v4838_v19  ;;  %v4932_v42 = vld [vmem:[%s8165_s12] sm:$0xff]  ;;  %v4933_v43 = vld [vmem:[%s8165_s12 + $0x8] sm:$0xff] }
 0xf43   :  { %v7852_v9 = vadd.f32 %v4694_v36, %v6938_v61  ;;  %4715 = vadd.xlane.f32.xlu0 %v7849_v34  ;;  %v4948_v36 = vpack.c.bf16 %v4933_v43, %v4932_v42  ;;  %v4937_v59 = vld [vmem:[%s8165_s12 + $0x28] sm:$0xff] }
 0xf44   :  { %6058 = vmatprep.subr.bf16.mxu0 %v4840_v38 }
 0xf45   :  { %4717 = vadd.xlane.f32.xlu1 %v7852_v9  ;;  %6059 = vmatpush3.bf16.msra.mxu0 %v4840_v38  ;;  %v4938_v38 = vld [vmem:[%s8165_s12 + $0x30] sm:$0xff] }
 0xf46   :  { %6060 = vmatprep.subr.bf16.mxu0 %v4841_v23  ;;  %6082 = vmatprep.subr.bf16.mxu1 %v4948_v36 }
 0xf47   :  { %4719 = vadd.xlane.f32.xlu0 %v7856_v40  ;;  %6083 = vmatpush3.bf16.msra.mxu1 %v4948_v36 }
 0xf49   :  { %4721 = vadd.xlane.f32.xlu1 %v7860_v28  ;;  %6061 = vmatpush3.bf16.msra.mxu0 %v4841_v23 }
 0xf4a   :  { %6062 = vmatprep.subr.bf16.mxu0 %v4842_v16 }
 0xf4d   :  { %6063 = vmatpush3.bf16.msra.mxu0 %v4842_v16 }
 0xf4e   :  { %6064 = vmatprep.subr.bf16.mxu0 %v4843_v41 }
 0xf51   :  { %6065 = vmatpush3.bf16.msra.mxu0 %v4843_v41 }
 0xf52   :  { %6066 = vmatprep.subr.bf16.mxu0 %v4844_v62 }
 0xf55   :  { %6067 = vmatpush3.bf16.msra.mxu0 %v4844_v62 }
 0xf56   :  { %6068 = vmatprep.subr.bf16.mxu0 %v4845_v1 }
 0xf59   :  { %6069 = vmatpush3.bf16.msra.mxu0 %v4845_v1 }
 0xf5a   :  { %6070 = vmatprep.subr.bf16.mxu0 %v4846_v27 }
 0xf5d   :  { %6071 = vmatpush3.bf16.msra.mxu0 %v4846_v27 }
 0xf5e   :  { %6072 = vmatprep.subr.bf16.mxu0 %v4847_v15 }
 0xf61   :  { %6073 = vmatpush3.bf16.msra.mxu0 %v4847_v15 }
 0xf62   :  { %6106 = vmatprep.subr.bf16.mxu0 %v8181_v11 }
 0xf93   :  { %v4708_v61 = vpop.xlane.xlu0 %4707 }
 0xf94   :  { %v4724_v50 = vmul.f32 0.0078125, %v4708_v61  ;;  %v4939_v61 = vld [vmem:[%s8165_s12 + $0x38] sm:$0xff] }
 0xf95   :  { %v4710_v49 = vpop.xlane.xlu1 %4709 }
 0xf96   :  { %v7864_v2 = vsub.f32 %v4697_v21, %v4724_v50  ;;  %v4725_v51 = vmul.f32 0.0078125, %v4710_v49  ;;  %v4951_v50 = vpack.c.bf16 %v4939_v61, %v4938_v38  ;;  %v4940_v49 = vld [vmem:[%s8165_s12 + $0x40] sm:$0xff] }
 0xf97   :  { %v4712_v58 = vpop.xlane.xlu0 %4711 }
 0xf98   :  { %v7866_v13 = vsub.f32 %v4698_v48, %v4725_v51  ;;  %v4726_v60 = vmul.f32 0.0078125, %v4712_v58  ;;  %v4740_v8 = vmul.f32 %v7864_v2, %v7864_v2  ;;  %v4941_v51 = vld [vmem:[%s8165_s12 + $0x48] sm:$0xff] }
 0xf99   :  { %v4952_v58 = vpack.c.bf16 %v4941_v51, %v4940_v49 }
 0xf9a   :  { %v7870_v10 = vsub.f32 %v4699_v0, %v4726_v60  ;;  %4748 = vadd.xlane.f32.xlu0 %v4740_v8  ;;  %v4741_v30 = vmul.f32 %v7866_v13, %v7866_v13  ;;  %v4942_v60 = vld [vmem:[%s8165_s12 + $0x50] sm:$0xff]  ;;  %v4943_v8 = vld [vmem:[%s8165_s12 + $0x58] sm:$0xff] }
 0xf9b   :  { %v4714_v24 = vpop.xlane.xlu0 %4713 }
 0xf9c   :  { %v4727_v37 = vmul.f32 0.0078125, %v4714_v24  ;;  %4750 = vadd.xlane.f32.xlu1 %v4741_v30  ;;  %v4742_v22 = vmul.f32 %v7870_v10, %v7870_v10  ;;  %v4953_v30 = vpack.c.bf16 %v4943_v8, %v4942_v60 }
 0xf9e   :  { %v7876_v46 = vsub.f32 %v4700_v44, %v4727_v37  ;;  %4752 = vadd.xlane.f32.xlu0 %v4742_v22 }
 0xfa0   :  { %v4743_v33 = vmul.f32 %v7876_v46, %v7876_v46 }
 0xfa2   :  { %4754 = vadd.xlane.f32.xlu1 %v4743_v33 }
 0xfd0   :  { %v4716_v18 = vpop.xlane.xlu0 %4715 }
 0xfd1   :  { %v4728_v20 = vmul.f32 0.0078125, %v4716_v18 }
 0xfd2   :  { %v4718_v3 = vpop.xlane.xlu1 %4717 }
 0xfd3   :  { %v7882_v52 = vsub.f32 %v7849_v34, %v4728_v20  ;;  %v4729_v56 = vmul.f32 0.0078125, %v4718_v3  ;;  %v4934_v34 = vld [vmem:[%s8165_s12 + $0x10] sm:$0xff] }
 0xfd4   :  { %v4720_v21 = vpop.xlane.xlu0 %4719 }
 0xfd5   :  { %v7885_v5 = vsub.f32 %v7852_v9, %v4729_v56  ;;  %v4730_v48 = vmul.f32 0.0078125, %v4720_v21  ;;  %v4744_v0 = vmul.f32 %v7882_v52, %v7882_v52  ;;  %v4935_v9 = vld [vmem:[%s8165_s12 + $0x18] sm:$0xff] }
 0xfd6   :  { %v4722_v63 = vpop.xlane.xlu1 %4721 }
 0xfd7   :  { %v7890_v44 = vsub.f32 %v7856_v40, %v4730_v48  ;;  %v4731_v35 = vmul.f32 0.0078125, %v4722_v63  ;;  %4756 = vadd.xlane.f32.xlu0 %v4744_v0  ;;  %v4745_v7 = vmul.f32 %v7885_v5, %v7885_v5  ;;  %v4949_v40 = vpack.c.bf16 %v4935_v9, %v4934_v34 }
 0xfd9   :  { %v7895_v25 = vsub.f32 %v7860_v28, %v4731_v35  ;;  %4758 = vadd.xlane.f32.xlu1 %v4745_v7  ;;  %v4746_v12 = vmul.f32 %v7890_v44, %v7890_v44  ;;  %v4936_v28 = vld [vmem:[%s8165_s12 + $0x20] sm:$0xff]  ;;  %6084 = vmatprep.subr.bf16.mxu1 %v4949_v40 }
 0xfda   :  { %v4950_v31 = vpack.c.bf16 %v4937_v59, %v4936_v28  ;;  %6085 = vmatpush3.bf16.msra.mxu1 %v4949_v40 }
 0xfdb   :  { %4760 = vadd.xlane.f32.xlu0 %v4746_v12  ;;  %v4747_v54 = vmul.f32 %v7895_v25, %v7895_v25 }
 0xfdc   :  { %6086 = vmatprep.subr.bf16.mxu1 %v4950_v31 }
 0xfdd   :  { %4762 = vadd.xlane.f32.xlu1 %v4747_v54 }
 0xfde   :  { %6087 = vmatpush3.bf16.msra.mxu1 %v4950_v31 }
 0xfdf   :  { %6088 = vmatprep.subr.bf16.mxu1 %v4951_v50 }
 0xfe2   :  { %6089 = vmatpush3.bf16.msra.mxu1 %v4951_v50 }
 0xfe3   :  { %6090 = vmatprep.subr.bf16.mxu1 %v4952_v58 }
 0xfe6   :  { %6091 = vmatpush3.bf16.msra.mxu1 %v4952_v58 }
 0xfe7   :  { %6092 = vmatprep.subr.bf16.mxu1 %v4953_v30 }
 0xfea   :  { %6093 = vmatpush3.bf16.msra.mxu1 %v4953_v30 }
0x1027   :  { %v4749_v24 = vpop.xlane.xlu0 %4748 }
0x1028   :  { %v4764_v37 = vmul.f32 0.0078125, %v4749_v24  ;;  %v4945_v24 = vld [vmem:[%s8165_s12 + $0x68] sm:$0xff] }
0x1029   :  { %v4751_v22 = vpop.xlane.xlu1 %4750 }
0x102a   :  { %v4772_v33 = vadd.f32 1e-05, %v4764_v37  ;;  %v4765_v26 = vmul.f32 0.0078125, %v4751_v22  ;;  %v4946_v22 = vld [vmem:[%s8165_s12 + $0x70] sm:$0xff] }
0x102b   :  { %v4753_v14 = vpop.xlane.xlu0 %4752 }
0x102c   :  { %6306 = vrsqrt.f32 %v4772_v33  ;;  %v4773_v23 = vadd.f32 1e-05, %v4765_v26  ;;  %v4766_v6 = vmul.f32 0.0078125, %v4753_v14  ;;  %v4947_v33 = vld [vmem:[%s8165_s12 + $0x78] sm:$0xff]  ;;  %v5382_v14 = vld [vmem:[#allocation18] ss:$0 sm:$0xff] }
0x102d   :  { %v4955_v26 = vpack.c.bf16 %v4947_v33, %v4946_v22 }
0x102e   :  { %6308 = vrsqrt.f32 %v4773_v23  ;;  %v4774_v4 = vadd.f32 1e-05, %v4766_v6 }
0x102f   :  { %v4755_v16 = vpop.xlane.xlu1 %4754 }
0x1030   :  { %6310 = vrsqrt.f32 %v4774_v4  ;;  %v4767_v55 = vmul.f32 0.0078125, %v4755_v16 }
0x1032   :  { %v4775_v39 = vadd.f32 1e-05, %v4767_v55 }
0x1034   :  { %6312 = vrsqrt.f32 %v4775_v39 }
0x1036   :  { %v6307_v41 = vpop.eup %6306 }
0x1037   :  { %v4788_v47 = vmul.f32 %v6307_v41, %v7864_v2 }
0x1038   :  { %v6309_v62 = vpop.eup %6308 }
0x1039   :  { %v4789_v29 = vmul.f32 %v6309_v62, %v7866_v13  ;;  %v4800_v57 = vmul.f32 %v5380_v53, %v4788_v47 }
0x103a   :  { %v6311_v1 = vpop.eup %6310 }
0x103b   :  { %v4790_v32 = vmul.f32 %v6311_v1, %v7870_v10  ;;  %v4801_v27 = vmul.f32 %v5380_v53, %v4789_v29  ;;  %v7940_v19 = vadd.f32 %v5381_v45, %v4800_v57 }
0x103d   :  { %v7942_v17 = vadd.f32 %v5381_v45, %v4801_v27  ;;  %v4802_v2 = vmul.f32 %v5380_v53, %v4790_v32 }
0x103e   :  { %v6313_v15 = vpop.eup %6312 }
0x103f   :  { %v4791_v18 = vmul.f32 %v6313_v15, %v7876_v46  ;;  %v4820_v20 = vpack.c.bf16 %v7942_v17, %v7940_v19  ;;  %v7947_v13 = vadd.f32 %v5381_v45, %v4802_v2 }
0x1041   :  { %6074 = vmatprep.mubr.bf16.mxu0 %v4820_v20  ;;  %v4803_v3 = vmul.f32 %v5380_v53, %v4791_v18 }
0x1043   :  { %v7949_v56 = vadd.f32 %v5381_v45, %v4803_v3 }
0x1045   :  { %v4821_v10 = vpack.c.bf16 %v7949_v56, %v7947_v13 }
0x1047   :  { %6075 = vmatmul.mubr.bf16.vlgmr.msra.gmra.mrb[152].mxu0 %v4821_v10 }
0x1064   :  { %v4757_v21 = vpop.xlane.xlu0 %4756 }
0x1065   :  { %v4768_v48 = vmul.f32 0.0078125, %v4757_v21 }
0x1066   :  { %v4759_v0 = vpop.xlane.xlu1 %4758 }
0x1067   :  { %v4776_v63 = vadd.f32 1e-05, %v4768_v48  ;;  %v4769_v35 = vmul.f32 0.0078125, %v4759_v0 }
0x1068   :  { %v4761_v46 = vpop.xlane.xlu0 %4760 }
0x1069   :  { %6314 = vrsqrt.f32 %v4776_v63  ;;  %v4777_v7 = vadd.f32 1e-05, %v4769_v35  ;;  %v4770_v12 = vmul.f32 0.0078125, %v4761_v46 }
0x106a   :  { %v4763_v54 = vpop.xlane.xlu1 %4762 }
0x106b   :  { %6316 = vrsqrt.f32 %v4777_v7  ;;  %v4778_v42 = vadd.f32 1e-05, %v4770_v12  ;;  %v4771_v43 = vmul.f32 0.0078125, %v4763_v54  ;;  %v5383_v7 = vld [vmem:[%s8166_s13] ss:$0 sm:$0xff] }
0x106d   :  { %6318 = vrsqrt.f32 %v4778_v42  ;;  %v4779_v34 = vadd.f32 1e-05, %v4771_v43 }
0x106f   :  { %6320 = vrsqrt.f32 %v4779_v34 }
0x1073   :  { %v6315_v36 = vpop.eup %6314 }
0x1074   :  { %v4792_v9 = vmul.f32 %v6315_v36, %v7882_v52 }
0x1075   :  { %v6317_v40 = vpop.eup %6316 }
0x1076   :  { %v4793_v28 = vmul.f32 %v6317_v40, %v7885_v5  ;;  %v4804_v59 = vmul.f32 %v5380_v53, %v4792_v9 }
0x1077   :  { %v6319_v31 = vpop.eup %6318 }
0x1078   :  { %v4805_v38 = vmul.f32 %v5380_v53, %v4793_v28  ;;  %v4794_v61 = vmul.f32 %v6319_v31, %v7890_v44  ;;  %v7956_v49 = vadd.f32 %v5381_v45, %v4804_v59 }
0x1079   :  { %v6321_v50 = vpop.eup %6320 }
0x107a   :  { %v7958_v51 = vadd.f32 %v5381_v45, %v4805_v38  ;;  %v4795_v58 = vmul.f32 %v6321_v50, %v7895_v25  ;;  %v4806_v60 = vmul.f32 %v5380_v53, %v4794_v61  ;;  %v4944_v25 = vld [vmem:[%s8165_s12 + $0x60] sm:$0xff] }
0x107b   :  { %v4954_v37 = vpack.c.bf16 %v4945_v24, %v4944_v25  ;;  %v6340_v38 = vld [vmem:[%s8180_s20] sm:$0xff] }
0x107c   :  { %v4822_v8 = vpack.c.bf16 %v7958_v51, %v7956_v49  ;;  %v4807_v52 = vmul.f32 %v5380_v53, %v4795_v58  ;;  %v7963_v30 = vadd.f32 %v5381_v45, %v4806_v60  ;;  %v199_v61 = vand.u32 2147483647, %v6340_v38 }
0x107d   :  { %6094 = vmatprep.subr.bf16.mxu1 %v4954_v37 }
0x107e   :  { %6078 = vmatprep.mubr.bf16.mxu0 %v4822_v8  ;;  %v7965_v5 = vadd.f32 %v5381_v45, %v4807_v52  ;;  %6095 = vmatpush3.bf16.msra.mxu1 %v4954_v37  ;;  %v208_v50 = vsel %vm207_vm2, %v199_v61, -inf }
0x107f   :  { %6096 = vmatprep.subr.bf16.mxu1 %v4955_v26 }
0x1080   :  { %v4823_v44 = vpack.c.bf16 %v7965_v5, %v7963_v30 }
0x1082   :  { %6079 = vmatmul.mubr.bf16.gmra.mrb[156].mxu0 %v4823_v44  ;;  %6097 = vmatpush3.bf16.msra.mxu1 %v4955_v26 }
0x1083   :  { %6122 = vmatprep.mubr.msk.bf16.mxu0 %vm6622_vm3, %v8181_v11 }
0x111a   :  { %v6076_v23 = vpop.f32.mrb[152].mxu0 }
0x111b   :  { %v4898_v6 = vadd.f32 %v6076_v23, %v5382_v14  ;;  %v4889_v4 = vpop.f32.mrb[153].mxu0 }
0x111c   :  { %v4890_v16 = vadd.f32 %v5382_v14, %v4889_v4  ;;  %v6077_v55 = vpop.f32.mrb[154].mxu0 }
0x111d   :  { %v4901_v39 = vadd.f32 %v6077_v55, %v5382_v14  ;;  %v4892_v41 = vpop.f32.mrb[155].mxu0  ;;  %v4922_v47 = vmax.f32 %v4898_v6, 0.0  ;;  %v6343_v6 = vld [vmem:[%s8180_s20 + $0x10] sm:$0xff]  ;;  %v6345_v55 = vld [vmem:[%s8180_s20 + $0x20] sm:$0xff] }
0x111e   :  { %v4893_v53 = vadd.f32 %v5382_v14, %v4892_v41  ;;  %v4920_v29 = vmax.f32 %v4890_v16, 0.0  ;;  %v201_v4 = vand.u32 2147483647, %v6343_v6 }
0x111f   :  { %v4923_v62 = vmax.f32 %v4901_v39, 0.0  ;;  %v203_v39 = vand.u32 2147483647, %v6345_v55 }
0x1120   :  { %v4921_v57 = vmax.f32 %v4893_v53, 0.0  ;;  %v6346_v53 = vld [vmem:[%s8180_s20 + $0x38] sm:$0xff] }
0x1121   :  { %v4929_v1 = vpack.c.bf16 %v4923_v62, %v4922_v47  ;;  %v206_v47 = vand.u32 2147483647, %v6346_v53  ;;  %v220_v62 = vsel %vm207_vm2, %v203_v39, -inf  ;;  %v5168_v39 = vld [vmem:[#allocation3] sm:$0xff] }
0x1122   :  { %v4928_v45 = vpack.c.bf16 %v4921_v57, %v4920_v29  ;;  %v6347_v29 = vld [vmem:[%s8180_s20 + $0x30] sm:$0xff] }
0x1123   :  { %v205_v57 = vand.u32 2147483647, %v6347_v29 }
0x1124   :  { %6098 = vmatprep.mubr.bf16.mxu1 %v4928_v45 }
0x1125   :  { %6099 = vmatmul.mubr.bf16.vlgmr.msra.gmra.mrb[144].mxu1 %v4929_v1  ;;  %v229_v1 = vsel %vm207_vm2, %v206_v47, -inf  ;;  %v226_v45 = vsel %vm207_vm2, %v205_v57, -inf  ;;  %v5194_v47 = vld [vmem:[#allocation19] sm:$0xff]  ;;  %v5196_v57 = vld [vmem:[#allocation19 + $0x10] sm:$0xff] }
0x1155   :  { %v6080_v32 = vpop.f32.mrb[156].mxu0 }
0x1156   :  { %v4914_v27 = vadd.f32 %v6080_v32, %v5382_v14  ;;  %v4905_v15 = vpop.f32.mrb[157].mxu0 }
0x1157   :  { %v4906_v18 = vadd.f32 %v5382_v14, %v4905_v15  ;;  %v6081_v20 = vpop.f32.mrb[158].mxu0 }
0x1158   :  { %v4917_v2 = vadd.f32 %v6081_v20, %v5382_v14  ;;  %v4908_v3 = vpop.f32.mrb[159].mxu0  ;;  %v4926_v21 = vmax.f32 %v4914_v27, 0.0 }
0x1159   :  { %v4909_v10 = vadd.f32 %v5382_v14, %v4908_v3  ;;  %v4924_v0 = vmax.f32 %v4906_v18, 0.0 }
0x115a   :  { %v4927_v48 = vmax.f32 %v4917_v2, 0.0 }
0x115b   :  { %v4925_v63 = vmax.f32 %v4909_v10, 0.0 }
0x115c   :  { %v4931_v35 = vpack.c.bf16 %v4927_v48, %v4926_v21 }
0x115d   :  { %v4930_v46 = vpack.c.bf16 %v4925_v63, %v4924_v0 }
0x115f   :  { %6102 = vmatprep.mubr.bf16.mxu1 %v4930_v46 }
0x1160   :  { %6103 = vmatmul.mubr.bf16.gmra.mrb[148].mxu1 %v4931_v35 }
0x11f8   :  { %v6100_v12 = vpop.f32.mrb[144].mxu1 }
0x11f9   :  { %v5006_v54 = vadd.f32 %v6100_v12, %v5383_v7  ;;  %v4997_v42 = vpop.f32.mrb[145].mxu1 }
0x11fa   :  { %v6101_v43 = vpop.f32.mrb[146].mxu1  ;;  %v4998_v36 = vadd.f32 %v5383_v7, %v4997_v42 }
0x11fb   :  { %v7987_v34 = vadd.f32 %v5006_v54, %v7947_v13  ;;  %v5009_v9 = vadd.f32 %v6101_v43, %v5383_v7  ;;  %v5000_v40 = vpop.f32.mrb[147].mxu1 }
0x11fc   :  { %v5001_v59 = vadd.f32 %v5383_v7, %v5000_v40  ;;  %v5028_v31 = vadd.f32 %v4998_v36, %v7940_v19 }
0x11fd   :  { %v7990_v28 = vadd.f32 %v5009_v9, %v7949_v56  ;;  %5042 = vadd.xlane.f32.xlu0 %v7987_v34 }
0x11fe   :  { %v5029_v13 = vadd.f32 %v5001_v59, %v7942_v17  ;;  %v6341_v17 = vld [vmem:[%s8180_s20 + $0x8] sm:$0xff] }
0x11ff   :  { %5044 = vadd.xlane.f32.xlu1 %v7990_v28  ;;  %v200_v37 = vand.u32 2147483647, %v6341_v17 }
0x1201   :  { %5038 = vadd.xlane.f32.xlu0 %v5028_v31  ;;  %v211_v23 = vsel %vm207_vm2, %v200_v37, -inf }
0x1203   :  { %5040 = vadd.xlane.f32.xlu1 %v5029_v13 }
0x1207   :  { %209 = vmax.xlane.f32.xlu1 %v208_v50 }
0x1233   :  { %v6104_v56 = vpop.f32.mrb[148].mxu1 }
0x1234   :  { %v5022_v58 = vadd.f32 %v6104_v56, %v5383_v7  ;;  %v5013_v60 = vpop.f32.mrb[149].mxu1 }
0x1235   :  { %v6105_v8 = vpop.f32.mrb[150].mxu1  ;;  %v5014_v52 = vadd.f32 %v5383_v7, %v5013_v60 }
0x1236   :  { %v8001_v19 = vadd.f32 %v5022_v58, %v7963_v30  ;;  %v5025_v44 = vadd.f32 %v6105_v8, %v5383_v7  ;;  %v5016_v25 = vpop.f32.mrb[151].mxu1  ;;  %v6342_v30 = vld [vmem:[%s8180_s20 + $0x18] sm:$0xff] }
0x1237   :  { %v5017_v24 = vadd.f32 %v5383_v7, %v5016_v25  ;;  %v5032_v33 = vadd.f32 %v5014_v52, %v7956_v49  ;;  %v202_v26 = vand.u32 2147483647, %v6342_v30 }
0x1238   :  { %5050 = vadd.xlane.f32.xlu0 %v8001_v19  ;;  %v8013_v14 = vadd.f32 %v5025_v44, %v7965_v5  ;;  %v214_v5 = vsel %vm207_vm2, %v201_v4, -inf }
0x1239   :  { %v5033_v22 = vadd.f32 %v5017_v24, %v7958_v51  ;;  %v217_v49 = vsel %vm207_vm2, %v202_v26, -inf  ;;  %v6344_v51 = vld [vmem:[%s8180_s20 + $0x28] sm:$0xff] }
0x123a   :  { %v204_v16 = vand.u32 2147483647, %v6344_v51 }
0x123b   :  { %5048 = vadd.xlane.f32.xlu1 %v5033_v22 }
0x123c   :  { %5046 = vadd.xlane.f32.xlu0 %v5032_v33  ;;  %v223_v41 = vsel %vm207_vm2, %v204_v16, -inf }
0x123f   :  { %5052 = vadd.xlane.f32.xlu1 %v8013_v14 }
0x1240   :  { %212 = vmax.xlane.f32.xlu0 %v211_v23 }
0x1243   :  { %218 = vmax.xlane.f32.xlu1 %v217_v49 }
0x1244   :  { %215 = vmax.xlane.f32.xlu0 %v214_v5 }
0x1247   :  { %224 = vmax.xlane.f32.xlu1 %v223_v41 }
0x1248   :  { %221 = vmax.xlane.f32.xlu0 %v220_v62  ;;  %v5195_v62 = vld [vmem:[#allocation19 + $0x8] sm:$0xff] }
0x1249   :  { %v5210_v29 = vpack.c.bf16 %v5195_v62, %v5194_v47 }
0x124b   :  { %230 = vmax.xlane.f32.xlu1 %v229_v1  ;;  %6107 = vmatpush3.bf16.msra.mxu0 %v5210_v29  ;;  %v5197_v1 = vld [vmem:[#allocation19 + $0x18] sm:$0xff] }
0x124c   :  { %227 = vmax.xlane.f32.xlu0 %v226_v45  ;;  %6108 = vmatprep.subr.bf16.mxu0 %v8181_v11  ;;  %v5211_v45 = vpack.c.bf16 %v5197_v1, %v5196_v57 }
0x124f   :  { %6109 = vmatpush3.bf16.msra.mxu0 %v5211_v45 }
0x1250   :  { %6110 = vmatprep.subr.bf16.mxu0 %v8181_v11 }
0x128a   :  { %v5043_v32 = vpop.xlane.xlu0 %5042 }
0x128b   :  { %v5056_v18 = vmul.f32 0.0078125, %v5043_v32 }
0x128c   :  { %v5045_v27 = vpop.xlane.xlu1 %5044 }
0x128d   :  { %v5057_v3 = vmul.f32 0.0078125, %v5045_v27  ;;  %v8043_v48 = vsub.f32 %v7987_v34, %v5056_v18  ;;  %v5198_v27 = vld [vmem:[#allocation19 + $0x20] sm:$0xff] }
0x128e   :  { %v5039_v15 = vpop.xlane.xlu0 %5038 }
0x128f   :  { %v5054_v20 = vmul.f32 0.0078125, %v5039_v15  ;;  %v8050_v35 = vsub.f32 %v7990_v28, %v5057_v3  ;;  %v5072_v7 = vmul.f32 %v8043_v48, %v8043_v48  ;;  %v5199_v15 = vld [vmem:[#allocation19 + $0x28] sm:$0xff]  ;;  %v5201_v3 = vld [vmem:[#allocation19 + $0x38] sm:$0xff] }
0x1290   :  { %v5041_v2 = vpop.xlane.xlu1 %5040  ;;  %v5212_v18 = vpack.c.bf16 %v5199_v15, %v5198_v27 }
0x1291   :  { %v8040_v10 = vsub.f32 %v5028_v31, %v5054_v20  ;;  %v5055_v21 = vmul.f32 0.0078125, %v5041_v2  ;;  %v5073_v12 = vmul.f32 %v8050_v35, %v8050_v35  ;;  %v5200_v2 = vld [vmem:[#allocation19 + $0x30] sm:$0xff] }
0x1292   :  { %6111 = vmatpush3.bf16.msra.mxu0 %v5212_v18 }
0x1293   :  { %v8045_v0 = vsub.f32 %v5029_v13, %v5055_v21  ;;  %v5070_v63 = vmul.f32 %v8040_v10, %v8040_v10  ;;  %6112 = vmatprep.subr.bf16.mxu0 %v8181_v11  ;;  %v5202_v21 = vld [vmem:[#allocation19 + $0x40] sm:$0xff] }
0x1294   :  { %v210_v54 = vpop.xlane.xlu1 %209 }
0x1295   :  { %5078 = vadd.xlane.f32.xlu0 %v5070_v63  ;;  %v5071_v46 = vmul.f32 %v8045_v0, %v8045_v0  ;;  %vm232_vm9 = vcmp.gt.f32.partialorder %v210_v54, 1e-08  ;;  %v5213_v63 = vpack.c.bf16 %v5201_v3, %v5200_v2  ;;  %v5205_v54 = vld [vmem:[#allocation19 + $0x58] sm:$0xff] }
0x1296   :  { %v8076_v52 = vsel %vm232_vm9, 1.0, %v8181_v11 }
0x1297   :  { %5080 = vadd.xlane.f32.xlu1 %v5071_v46  ;;  %v5203_v46 = vld [vmem:[#allocation19 + $0x48] sm:$0xff]  ;;  %6113 = vmatpush3.bf16.msra.mxu0 %v5213_v63 }
0x1298   :  { %6114 = vmatprep.subr.bf16.mxu0 %v8181_v11 }
0x1299   :  { %5082 = vadd.xlane.f32.xlu0 %v5072_v7  ;;  %v5214_v7 = vpack.c.bf16 %v5203_v46, %v5202_v21 }
0x129b   :  { %5084 = vadd.xlane.f32.xlu1 %v5073_v12  ;;  %v5204_v12 = vld [vmem:[#allocation19 + $0x50] sm:$0xff]  ;;  %6115 = vmatpush3.bf16.msra.mxu0 %v5214_v7 }
0x129c   :  { %6116 = vmatprep.subr.bf16.mxu0 %v8181_v11 }
0x12c5   :  { %v5051_v42 = vpop.xlane.xlu0 %5050 }
0x12c6   :  { %v5060_v9 = vmul.f32 0.0078125, %v5051_v42  ;;  %v5215_v42 = vpack.c.bf16 %v5205_v54, %v5204_v12 }
0x12c8   :  { %v5049_v43 = vpop.xlane.xlu1 %5048  ;;  %v8065_v50 = vsub.f32 %v8001_v19, %v5060_v9  ;;  %6117 = vmatpush3.bf16.msra.mxu0 %v5215_v42 }
0x12c9   :  { %v5059_v34 = vmul.f32 0.0078125, %v5049_v43  ;;  %v5047_v36 = vpop.xlane.xlu0 %5046  ;;  %v5206_v43 = vld [vmem:[#allocation19 + $0x60] sm:$0xff]  ;;  %6118 = vmatprep.subr.bf16.mxu0 %v8181_v11 }
0x12ca   :  { %v5058_v40 = vmul.f32 0.0078125, %v5047_v36  ;;  %v5076_v24 = vmul.f32 %v8065_v50, %v8065_v50 }
0x12cb   :  { %v8058_v28 = vsub.f32 %v5033_v22, %v5059_v34  ;;  %v5207_v34 = vld [vmem:[#allocation19 + $0x68] sm:$0xff] }
0x12cc   :  { %v8060_v59 = vsub.f32 %v5032_v33, %v5058_v40  ;;  %v5053_v31 = vpop.xlane.xlu1 %5052  ;;  %v5216_v9 = vpack.c.bf16 %v5207_v34, %v5206_v43  ;;  %v5208_v40 = vld [vmem:[#allocation19 + $0x70] sm:$0xff] }
0x12cd   :  { %v5061_v38 = vmul.f32 0.0078125, %v5053_v31  ;;  %v5075_v61 = vmul.f32 %v8058_v28, %v8058_v28  ;;  %v213_v13 = vpop.xlane.xlu0 %212  ;;  %v5209_v31 = vld [vmem:[#allocation19 + $0x78] sm:$0xff] }
0x12ce   :  { %v5074_v56 = vmul.f32 %v8060_v59, %v8060_v59  ;;  %vm233_vm10 = vcmp.gt.f32.partialorder %v213_v13, 1e-08  ;;  %6119 = vmatpush3.bf16.msra.mxu0 %v5216_v9 }
0x12cf   :  { %v8070_v58 = vsub.f32 %v8013_v14, %v5061_v38  ;;  %5088 = vadd.xlane.f32.xlu1 %v5075_v61  ;;  %v8073_v60 = vsel %vm233_vm10, 1.0, %v8181_v11  ;;  %6120 = vmatprep.subr.bf16.mxu0 %v8181_v11  ;;  %v5217_v38 = vpack.c.bf16 %v5209_v31, %v5208_v40 }
0x12d0   :  { %5086 = vadd.xlane.f32.xlu0 %v5074_v56  ;;  %v219_v8 = vpop.xlane.xlu1 %218  ;;  %v5169_v25 = vadd.f32 %v8073_v60, %v8076_v52 }
0x12d1   :  { %v5077_v19 = vmul.f32 %v8070_v58, %v8070_v58  ;;  %v216_v44 = vpop.xlane.xlu0 %215  ;;  %vm235_vm11 = vcmp.gt.f32.partialorder %v219_v8, 1e-08 }
0x12d2   :  { %vm234_vm12 = vcmp.gt.f32.partialorder %v216_v44, 1e-08  ;;  %v8088_v37 = vsel %vm235_vm11, 1.0, %v8181_v11  ;;  %6121 = vmatpush3.bf16.msra.mxu0 %v5217_v38 }
0x12d3   :  { %5092 = vadd.xlane.f32.xlu1 %v5077_v19  ;;  %v8085_v17 = vsel %vm234_vm12, 1.0, %v8181_v11 }
0x12d4   :  { %5090 = vadd.xlane.f32.xlu0 %v5076_v24  ;;  %v5170_v22 = vadd.f32 %v8085_v17, %v5169_v25  ;;  %v225_v33 = vpop.xlane.xlu1 %224 }
0x12d5   :  { %v222_v30 = vpop.xlane.xlu0 %221  ;;  %vm237_vm13 = vcmp.gt.f32.partialorder %v225_v33, 1e-08 }
0x12d6   :  { %v5171_v26 = vadd.f32 %v8088_v37, %v5170_v22  ;;  %vm236_vm14 = vcmp.gt.f32.partialorder %v222_v30, 1e-08  ;;  %v8096_v23 = vsel %vm237_vm13, 1.0, %v8181_v11 }
0x12d7   :  { %v8093_v14 = vsel %vm236_vm14, 1.0, %v8181_v11 }
0x12d8   :  { %v5172_v6 = vadd.f32 %v8093_v14, %v5171_v26  ;;  %v231_v4 = vpop.xlane.xlu1 %230 }
0x12d9   :  { %v228_v49 = vpop.xlane.xlu0 %227  ;;  %vm239_vm15 = vcmp.gt.f32.partialorder %v231_v4, 1e-08 }
0x12da   :  { %v5173_v51 = vadd.f32 %v8096_v23, %v5172_v6  ;;  %vm238_vm0 = vcmp.gt.f32.partialorder %v228_v49, 1e-08  ;;  %v8104_v5 = vsel %vm239_vm15, 1.0, %v8181_v11 }
0x12db   :  { %v8101_v16 = vsel %vm238_vm0, 1.0, %v8181_v11 }
0x12dc   :  { %v5174_v55 = vadd.f32 %v8101_v16, %v5173_v51 }
0x12de   :  { %v5175_v41 = vadd.f32 %v8104_v5, %v5174_v55 }
0x12e0   :  { %v5176_v53 = vadd.f32 %v5175_v41, %v5168_v39 }
0x12e2   :  { %5178 = vst.msk [vmem:[#allocation3] sm:$0xff] %vm189_vm8, %v5176_v53  ;;  %v5384_v53 = vld [vmem:[%s8167_s14] ss:$0 sm:$0xff] }
0x12e9   :  { %v5182_v32 = vld [vmem:[#allocation3] sm:$0xff] }
0x12ea   :  { %vm5183_vm1 = vcmp.gt.f32.partialorder %v5182_v32, 0.0 }
0x12eb   :  { %v5184_v20 = vsel %vm5183_vm1, %v5182_v32, 1.0 }
0x12ec   :  { %6322 = vrcp.f32 %v5184_v20 }
0x12f6   :  { %v6323_v36 = vpop.eup %6322 }
0x12f7   :  { %5189 = vperm.xlu0 %6174, %v6323_v36  }
0x1322   :  { %v5079_v61 = vpop.xlane.xlu0 %5078 }
0x1323   :  { %v5094_v19 = vmul.f32 0.0078125, %v5079_v61 }
0x1324   :  { %v5081_v13 = vpop.xlane.xlu1 %5080 }
0x1325   :  { %v5095_v56 = vmul.f32 0.0078125, %v5081_v13  ;;  %v5102_v22 = vadd.f32 1e-05, %v5094_v19 }
0x1326   :  { %v5083_v8 = vpop.xlane.xlu0 %5082 }
0x1327   :  { %v5103_v44 = vadd.f32 1e-05, %v5095_v56  ;;  %v5096_v25 = vmul.f32 0.0078125, %v5083_v8 }
0x1328   :  { %v5085_v24 = vpop.xlane.xlu1 %5084 }
0x1329   :  { %6324 = vrsqrt.f32 %v5103_v44  ;;  %v5104_v33 = vadd.f32 1e-05, %v5096_v25  ;;  %v5097_v30 = vmul.f32 0.0078125, %v5085_v24 }
0x132a   :  { %6326 = vrsqrt.f32 %v5102_v22 }
0x132b   :  { %6328 = vrsqrt.f32 %v5104_v33  ;;  %v5105_v26 = vadd.f32 1e-05, %v5097_v30 }
0x132d   :  { %6330 = vrsqrt.f32 %v5105_v26 }
0x1333   :  { %v6325_v11 = vpop.eup %6324 }
0x1334   :  { %v6327_v6 = vpop.eup %6326  ;;  %v5119_v4 = vmul.f32 %v6325_v11, %v8045_v0 }
0x1335   :  { %v6329_v49 = vpop.eup %6328  ;;  %v5118_v55 = vmul.f32 %v6327_v6, %v8040_v10  ;;  %v5385_v10 = vld [vmem:[%s8167_s14 + $0x1] ss:$0 sm:$0xff] }
0x1336   :  { %v5131_v62 = vmul.f32 %v5384_v53, %v5119_v4  ;;  %v5120_v29 = vmul.f32 %v6329_v49, %v8043_v48 }
0x1337   :  { %v6331_v1 = vpop.eup %6330  ;;  %v5130_v27 = vmul.f32 %v5384_v53, %v5118_v55 }
0x1338   :  { %v5143_v20 = vadd.f32 %v5385_v10, %v5131_v62  ;;  %v5132_v2 = vmul.f32 %v5384_v53, %v5120_v29  ;;  %v5121_v3 = vmul.f32 %v6331_v1, %v8050_v35 }
0x1339   :  { %v5142_v63 = vadd.f32 %v5385_v10, %v5130_v27 }
0x133a   :  { %v5133_v46 = vmul.f32 %v5384_v53, %v5121_v3  ;;  %v5144_v7 = vadd.f32 %v5385_v10, %v5132_v2  ;;  %v5152_v12 = vmul.f32 %v8073_v60, %v5143_v20 }
0x133b   :  { %v5151_v54 = vmul.f32 %v8076_v52, %v5142_v63 }
0x133c   :  { %v5145_v43 = vadd.f32 %v5385_v10, %v5133_v46  ;;  %v5153_v34 = vmul.f32 %v8085_v17, %v5144_v7 }
0x133d   :  { %v5159_v36 = vadd.f32 %v5152_v12, %v5151_v54 }
0x133e   :  { %v5154_v13 = vmul.f32 %v8088_v37, %v5145_v43 }
0x133f   :  { %v5160_v56 = vadd.f32 %v5159_v36, %v5153_v34 }
0x135c   :  { %v5089_v51 = vpop.xlane.xlu1 %5088 }
0x135d   :  { %v5099_v39 = vmul.f32 0.0078125, %v5089_v51  ;;  %v5087_v41 = vpop.xlane.xlu0 %5086 }
0x135e   :  { %v5098_v47 = vmul.f32 0.0078125, %v5087_v41 }
0x135f   :  { %v5107_v57 = vadd.f32 1e-05, %v5099_v39 }
0x1360   :  { %v5106_v45 = vadd.f32 1e-05, %v5098_v47  ;;  %v5093_v32 = vpop.xlane.xlu1 %5092 }
0x1361   :  { %6332 = vrsqrt.f32 %v5107_v57  ;;  %v5101_v0 = vmul.f32 0.0078125, %v5093_v32  ;;  %v5091_v15 = vpop.xlane.xlu0 %5090 }
0x1362   :  { %6334 = vrsqrt.f32 %v5106_v45  ;;  %v5100_v18 = vmul.f32 0.0078125, %v5091_v15 }
0x1363   :  { %v5109_v21 = vadd.f32 1e-05, %v5101_v0 }
0x1364   :  { %v5108_v48 = vadd.f32 1e-05, %v5100_v18 }
0x1365   :  { %6336 = vrsqrt.f32 %v5109_v21 }
0x1366   :  { %6338 = vrsqrt.f32 %v5108_v48 }
0x136b   :  { %v6333_v42 = vpop.eup %6332 }
0x136c   :  { %v6335_v9 = vpop.eup %6334  ;;  %v5123_v40 = vmul.f32 %v6333_v42, %v8058_v28  ;;  %v5161_v28 = vadd.f32 %v5160_v56, %v5154_v13 }
0x136d   :  { %v5122_v35 = vmul.f32 %v6335_v9, %v8060_v59 }
0x136e   :  { %v5135_v31 = vmul.f32 %v5384_v53, %v5123_v40 }
0x136f   :  { %v6337_v38 = vpop.eup %6336  ;;  %v5134_v61 = vmul.f32 %v5384_v53, %v5122_v35 }
0x1370   :  { %v6339_v8 = vpop.eup %6338  ;;  %v5125_v60 = vmul.f32 %v6337_v38, %v8070_v58  ;;  %v5147_v44 = vadd.f32 %v5385_v10, %v5135_v31 }
0x1371   :  { %v5124_v52 = vmul.f32 %v6339_v8, %v8065_v50  ;;  %v5146_v19 = vadd.f32 %v5385_v10, %v5134_v61 }
0x1372   :  { %v5137_v17 = vmul.f32 %v5384_v53, %v5125_v60  ;;  %v5156_v33 = vmul.f32 %v8096_v23, %v5147_v44 }
0x1373   :  { %v5136_v25 = vmul.f32 %v5384_v53, %v5124_v52  ;;  %v5155_v24 = vmul.f32 %v8093_v14, %v5146_v19  ;;  %v5386_v14 = vld [vmem:[%s8169_s16] ss:$0 sm:$0xff] }
0x1374   :  { %v5149_v59 = vadd.f32 %v5385_v10, %v5137_v17 }
0x1375   :  { %v5148_v22 = vadd.f32 %v5385_v10, %v5136_v25  ;;  %v5162_v30 = vadd.f32 %v5161_v28, %v5155_v24 }
0x1376   :  { %v5158_v11 = vmul.f32 %v8104_v5, %v5149_v59  ;;  %v5190_v50 = vpop.permute.xlu0 %5189 }
0x1377   :  { %v5157_v37 = vmul.f32 %v8101_v16, %v5148_v22  ;;  %v5163_v26 = vadd.f32 %v5162_v30, %v5156_v33 }
0x1379   :  { %v5164_v58 = vadd.f32 %v5163_v26, %v5157_v37 }
0x137b   :  { %v5165_v6 = vadd.f32 %v5164_v58, %v5158_v11 }
0x137d   :  { %v5192_v4 = vmul.f32 %v5190_v50, %v5165_v6 }
0x137f   :  { %v5193_v49 = vpack.c.bf16 %v5192_v4, %v5192_v4 }
0x1381   :  { %6123 = vmatmul.mubr.bf16.vlgmr.msra.gmra.mrb[160].mxu0 %v5193_v49 }
0x1454   :  { %v5259_v51 = vpop.f32.mrb[160].mxu0 }
0x1455   :  { %v5260_v23 = vadd.f32 %v5386_v14, %v5259_v51  ;;  %v6124_v55 = vpop.f32.mrb[161].mxu0 }
0x1456   :  { %v5262_v16 = vpop.f32.mrb[162].mxu0 }
0x1457   :  { %5265 = vst [vmem:[#allocation21] sm:$0xff] %v5260_v23  ;;  %v6125_v39 = vpop.f32.mrb[163].mxu0 }
0x1458   :  { %6579 = shalt.err (!%p6576_p0)
}
0x1459   :  { %s8186_s21 = sld [smem:[#allocation31_spill]] }
0x145f   :  { %s6580_s16 = scalar_lea.hbm %s8186_s21, 128 }
0x1460   :  { %p6581_p1 = scmp.ne.s32.totalorder %s8186_s21, %s6580_s16  ;;  %p6584_p2 = scmp.lt.u32.totalorder %s6580_s16, %s8186_s21 }
0x1462   :  { %p6586_p3 = pnand %p6584_p2, %p6581_p1 }
0x1464   :  { %6589 = shalt.err (!%p6586_p3)
}
0x1465   :  { %5275 = dma.vmem_to_hbm [thread:$0]  %s5273_s6, 128, %s8186_s21, [#allocation6]  }
0x1466   :  { %6602 = dma.done.wait [#allocation6], 128  }
0x1467   :  { %6603 = vsyncadd [#allocation6], 4294967168 }
0x1468   :  { %5279 = vsyncpa [#allocation5], 1 }
0x1469   :  { %5280 = vsyncpa [#allocation8], 1 }
0x146a   :  { %5281 = vsyncpa [#allocation11], 1 }
0x146b   :  { %5282 = vsyncpa [#allocation14], 1 }
0x146c   :  { %5283 = vsyncpa [#allocation17], 1 }
0x146d   :  { %5284 = vsyncpa [#allocation20], 1 }
0x146e   :  { %5285 = vsyncpa [#allocation6], 1 }

</bundles_post_ra>
